<compile_context>
chip_gen: v6e
topology: v6e:2x2x1
jax: 0.10.0
libtpu: 0.0.40
codegen_flags: <defaults>
</compile_context>

<pallas_src>
import jax
import jax.numpy as jnp
from jax.experimental import pallas as pl
from jax.experimental.pallas import tpu as pltpu


def _round_up(a, m):
    return ((a + m - 1) // m) * m


def _erf_poly(z):
    """Abramowitz & Stegun 7.1.26 erf approx (VPU mul/add + EUP exp/recip only)."""
    a1 = 0.254829592
    a2 = -0.284496736
    a3 = 1.421413741
    a4 = -1.453152027
    a5 = 1.061405429
    p = 0.3275911
    az = jnp.abs(z)
    # approx reciprocal lowers to the EUP slot, freeing VALU slots in the
    # biggest elementwise chain of the kernel (runs on the (TM, TKI) block).
    t = pl.reciprocal(1.0 + p * az, approx=True)
    poly = ((((a5 * t + a4) * t + a3) * t + a2) * t + a1) * t
    y = 1.0 - poly * jnp.exp(-az * az)
    return jnp.where(z >= 0.0, y, -y)


def _gelu_exact(h):
    # PyTorch nn.GELU() default: 0.5 * x * (1 + erf(x / sqrt(2)))
    return 0.5 * h * (1.0 + _erf_poly(h * 0.7071067811865476))


def ffn_kernel(x_ref, g_ref, w1_ref, b1_ref, w2_ref, b2_ref, o_ref,
               xn_ref, acc_ref):
    """One (row-tile, dim_inner-chunk) grid step of the FeedForward.

    x_ref  : (TM, dim)        input rows
    g_ref  : (1, dim)         gamma * sqrt(dim)  (f32, pre-folded)
    w1_ref : (dim, TKI)       first linear weight chunk (bf16)
    b1_ref : (1, TKI)         first linear bias chunk (f32)
    w2_ref : (TKI, dim)       second linear weight chunk (bf16)
    b2_ref : (1, dim)         second linear bias (f32)
    o_ref  : (TM, dim)        output rows (written on the last chunk)
    xn_ref : (TM, dim) bf16   cached RMSNorm'd rows (computed on chunk 0)
    acc_ref: (TM, dim) f32    running second-matmul accumulator
    """
    j = pl.program_id(1)

    @pl.when(j == 0)
    def _():
        # RMSNorm: F.normalize(x, dim=-1) * sqrt(dim) * gamma
        # (sqrt(dim) already folded into g_ref); rsqrt -> EUP, no divide.
        x = x_ref[...].astype(jnp.float32)
        ss = jnp.sum(x * x, axis=-1, keepdims=True)
        xn = x * jax.lax.rsqrt(ss + 1e-24)          # == x / max(||x||, 1e-12)
        xn_ref[...] = (xn * g_ref[0]).astype(xn_ref.dtype)
        acc_ref[...] = jnp.zeros_like(acc_ref)

    # Linear 1 chunk (MXU, bf16 operands, f32 accumulation) + bias, exact GELU.
    h = jnp.dot(xn_ref[...], w1_ref[...],
                preferred_element_type=jnp.float32) + b1_ref[0]   # (TM, TKI)
    h = _gelu_exact(h)

    # Partial Linear 2: accumulate this dim_inner chunk into the f32 scratch.
    acc_ref[...] += jnp.dot(h.astype(w2_ref.dtype), w2_ref[...],
                            preferred_element_type=jnp.float32)

    @pl.when(j == pl.num_programs(1) - 1)
    def _():
        # TODO(synk): nn.Dropout has no kernel equivalent; identity (eval mode).
        o_ref[...] = (acc_ref[...] + b2_ref[0]).astype(o_ref.dtype)


def _vmem_budget_bytes():
    """Generation-aware scoped-VMEM budget: physical capacity minus headroom."""
    try:
        cap = int(pltpu.get_tpu_info().vmem_capacity_bytes)
    except Exception:
        cap = 64 * 1024 * 1024            # conservative (v7x per-core) fallback
    return min(int(cap * 0.78), 128 * 1024 * 1024)


def _choose_tiles(M, dim, dim_inner, in_itemsize, out_itemsize, budget,
                  max_tm=512):
    """Pick (row tile TM, dim_inner chunk TKI) so the per-step footprint fits.

    Every tiled input is double-buffered by Pallas, so each is counted twice.
    """
    M8 = _round_up(max(M, 1), 8)

    def footprint(tm, tki):
        fp = (
            2 * tm * dim * in_itemsize      # x tile (double-buffered)
            + 2 * tm * dim * out_itemsize   # out tile (double-buffered)
            + 2 * 2 * dim * 4               # gamma + b2 (f32, double-buffered)
            + 2 * dim * tki * 2             # w1 chunk (bf16, double-buffered)
            + 2 * tki * 4                   # b1 chunk (f32, double-buffered)
            + 2 * tki * dim * 2             # w2 chunk (bf16, double-buffered)
            + tm * dim * 2                  # xn scratch (bf16)
            + tm * dim * 4                  # acc scratch (f32)
            + 2 * tm * tki * 4              # f32 h + GELU temporaries
        )
        return int(fp * 1.25)               # compiler / spill headroom

    # dim_inner chunk candidates: power-of-two divisors of dim_inner that are
    # multiples of 128 (lane-aligned), largest first; dim_inner == no tiling.
    tki_candidates = [dim_inner]
    c = dim_inner
    while c % 2 == 0 and c // 2 >= 128:
        c //= 2
        if c % 128 == 0:
            tki_candidates.append(c)

    # Row-tile candidates, largest first (big tiles amortize the ~600-cycle
    # grid-step overhead and fill the 256-wide MXU on v6e/v7x).
    tm_candidates = []
    t = min(_round_up(max_tm, 8), M8)
    while t >= 8:
        tm_candidates.append(t)
        if t == 8:
            break
        t = max(8, _round_up(t // 2, 8))

    tm, tki = tm_candidates[-1], tki_candidates[-1]
    found = False
    for tm_c in tm_candidates:
        for tki_c in tki_candidates:
            if footprint(tm_c, tki_c) <= budget:
                tm, tki, found = tm_c, tki_c, True
                break
        if found:
            break

    # Guarantee >=2 row steps when there is enough work, so the "parallel"
    # axis can shard across v7x's two TensorCores.
    if M8 >= 256 and M8 <= tm:
        tm = _round_up(-(-M8 // 2), 8)

    # Prefer a TM that divides M8 so we can skip the jnp.pad HBM copy.
    if M8 % tm != 0:
        for t in range(tm, max(8, tm // 2) - 1, -8):
            if M8 % t == 0:
                tm = t
                break

    return tm, tki


def feedforward_forward(x, gamma, w1, b1, w2, b2, *, max_block_rows=512):
    """x: (b, n, dim); weights stored as (in_features, out_features).

    Pass w1/w2 already in bfloat16 (cast once, outside this call) to avoid a
    per-call HBM round-trip; f32 weights are accepted but cast as a fallback.
    """
    b, n, dim = x.shape
    dim_inner = w1.shape[1]
    M = b * n
    xm = x.reshape(M, dim)

    budget = _vmem_budget_bytes()
    in_isz = jnp.dtype(x.dtype).itemsize
    TM, TKI = _choose_tiles(M, dim, dim_inner, in_isz, in_isz, budget,
                            max_tm=max_block_rows)

    Mp = _round_up(_round_up(M, 8), TM)
    if Mp != M:
        # TODO(synk): masked tail store would avoid this extra activation copy.
        xm = jnp.pad(xm, ((0, Mp - M), (0, 0)))
    grid = (Mp // TM, dim_inner // TKI)

    # Fold sqrt(dim) into gamma at trace time; biases in f32.
    gamma_scaled = (gamma.astype(jnp.float32) * (dim ** 0.5)).reshape(1, dim)
    w1b = w1 if w1.dtype == jnp.bfloat16 else w1.astype(jnp.bfloat16)
    w2b = w2 if w2.dtype == jnp.bfloat16 else w2.astype(jnp.bfloat16)
    b1r = b1.astype(jnp.float32).reshape(1, dim_inner)
    b2r = b2.astype(jnp.float32).reshape(1, dim)

    out = pl.pallas_call(
        ffn_kernel,
        out_shape=jax.ShapeDtypeStruct((Mp, dim), x.dtype),
        grid=grid,
        in_specs=[
            pl.BlockSpec((TM, dim), lambda i, j: (i, 0)),       # x rows
            pl.BlockSpec((1, dim), lambda i, j: (0, 0)),        # gamma*sqrt(dim)
            pl.BlockSpec((dim, TKI), lambda i, j: (0, j)),      # w1 chunk
            pl.BlockSpec((1, TKI), lambda i, j: (0, j)),        # b1 chunk
            pl.BlockSpec((TKI, dim), lambda i, j: (j, 0)),      # w2 chunk
            pl.BlockSpec((1, dim), lambda i, j: (0, 0)),        # b2
        ],
        out_specs=pl.BlockSpec((TM, dim), lambda i, j: (i, 0)),
        scratch_shapes=[
            pltpu.VMEM((TM, dim), jnp.bfloat16),   # cached RMSNorm'd rows
            pltpu.VMEM((TM, dim), jnp.float32),    # second-matmul accumulator
        ],
        compiler_params=pltpu.CompilerParams(
            dimension_semantics=("parallel", "arbitrary"),
            vmem_limit_bytes=budget),
    )(xm, gamma_scaled, w1b, b1r, w2b, b2r)

    return out[:M].reshape(b, n, dim)


def feedforward_reference(x, gamma, w1, b1, w2, b2):
    """Pure-JAX f32 reference mirroring the PyTorch forward (eval mode)."""
    dim = x.shape[-1]
    x = x.astype(jnp.float32)
    l2 = jnp.sqrt(jnp.sum(x * x, axis=-1, keepdims=True))
    xn = x / jnp.maximum(l2, 1e-12) * (dim ** 0.5) * gamma
    h = xn @ w1 + b1
    h = 0.5 * h * (1.0 + jax.lax.erf(h / jnp.sqrt(2.0)))   # exact GELU
    return h @ w2 + b2


if __name__ == "__main__":
    # Small, module-consistent shapes.  dim=128 keeps the output lane-dense;
    # M = batch*seq = 256 gives >=2 row tiles so the "parallel" grid axis can
    # use both TensorCores on v7x.
    batch, seq, dim, mult = 4, 64, 128, 4
    dim_inner = dim * mult

    key = jax.random.PRNGKey(0)
    k_x, k_w1, k_b1, k_w2, k_b2 = jax.random.split(key, 5)

    x = jax.random.normal(k_x, (batch, seq, dim), dtype=jnp.float32)

    # Deterministic synthetic parameters (no checkpoint load).
    gamma = jnp.ones((dim,), dtype=jnp.float32)                         # RMSNorm.gamma
    w1 = jax.random.normal(k_w1, (dim, dim_inner), jnp.float32) * 0.05
    b1 = jax.random.normal(k_b1, (dim_inner,), jnp.float32) * 0.05
    w2 = jax.random.normal(k_w2, (dim_inner, dim), jnp.float32) * 0.05
    b2 = jax.random.normal(k_b2, (dim,), jnp.float32) * 0.05

    # Cast weights to bf16 ONCE, outside the forward (per perf review).
    w1_bf16 = w1.astype(jnp.bfloat16)
    w2_bf16 = w2.astype(jnp.bfloat16)

    out = feedforward_forward(x, gamma, w1_bf16, b1, w2_bf16, b2)
    out = jax.block_until_ready(out)

    ref = feedforward_reference(x, gamma, w1, b1, w2, b2)
    assert out.shape == (batch, seq, dim)
    # bf16 matmul operands (f32 accumulation) => loosened tolerance vs f32 ref.
    assert jnp.allclose(out, ref, atol=3e-2, rtol=3e-2), "mismatch vs reference"

    print("KERNEL_OK")
</pallas_src>

<mosaic_0001>
module attributes {stable_mosaic.version = 11 : i64} {
  func.func @ffn_kernel(%arg0: i32, %arg1: i32, %arg2: memref<128x128xf32, #tpu.memory_space<vmem>>, %arg3: memref<1x128xf32, #tpu.memory_space<vmem>>, %arg4: memref<128x512xbf16, #tpu.memory_space<vmem>>, %arg5: memref<1x512xf32, #tpu.memory_space<vmem>>, %arg6: memref<512x128xbf16, #tpu.memory_space<vmem>>, %arg7: memref<1x128xf32, #tpu.memory_space<vmem>>, %arg8: memref<128x128xf32, #tpu.memory_space<vmem>>, %arg9: memref<128x128xbf16, #tpu.memory_space<vmem>>, %arg10: memref<128x128xf32, #tpu.memory_space<vmem>>) attributes {dimension_semantics = [#tpu.dimension_semantics<parallel>, #tpu.dimension_semantics<arbitrary>], iteration_bounds = array<i64: 2, 1>, scalar_prefetch = 0 : i64, scratch_operands = 2 : i64, tpu.core_type = #tpu.core_type<tc>, window_params = [{transform_indices = @transform_0, window_bounds = array<i64: 128, 128>}, {pipeline_mode = #tpu.pipeline_mode<synchronous>, transform_indices = @transform_1, window_bounds = array<i64: 1, 128>}, {transform_indices = @transform_2, window_bounds = array<i64: 128, 512>}, {transform_indices = @transform_3, window_bounds = array<i64: 1, 512>}, {transform_indices = @transform_4, window_bounds = array<i64: 512, 128>}, {pipeline_mode = #tpu.pipeline_mode<synchronous>, transform_indices = @transform_5, window_bounds = array<i64: 1, 128>}, {transform_indices = @transform_6, window_bounds = array<i64: 128, 128>}]} {
    %c0_i32 = arith.constant 0 : i32
    %0 = arith.cmpi eq, %arg1, %c0_i32 : i32
    %1 = arith.extui %0 : i1 to i32
    %c0_i32_0 = arith.constant 0 : i32
    %2 = arith.cmpi ne, %1, %c0_i32_0 : i32
    scf.if %2 {
      %c0_29 = arith.constant 0 : index
      %c0_30 = arith.constant 0 : index
      %59 = vector.load %arg2[%c0_29, %c0_30] : memref<128x128xf32, #tpu.memory_space<vmem>>, vector<128x128xf32>
      %60 = arith.mulf %59, %59 : vector<128x128xf32>
      %cst_31 = arith.constant dense<0.000000e+00> : vector<128xf32>
      %61 = vector.multi_reduction <add>, %60, %cst_31 [1] : vector<128x128xf32> to vector<128xf32>
      %62 = vector.shape_cast %61 : vector<128xf32> to vector<128x1xf32>
      %cst_32 = arith.constant 1.000000e-24 : f32
      %63 = vector.broadcast %cst_32 : f32 to vector<128x1xf32>
      %64 = arith.addf %62, %63 : vector<128x1xf32>
      %65 = math.rsqrt %64 : vector<128x1xf32>
      %66 = vector.broadcast %65 : vector<128x1xf32> to vector<128x128xf32>
      %67 = arith.mulf %59, %66 : vector<128x128xf32>
      %c0_33 = arith.constant 0 : index
      %c0_34 = arith.constant 0 : index
      %68 = vector.load %arg3[%c0_33, %c0_34] : memref<1x128xf32, #tpu.memory_space<vmem>>, vector<1x128xf32>
      %69 = vector.shape_cast %68 : vector<1x128xf32> to vector<128xf32>
      %70 = vector.shape_cast %69 : vector<128xf32> to vector<1x128xf32>
      %71 = vector.broadcast %70 : vector<1x128xf32> to vector<128x128xf32>
      %72 = arith.mulf %67, %71 : vector<128x128xf32>
      %73 = arith.truncf %72 : vector<128x128xf32> to vector<128x128xbf16>
      %c0_35 = arith.constant 0 : index
      %c0_36 = arith.constant 0 : index
      %74 = vector.load %arg9[%c0_35, %c0_36] : memref<128x128xbf16, #tpu.memory_space<vmem>>, vector<128x128xbf16>
      tpu.vector_store %arg9[%c0_35, %c0_36], %73 {strides = array<i32>} : memref<128x128xbf16, #tpu.memory_space<vmem>>, vector<128x128xbf16>,
      %cst_37 = arith.constant 0.000000e+00 : f32
      %75 = vector.broadcast %cst_37 : f32 to vector<128x128xf32>
      %c0_38 = arith.constant 0 : index
      %c0_39 = arith.constant 0 : index
      %76 = vector.load %arg10[%c0_38, %c0_39] : memref<128x128xf32, #tpu.memory_space<vmem>>, vector<128x128xf32>
      tpu.vector_store %arg10[%c0_38, %c0_39], %75 {strides = array<i32>} : memref<128x128xf32, #tpu.memory_space<vmem>>, vector<128x128xf32>,
    } else {
    }
    %c0 = arith.constant 0 : index
    %c0_1 = arith.constant 0 : index
    %3 = vector.load %arg9[%c0, %c0_1] : memref<128x128xbf16, #tpu.memory_space<vmem>>, vector<128x128xbf16>
    %c0_2 = arith.constant 0 : index
    %c0_3 = arith.constant 0 : index
    %4 = vector.load %arg4[%c0_2, %c0_3] : memref<128x512xbf16, #tpu.memory_space<vmem>>, vector<128x512xbf16>
    %cst = arith.constant dense<0.000000e+00> : vector<128x512xf32>
    %5 = tpu.matmul %3, %4, %cst {dimension_numbers = #tpu.dot_dimension_numbers<[1], [0], [0], [1], [0, 0, 1, 1], [], []>} : vector<128x128xbf16>, vector<128x512xbf16>, vector<128x512xf32> -> vector<128x512xf32>
    %c0_4 = arith.constant 0 : index
    %c0_5 = arith.constant 0 : index
    %6 = vector.load %arg5[%c0_4, %c0_5] : memref<1x512xf32, #tpu.memory_space<vmem>>, vector<1x512xf32>
    %7 = vector.shape_cast %6 : vector<1x512xf32> to vector<512xf32>
    %8 = vector.shape_cast %7 : vector<512xf32> to vector<1x512xf32>
    %9 = vector.broadcast %8 : vector<1x512xf32> to vector<128x512xf32>
    %10 = arith.addf %5, %9 : vector<128x512xf32>
    %cst_6 = arith.constant 5.000000e-01 : f32
    %11 = vector.broadcast %cst_6 : f32 to vector<128x512xf32>
    %12 = arith.mulf %11, %10 : vector<128x512xf32>
    %cst_7 = arith.constant 0.707106769 : f32
    %13 = vector.broadcast %cst_7 : f32 to vector<128x512xf32>
    %14 = arith.mulf %10, %13 : vector<128x512xf32>
    %15 = math.absf %14 : vector<128x512xf32>
    %cst_8 = arith.constant 0.327591091 : f32
    %16 = vector.broadcast %cst_8 : f32 to vector<128x512xf32>
    %17 = arith.mulf %16, %15 : vector<128x512xf32>
    %cst_9 = arith.constant 1.000000e+00 : f32
    %18 = vector.broadcast %cst_9 : f32 to vector<128x512xf32>
    %19 = arith.addf %18, %17 : vector<128x512xf32>
    %20 = tpu.reciprocal %19 {approx = true} : vector<128x512xf32> -> vector<128x512xf32>
    %cst_10 = arith.constant 1.06140542 : f32
    %21 = vector.broadcast %cst_10 : f32 to vector<128x512xf32>
    %22 = arith.mulf %21, %20 : vector<128x512xf32>
    %cst_11 = arith.constant -1.45315206 : f32
    %23 = vector.broadcast %cst_11 : f32 to vector<128x512xf32>
    %24 = arith.addf %22, %23 : vector<128x512xf32>
    %25 = arith.mulf %24, %20 : vector<128x512xf32>
    %cst_12 = arith.constant 1.42141378 : f32
    %26 = vector.broadcast %cst_12 : f32 to vector<128x512xf32>
    %27 = arith.addf %25, %26 : vector<128x512xf32>
    %28 = arith.mulf %27, %20 : vector<128x512xf32>
    %cst_13 = arith.constant -0.284496725 : f32
    %29 = vector.broadcast %cst_13 : f32 to vector<128x512xf32>
    %30 = arith.addf %28, %29 : vector<128x512xf32>
    %31 = arith.mulf %30, %20 : vector<128x512xf32>
    %cst_14 = arith.constant 0.254829586 : f32
    %32 = vector.broadcast %cst_14 : f32 to vector<128x512xf32>
    %33 = arith.addf %31, %32 : vector<128x512xf32>
    %34 = arith.mulf %33, %20 : vector<128x512xf32>
    %cst_15 = arith.constant 0.000000e+00 : f32
    %35 = vector.broadcast %cst_15 : f32 to vector<128x512xf32>
    %36 = arith.subf %35, %15 : vector<128x512xf32>
    %37 = arith.mulf %36, %15 : vector<128x512xf32>
    %38 = math.exp %37 : vector<128x512xf32>
    %39 = arith.mulf %34, %38 : vector<128x512xf32>
    %cst_16 = arith.constant 1.000000e+00 : f32
    %40 = vector.broadcast %cst_16 : f32 to vector<128x512xf32>
    %41 = arith.subf %40, %39 : vector<128x512xf32>
    %cst_17 = arith.constant 0.000000e+00 : f32
    %42 = vector.broadcast %cst_17 : f32 to vector<128x512xf32>
    %43 = arith.cmpf oge, %14, %42 : vector<128x512xf32>
    %cst_18 = arith.constant 0.000000e+00 : f32
    %44 = vector.broadcast %cst_18 : f32 to vector<128x512xf32>
    %45 = arith.subf %44, %41 : vector<128x512xf32>
    %46 = arith.select %43, %41, %45 : vector<128x512xi1>, vector<128x512xf32>
    %cst_19 = arith.constant 1.000000e+00 : f32
    %47 = vector.broadcast %cst_19 : f32 to vector<128x512xf32>
    %48 = arith.addf %47, %46 : vector<128x512xf32>
    %49 = arith.mulf %12, %48 : vector<128x512xf32>
    %c0_20 = arith.constant 0 : index
    %c0_21 = arith.constant 0 : index
    %50 = vector.load %arg10[%c0_20, %c0_21] : memref<128x128xf32, #tpu.memory_space<vmem>>, vector<128x128xf32>
    %51 = arith.truncf %49 : vector<128x512xf32> to vector<128x512xbf16>
    %c0_22 = arith.constant 0 : index
    %c0_23 = arith.constant 0 : index
    %52 = vector.load %arg6[%c0_22, %c0_23] : memref<512x128xbf16, #tpu.memory_space<vmem>>, vector<512x128xbf16>
    %cst_24 = arith.constant dense<0.000000e+00> : vector<128x128xf32>
    %53 = tpu.matmul %51, %52, %cst_24 {dimension_numbers = #tpu.dot_dimension_numbers<[1], [0], [0], [1], [0, 0, 1, 1], [], []>} : vector<128x512xbf16>, vector<512x128xbf16>, vector<128x128xf32> -> vector<128x128xf32>
    %54 = arith.addf %50, %53 : vector<128x128xf32>
    %c0_25 = arith.constant 0 : index
    %c0_26 = arith.constant 0 : index
    %55 = vector.load %arg10[%c0_25, %c0_26] : memref<128x128xf32, #tpu.memory_space<vmem>>, vector<128x128xf32>
    tpu.vector_store %arg10[%c0_25, %c0_26], %54 {strides = array<i32>} : memref<128x128xf32, #tpu.memory_space<vmem>>, vector<128x128xf32>,
    %c0_i32_27 = arith.constant 0 : i32
    %56 = arith.cmpi eq, %arg1, %c0_i32_27 : i32
    %57 = arith.extui %56 : i1 to i32
    %c0_i32_28 = arith.constant 0 : i32
    %58 = arith.cmpi ne, %57, %c0_i32_28 : i32
    scf.if %58 {
      %c0_29 = arith.constant 0 : index
      %c0_30 = arith.constant 0 : index
      %59 = vector.load %arg10[%c0_29, %c0_30] : memref<128x128xf32, #tpu.memory_space<vmem>>, vector<128x128xf32>
      %c0_31 = arith.constant 0 : index
      %c0_32 = arith.constant 0 : index
      %60 = vector.load %arg7[%c0_31, %c0_32] : memref<1x128xf32, #tpu.memory_space<vmem>>, vector<1x128xf32>
      %61 = vector.shape_cast %60 : vector<1x128xf32> to vector<128xf32>
      %62 = vector.shape_cast %61 : vector<128xf32> to vector<1x128xf32>
      %63 = vector.broadcast %62 : vector<1x128xf32> to vector<128x128xf32>
      %64 = arith.addf %59, %63 : vector<128x128xf32>
      %c0_33 = arith.constant 0 : index
      %c0_34 = arith.constant 0 : index
      %65 = vector.load %arg8[%c0_33, %c0_34] : memref<128x128xf32, #tpu.memory_space<vmem>>, vector<128x128xf32>
      tpu.vector_store %arg8[%c0_33, %c0_34], %64 {strides = array<i32>} : memref<128x128xf32, #tpu.memory_space<vmem>>, vector<128x128xf32>,
    } else {
    }
    return
  }
  func.func @transform_0(%arg0: i32, %arg1: i32) -> (i32, i32) {
    %c0_i32 = arith.constant 0 : i32
    %c0_i32_0 = arith.constant 0 : i32
    return %arg0, %c0_i32 : i32, i32
  }
  func.func @transform_1(%arg0: i32, %arg1: i32) -> (i32, i32) {
    %c0_i32 = arith.constant 0 : i32
    %c0_i32_0 = arith.constant 0 : i32
    %c0_i32_1 = arith.constant 0 : i32
    return %c0_i32, %c0_i32_0 : i32, i32
  }
  func.func @transform_2(%arg0: i32, %arg1: i32) -> (i32, i32) {
    %c0_i32 = arith.constant 0 : i32
    %c0_i32_0 = arith.constant 0 : i32
    return %c0_i32, %arg1 : i32, i32
  }
  func.func @transform_3(%arg0: i32, %arg1: i32) -> (i32, i32) {
    %c0_i32 = arith.constant 0 : i32
    %c0_i32_0 = arith.constant 0 : i32
    return %c0_i32, %arg1 : i32, i32
  }
  func.func @transform_4(%arg0: i32, %arg1: i32) -> (i32, i32) {
    %c0_i32 = arith.constant 0 : i32
    %c0_i32_0 = arith.constant 0 : i32
    return %arg1, %c0_i32 : i32, i32
  }
  func.func @transform_5(%arg0: i32, %arg1: i32) -> (i32, i32) {
    %c0_i32 = arith.constant 0 : i32
    %c0_i32_0 = arith.constant 0 : i32
    %c0_i32_1 = arith.constant 0 : i32
    return %c0_i32, %c0_i32_0 : i32, i32
  }
  func.func @transform_6(%arg0: i32, %arg1: i32) -> (i32, i32) {
    %c0_i32 = arith.constant 0 : i32
    %c0_i32_0 = arith.constant 0 : i32
    return %arg0, %c0_i32 : i32, i32
  }
}

</mosaic_0001>

<bundles_post_ra>
// kernel: tpu_custom_call.1
= control target key start
LH: loop header
LB: loop body
LE: loop exit
PB: predicated region body
PF: predicated region fallthrough
CT: control target
= control target key end

     0   :  { %s6738_s0 = inlined_call_operand.hbm [shape: f32[256,128], index: 0, kind: input, shape index: {}]   ;;  %s6739_s1 = inlined_call_operand.vmem [shape: f32[1,128], index: 1, kind: input, shape index: {}]   ;;  %s6740_s2 = inlined_call_operand.hbm [shape: bf16[128,512], index: 2, kind: input, shape index: {}]   ;;  %s6741_s3 = inlined_call_operand.vmem [shape: f32[1,512], index: 3, kind: input, shape index: {}]   ;;  %s6742_s4 = inlined_call_operand.hbm [shape: bf16[512,128], index: 4, kind: input, shape index: {}]   ;;  %s6743_s5 = inlined_call_operand.vmem [shape: f32[1,128], index: 5, kind: input, shape index: {}]   ;;  %s6744_s6 = inlined_call_operand.hbm [shape: f32[256,128], index: 6, kind: output, shape index: {}]  }
   0x1   :  { %6833 = sst [smem:[#allocation74_spill]] %s6740_s2 }
   0x2   :  { %6834 = sst [smem:[#allocation75_spill]] %s6742_s4 }
   0x3   :  { %11 = vsyncpa [#allocation5], 0 }
   0x4   :  { %13 = vsyncpa [#allocation5 + $0x1], 0 }
   0x5   :  { %14 = vsyncpa [#allocation8], 0 }
   0x6   :  { %15 = vsyncpa [#allocation6], 0 }
   0x7   :  { %17 = vsyncpa [#allocation6 + $0x1], 0  ;;  %s4457_s21 = smov 0   ;;  %s4459_s22 = smov 0  }
   0x8   :  { %s4461_s23 = smov 0   ;;  %s4463_s24 = smov 0  }
   0x9   :  { %s4465_s25 = smov 0   ;;  %s4467_s26 = smov 0  }
   0xa LB: > { %s3472_s27 = sadd.s32 4294967295, %s4407_s26   ;;  %s3473_s28 = sadd.s32 4294967294, %s4407_s26   ;;  %s4407_s26 = sphi %s4467_s26, %s23_s26   ;;  %s4403_s25 = sphi %s4465_s25, %s7080_s25   ;;  %s4399_s24 = sphi %s4463_s24, %s7079_s24   ;;  %s4395_s23 = sphi %s4461_s23, %s7078_s23   ;;  %s4391_s22 = sphi %s4459_s22, %s7077_s22   ;;  %s4387_s21 = sphi %s4457_s21, %s7076_s21  }
   0xb   : > { %p55_p0 = scmp.ne.s32.totalorder %s4391_s22, %s4387_s21  ;;  %p4491_p1 = scmp.eq.s32.totalorder %s3472_s27, 0 }
   0xc   : > { %p4495_p2 = scmp.eq.s32.totalorder %s3472_s27, 1  ;;  %p205_p3 = scmp.eq.s32.totalorder %s3473_s28, 1 }
   0xd   : > { %s6835_s29 = scalar_select %p4491_p1, 1, 0 }
   0xe   : > { %p4501_p4 = por %p4491_p1, %p55_p0  ;;  %p3474_p5 = scmp.ge.s32.totalorder %s4407_s26, 1 }
   0xf   : > { %p4506_p6 = por %p205_p3, %p55_p0  ;;  %p212_p7 = scmp.lt.s32.totalorder %s4407_s26, 3 }
  0x10   : > { %s6837_s7 = scalar_select %p4501_p4, 1, 0 }
  0x11   : > { %s6838_s8 = scalar_select %p4506_p6, 1, 0 }
  0x12   : > { %p4511_p8 = pnand %p3474_p5, %p212_p7  ;;  %s4409_s10 = smov [#allocation7]  }
  0x13   : > { %s230_s11 = sshll.u32 %s4409_s10, 4  ;;  %s4410_s13 = smov [#allocation9]   ;;  %s231_s11 = int_to_ptr.vmem [resolvable:$true] %s230_s11 }
  0x14   : > { %p3787_p9 = pneg %p4511_p8  ;;  %s254_s14 = sshll.u32 %s4410_s13, 4  ;;  %s255_s14 = int_to_ptr.vmem [resolvable:$true] %s254_s14 }
  0x15   : > { %s4254_s15 = scalar_lea.vmem %s231_s11, 4096  ;;  %p4262_p5 = scmp.lt.s32.totalorder %s231_s11, %s231_s11 }
  0x16   : > { %p4520_p11 = pnand %p3787_p9, %p4491_p1  ;;  %p4255_p13 = scmp.ne.s32.totalorder %s231_s11, %s4254_s15 }
  0x17   : > { %p4263_p7 = scmp.lt.s32.totalorder %s4254_s15, %s4254_s15 }
  0x18   : > { %p4245_p12 = pneg %p4520_p11 }
  0x19   : > { %p4264_p10 = por %p4263_p7, %p4262_p5 }
  0x1a   : > { %p4257_p0 = pnand %p4255_p13, %p4245_p12 }
  0x1c   : > { %p4258_p3 = pneg %p4257_p0 }
  0x1e   : > { %p4265_p9 = pnand %p4264_p10, %p4258_p3 }
  0x20   : > { %4268 = shalt.err (!%p4265_p9)
}
  0x21   : > { %s4411_s16 = smov 256   ;;  %s4412_s17 = smov 16  }
  0x22   : > { %s6841_s2 = sld [smem:[#allocation74_spill]]  ;;  %s4280_s20 = scalar_lea.vmem %s255_s14, 4096 }
  0x23   : > { %p4281_p6 = scmp.ne.s32.totalorder %s255_s14, %s4280_s20  ;;  %p4288_p1 = scmp.lt.s32.totalorder %s255_s14, %s255_s14 }
  0x24   : > { %p4289_p4 = scmp.lt.s32.totalorder %s4280_s20, %s4280_s20 }
  0x25   : > { %p4283_p13 = pnand %p4281_p6, %p4245_p12 }
  0x26   : > { %p4290_p5 = por %p4289_p4, %p4288_p1 }
  0x27   : > { %p4284_p0 = pneg %p4283_p13 }
  0x28   : > { %3790 = dma.hbm_to_vmem [thread:$0]  (!%p4520_p11), %s6841_s2, 4096, %s231_s11, [#allocation8], %s4411_s16, %s4411_s16, %s4412_s17  }
  0x29   : > { %p4291_p10 = pnand %p4290_p5, %p4284_p0 }
  0x2b   : > { %4294 = shalt.err (!%p4291_p10)
}
  0x2c   : > { %s4413_s27 = smov 64   ;;  %s4414_s28 = smov 4  }
  0x2d   : > { %s6842_s4 = sld [smem:[#allocation75_spill]]  ;;  %s35_s13 = sadd.s32 1, %s4403_s25 }
  0x2e   : > { %s42_s15 = sadd.s32 1, %s4395_s23  ;;  %p37_p1 = scmp.ge.s32.totalorder %s35_s13, 2 }
  0x2f   : > { %p49_p4 = scmp.ne.s32.totalorder %s4395_s23, %s4391_s22  ;;  %p50_p6 = scmp.eq.s32.totalorder %s4407_s26, 0 }
  0x30   : > { %p3804_p12 = scmp.lt.s32.totalorder %s4407_s26, 2  ;;  %s7082_s13 = smov (%p37_p1, %s35_s13), 0 }
  0x31   : > { %p51_p3 = por %p50_p6, %p49_p4  ;;  %p4552_p7 = por %p4495_p2, %p49_p4 }
  0x32   : > { %s39_s12 = ssub.s32 %s4403_s25, %s7082_s13  ;;  %s271_s17 = sand.u32 1, %s4395_s23  }
  0x33   : > { %3793 = dma.hbm_to_vmem [thread:$0]  (!%p4520_p11), %s6842_s4, 4096, %s255_s14, [#allocation8], %s4413_s27, %s4413_s27, %s4414_s28  }
  0x34   : > { %p40_p9 = scmp.eq.s32.totalorder %s39_s12, 0  ;;  %s3479_s14 = sshll.u32 %s271_s17, 7 }
  0x35   : > { %s3582_s18 = sshll.u32 %s4403_s25, 11  ;;  %s275_s10 = scalar_lea.vmem [#allocation4], %s3479_s14 }
  0x36   : > { %s4561_s19 = scalar_select %p40_p9, %s4395_s23, %s42_s15  }
  0x37   : > { %s281_s28 = scalar_lea.hbm %s6738_s0, %s3582_s18  ;;  %s282_s11 = sshll.u32 %s275_s10, 4  ;;  %s283_s11 = int_to_ptr.vmem [resolvable:$true] %s282_s11 }
  0x38   : > { %p4568_p11 = pnand %p3804_p12, %p51_p3  ;;  %s272_s2 = scalar_lea.sflag [#allocation5], %s271_s17 }
  0x39   : > { %s4308_s12 = scalar_lea.vmem %s283_s11, 2048  ;;  %s4415_s15 = smov [#allocation4]  }
  0x3a   : > { %p4297_p2 = pneg %p4568_p11  ;;  %p4309_p13 = scmp.ne.s32.totalorder %s283_s11, %s4308_s12 }
  0x3b   : > { %s4313_s4 = sshll.u32 %s4415_s15, 4  ;;  %s4314_s4 = int_to_ptr.vmem [resolvable:$false] %s4313_s4 }
  0x3c   : > { %p4311_p0 = pnand %p4309_p13, %p4297_p2  ;;  %s4315_s18 = scalar_lea.vmem %s4314_s4, 4096 }
  0x3d   : > { %p4316_p10 = scmp.lt.s32.totalorder %s283_s11, %s4314_s4  ;;  %p4317_p1 = scmp.lt.s32.totalorder %s4315_s18, %s4308_s12 }
  0x3e   : > { %p4312_p5 = pneg %p4311_p0 }
  0x3f   : > { %p4318_p4 = por %p4317_p1, %p4316_p10 }
  0x41   : > { %p4319_p6 = pnand %p4318_p4, %p4312_p5 }
  0x43   : > { %4322 = shalt.err (!%p4319_p6)
}
  0x44   : > { %s4416_s14 = smov 128   ;;  %s4417_s20 = smov 8  }
  0x45   : > { %3797 = dma.hbm_to_vmem [thread:$0]  (!%p4568_p11), %s281_s28, 2048, %s283_s11, %s272_s2, %s4416_s14, %s4416_s14, %s4417_s20  }
  0x46   : > { %294 = sbr.rel (%p4511_p8) target bundleno = 1123 (0x463), region = 44 }
  0x4b   : > { %s4579_s17 = sand.u32 1, %s4391_s22   ;;  %p6845_p12 = scmp.ne.s32.totalorder %s6837_s7, 0 }
  0x4c   : > { %s3483_s4 = sshll.u32 %s4579_s17, 7  ;;  %s297_s27 = scalar_lea.sflag [#allocation5], %s4579_s17 }
  0x4d   : > { %s4585_s10 = scalar_lea.vmem [#allocation4], %s3483_s4 }
  0x4e   : > { %4374 = dma.done.wait (%p6845_p12), %s297_s27, 2048  }
  0x4f   : > { %4376 = vsyncadd (%p6845_p12), %s297_s27, 4294965248  ;;  %p6846_p3 = scmp.ne.s32.totalorder %s6835_s29, 0 }
  0x51   : > { %4378 = dma.done.wait (%p6846_p3), [#allocation8], 8192  }
  0x52   : > { %4380 = vsyncadd (%p6846_p3), [#allocation8], 4294959104  ;;  %v4596_v0 = vld [vmem:[%s4585_s10] sm:$0xff]  ;;  %v4599_v1 = vld [vmem:[%s4585_s10 + $0x10] sm:$0xff]  ;;  %s6650_s30 = scalar_lea.vmem [#allocation10], %s3483_s4  ;;  %s3599_s12 = sshll.u32 %s4399_s24, 11 }
  0x53   : > { %v4602_v2 = vld [vmem:[%s4585_s10 + $0x8] sm:$0xff]  ;;  %v371_v3 = vmul.f32 %v4596_v0, %v4596_v0  ;;  %v373_v4 = vmul.f32 %v4599_v1, %v4599_v1  ;;  %v4609_v5 = vld [vmem:[%s4585_s10 + $0x18] sm:$0xff]  ;;  %v4619_v9 = vld [vmem:[%s4585_s10 + $0x20] sm:$0xff]  ;;  %s3356_s15 = sshll.u32 %s6650_s30, 4  ;;  %s6686_s20 = scalar_lea.hbm %s6744_s6, %s3599_s12  ;;  %s6688_s15 = int_to_ptr.vmem [resolvable:$true] %s3356_s15 }
  0x54   : > { %v372_v6 = vmul.f32 %v4602_v2, %v4602_v2  ;;  %v374_v7 = vmul.f32 %v4609_v5, %v4609_v5  ;;  %v4616_v8 = vld [vmem:[%s4585_s10 + $0x28] sm:$0xff]  ;;  %v4622_v10 = vld [vmem:[%s4585_s10 + $0x38] sm:$0xff]  ;;  %v4625_v11 = vld [vmem:[%s4585_s10 + $0x30] sm:$0xff]  ;;  %v375_v13 = vmul.f32 %v4619_v9, %v4619_v9  ;;  %s3343_s4 = scalar_lea.sflag [#allocation6], %s4579_s17  ;;  %s4323_s27 = scalar_lea.vmem %s6688_s15, 2048 }
  0x55   : > { %387 = vadd.xlane.f32.xlu0 %v371_v3  ;;  %391 = vadd.xlane.f32.xlu1 %v373_v4  ;;  %v376_v12 = vmul.f32 %v4616_v8, %v4616_v8  ;;  %v4632_v14 = vld [vmem:[%s4585_s10 + $0x48] sm:$0xff]  ;;  %v4635_v15 = vld [vmem:[%s4585_s10 + $0x40] sm:$0xff]  ;;  %v378_v16 = vmul.f32 %v4622_v10, %v4622_v10  ;;  %v377_v17 = vmul.f32 %v4625_v11, %v4625_v11  ;;  %v4642_v18 = vld [vmem:[%s4585_s10 + $0x58] sm:$0xff]  ;;  %v4418_v3 = vmov 0   ;;  %p4324_p8 = scmp.ne.s32.totalorder %s6688_s15, %s4323_s27  ;;  %s4419_s24 = smov [#allocation10]  }
  0x56   : > { %v4645_v19 = vld [vmem:[%s4585_s10 + $0x50] sm:$0xff]  ;;  %v3869_v21 = vld [vmem:[#allocation7 + $0xec] ss:$16 sps:$4 sm:$0xff]   ;;  %v380_v22 = vmul.f32 %v4632_v14, %v4632_v14  ;;  %v379_v23 = vmul.f32 %v4635_v15, %v4635_v15  ;;  %v3872_v25 = vld [vmem:[#allocation7 + $0xe8] ss:$16 sps:$4 sm:$0xff]   ;;  %v382_v30 = vmul.f32 %v4642_v18, %v4642_v18  ;;  %896 = vmatprep.mubr.bf16.mxu0 %v4418_v3  ;;  %1009 = vmatprep.mubr.bf16.mxu1 %v4418_v3 }
  0x57   : > { %v3867_v20 = vld [vmem:[#allocation7 + $0xe4] ss:$16 sps:$4 sm:$0xff]   ;;  %v3871_v24 = vld [vmem:[#allocation7 + $0xe0] ss:$16 sps:$4 sm:$0xff]   ;;  %977 = vmatprep.subr.bf16.mxu1 %v3869_v21  ;;  %v4652_v26 = vld [vmem:[%s4585_s10 + $0x68] sm:$0xff]  ;;  %v381_v31 = vmul.f32 %v4645_v19, %v4645_v19  ;;  %p4325_p9 = pnand %p4324_p8, %p4552_p7 }
  0x58   : > { %864 = vmatprep.subr.bf16.mxu0 %v3867_v20  ;;  %978 = vmatpush1.bf16.msra.mxu1 %v3872_v25  ;;  %v4655_v27 = vld [vmem:[%s4585_s10 + $0x60] sm:$0xff]  ;;  %v3875_v29 = vld [vmem:[#allocation7 + $0xcc] ss:$16 sps:$4 sm:$0xff]   ;;  %v3878_v33 = vld [vmem:[#allocation7 + $0xc8] ss:$16 sps:$4 sm:$0xff]   ;;  %v384_v38 = vmul.f32 %v4652_v26, %v4652_v26 }
  0x59   : > { %389 = vadd.xlane.f32.xlu0 %v372_v6  ;;  %393 = vadd.xlane.f32.xlu1 %v374_v7  ;;  %v3873_v28 = vld [vmem:[#allocation7 + $0xc4] ss:$16 sps:$4 sm:$0xff]   ;;  %v3877_v32 = vld [vmem:[#allocation7 + $0xc0] ss:$16 sps:$4 sm:$0xff]   ;;  %v4662_v34 = vld [vmem:[%s4585_s10 + $0x78] sm:$0xff]  ;;  %v383_v39 = vmul.f32 %v4655_v27, %v4655_v27  ;;  %p4326_p11 = pneg %p4325_p9 }
  0x5a   : > { %865 = vmatpush1.bf16.msra.mxu0 %v3871_v24  ;;  %979 = vmatprep.subr.bf16.mxu1 %v3875_v29  ;;  %v4665_v35 = vld [vmem:[%s4585_s10 + $0x70] sm:$0xff]  ;;  %v3881_v37 = vld [vmem:[#allocation7 + $0xac] ss:$16 sps:$4 sm:$0xff]   ;;  %v3884_v41 = vld [vmem:[#allocation7 + $0xa8] ss:$16 sps:$4 sm:$0xff]   ;;  %v386_v44 = vmul.f32 %v4662_v34, %v4662_v34  ;;  %s4327_s10 = sshll.u32 %s4419_s24, 4  ;;  %s4328_s10 = int_to_ptr.vmem [resolvable:$false] %s4327_s10 }
  0x5b   : > { %866 = vmatprep.subr.bf16.mxu0 %v3873_v28  ;;  %v3879_v36 = vld [vmem:[#allocation7 + $0xa4] ss:$16 sps:$4 sm:$0xff]   ;;  %v3883_v40 = vld [vmem:[#allocation7 + $0xa0] ss:$16 sps:$4 sm:$0xff]   ;;  %v3887_v43 = vld [vmem:[#allocation7 + $0x8c] ss:$16 sps:$4 sm:$0xff]   ;;  %v385_v45 = vmul.f32 %v4665_v35, %v4665_v35  ;;  %p4330_p2 = scmp.lt.s32.totalorder %s6688_s15, %s4328_s10 }
  0x5c   : > { %980 = vmatpush1.bf16.msra.mxu1 %v3878_v33  ;;  %v3885_v42 = vld [vmem:[#allocation7 + $0x84] ss:$16 sps:$4 sm:$0xff]   ;;  %v3889_v46 = vld [vmem:[#allocation7 + $0x80] ss:$16 sps:$4 sm:$0xff]   ;;  %v3890_v47 = vld [vmem:[#allocation7 + $0x88] ss:$16 sps:$4 sm:$0xff]  }
  0x5d   : > { %397 = vadd.xlane.f32.xlu1 %v376_v12  ;;  %395 = vadd.xlane.f32.xlu0 %v375_v13  ;;  %v3891_v48 = vld [vmem:[#allocation7 + $0x64] ss:$16 sps:$4 sm:$0xff]   ;;  %v3893_v49 = vld [vmem:[#allocation7 + $0x6c] ss:$16 sps:$4 sm:$0xff]   ;;  %v3895_v50 = vld [vmem:[#allocation7 + $0x60] ss:$16 sps:$4 sm:$0xff]  }
  0x5e   : > { %867 = vmatpush1.bf16.msra.mxu0 %v3877_v32  ;;  %981 = vmatprep.subr.bf16.mxu1 %v3881_v37  ;;  %v3896_v51 = vld [vmem:[#allocation7 + $0x68] ss:$16 sps:$4 sm:$0xff]   ;;  %v3897_v52 = vld [vmem:[#allocation7 + $0x44] ss:$16 sps:$4 sm:$0xff]   ;;  %v3899_v53 = vld [vmem:[#allocation7 + $0x4c] ss:$16 sps:$4 sm:$0xff]  }
  0x5f   : > { %868 = vmatprep.subr.bf16.mxu0 %v3879_v36  ;;  %v3901_v54 = vld [vmem:[#allocation7 + $0x40] ss:$16 sps:$4 sm:$0xff]   ;;  %v3902_v55 = vld [vmem:[#allocation7 + $0x48] ss:$16 sps:$4 sm:$0xff]   ;;  %v3903_v56 = vld [vmem:[#allocation7 + $0x24] ss:$16 sps:$4 sm:$0xff]  }
  0x60   : > { %982 = vmatpush1.bf16.msra.mxu1 %v3884_v41  ;;  %v3905_v57 = vld [vmem:[#allocation7 + $0x2c] ss:$16 sps:$4 sm:$0xff]   ;;  %v3907_v58 = vld [vmem:[#allocation7 + $0x20] ss:$16 sps:$4 sm:$0xff]   ;;  %v3908_v59 = vld [vmem:[#allocation7 + $0x28] ss:$16 sps:$4 sm:$0xff]  }
  0x61   : > { %401 = vadd.xlane.f32.xlu1 %v378_v16  ;;  %399 = vadd.xlane.f32.xlu0 %v377_v17  ;;  %v3909_v60 = vld [vmem:[#allocation7 + $0x4] ss:$16 sps:$4 sm:$0xff]   ;;  %v3911_v61 = vld [vmem:[#allocation7 + $0xc] ss:$16 sps:$4 sm:$0xff]   ;;  %v3913_v62 = vld [vmem:[#allocation7] ss:$16 sps:$4 sm:$0xff]  }
  0x62   : > { %869 = vmatpush1.bf16.msra.mxu0 %v3883_v40  ;;  %983 = vmatprep.subr.bf16.mxu1 %v3887_v43  ;;  %v3914_v63 = vld [vmem:[#allocation7 + $0x8] ss:$16 sps:$4 sm:$0xff]   ;;  %s4329_s2 = scalar_lea.vmem %s4328_s10, 4096 }
  0x63   : > { %870 = vmatprep.subr.bf16.mxu0 %v3885_v42  ;;  %v3923_v4 = vld [vmem:[#allocation9 + $0x78] sm:$0xff]   ;;  %p4331_p13 = scmp.lt.s32.totalorder %s4329_s2, %s4323_s27 }
  0x64   : > { %984 = vmatpush1.bf16.msra.mxu1 %v3890_v47  ;;  %v3924_v6 = vld [vmem:[#allocation9 + $0xf8] sm:$0xff]  }
  0x65   : > { %405 = vadd.xlane.f32.xlu1 %v380_v22  ;;  %403 = vadd.xlane.f32.xlu0 %v379_v23  ;;  %p4332_p0 = por %p4331_p13, %p4330_p2 }
  0x66   : > { %871 = vmatpush1.bf16.msra.mxu0 %v3889_v46  ;;  %985 = vmatprep.subr.bf16.mxu1 %v3893_v49 }
  0x67   : > { %872 = vmatprep.subr.bf16.mxu0 %v3891_v48  ;;  %p4333_p5 = pnand %p4332_p0, %p4326_p11 }
  0x68   : > { %986 = vmatpush1.bf16.msra.mxu1 %v3896_v51 }
  0x69   : > { %409 = vadd.xlane.f32.xlu1 %v382_v30  ;;  %407 = vadd.xlane.f32.xlu0 %v381_v31 }
  0x6a   : > { %873 = vmatpush1.bf16.msra.mxu0 %v3895_v50  ;;  %987 = vmatprep.subr.bf16.mxu1 %v3899_v53 }
  0x6b   : > { %874 = vmatprep.subr.bf16.mxu0 %v3897_v52 }
  0x6c   : > { %988 = vmatpush1.bf16.msra.mxu1 %v3902_v55 }
  0x6d   : > { %413 = vadd.xlane.f32.xlu1 %v384_v38  ;;  %411 = vadd.xlane.f32.xlu0 %v383_v39 }
  0x6e   : > { %875 = vmatpush1.bf16.msra.mxu0 %v3901_v54  ;;  %989 = vmatprep.subr.bf16.mxu1 %v3905_v57 }
  0x6f   : > { %876 = vmatprep.subr.bf16.mxu0 %v3903_v56 }
  0x70   : > { %990 = vmatpush1.bf16.msra.mxu1 %v3908_v59 }
  0x71   : > { %417 = vadd.xlane.f32.xlu1 %v386_v44  ;;  %415 = vadd.xlane.f32.xlu0 %v385_v45  ;;  %v4682_v44 = vld [vmem:[%s6739_s1] ss:$0 sm:$0xff] }
  0x72   : > { %877 = vmatpush1.bf16.msra.mxu0 %v3907_v58  ;;  %991 = vmatprep.subr.bf16.mxu1 %v3911_v61 }
  0x73   : > { %878 = vmatprep.subr.bf16.mxu0 %v3909_v60 }
  0x74   : > { %992 = vmatpush1.bf16.msra.mxu1 %v3914_v63 }
  0x75   : > { %3711 = vmatprep.subr.bf16.mxu1 %v3924_v6 }
  0x76   : > { %879 = vmatpush1.bf16.msra.mxu0 %v3913_v62 }
  0x77   : > { %3647 = vmatprep.subr.bf16.mxu0 %v3923_v4 }
  0xde   : > { %v388_v7 = vpop.xlane.xlu0 %387  ;;  %v392_v12 = vpop.xlane.xlu1 %391 }
  0xdf   : > { %v419_v13 = vadd.f32 1e-24, %v388_v7  ;;  %v421_v16 = vadd.f32 1e-24, %v392_v12 }
  0xe1   : > { %3955 = vrsqrt.f32 %v419_v13 }
  0xe2   : > { %3957 = vrsqrt.f32 %v421_v16  ;;  %v390_v17 = vpop.xlane.xlu0 %389  ;;  %v394_v20 = vpop.xlane.xlu1 %393 }
  0xe3   : > { %v420_v21 = vadd.f32 1e-24, %v390_v17  ;;  %v422_v22 = vadd.f32 1e-24, %v394_v20 }
  0xe5   : > { %3959 = vrsqrt.f32 %v420_v21 }
  0xe6   : > { %3961 = vrsqrt.f32 %v422_v22  ;;  %v398_v23 = vpop.xlane.xlu1 %397  ;;  %v396_v24 = vpop.xlane.xlu0 %395 }
  0xe7   : > { %v424_v25 = vadd.f32 1e-24, %v398_v23  ;;  %v423_v28 = vadd.f32 1e-24, %v396_v24 }
  0xe9   : > { %3963 = vrsqrt.f32 %v424_v25  ;;  %v3925_v25 = vld [vmem:[#allocation9 + $0x38] sm:$0xff]  }
  0xea   : > { %3965 = vrsqrt.f32 %v423_v28  ;;  %v402_v29 = vpop.xlane.xlu1 %401  ;;  %v400_v30 = vpop.xlane.xlu0 %399  ;;  %v3926_v28 = vld [vmem:[#allocation9 + $0xb8] sm:$0xff]  }
  0xeb   : > { %v426_v31 = vadd.f32 1e-24, %v402_v29  ;;  %v425_v32 = vadd.f32 1e-24, %v400_v30 }
  0xed   : > { %3967 = vrsqrt.f32 %v426_v31 }
  0xee   : > { %v3956_v33 = vpop.eup %3955  ;;  %3969 = vrsqrt.f32 %v425_v32  ;;  %v406_v36 = vpop.xlane.xlu1 %405 }
  0xef   : > { %v404_v37 = vpop.xlane.xlu0 %403  ;;  %v3958_v38 = vpop.eup %3957  ;;  %v428_v39 = vadd.f32 1e-24, %v406_v36  ;;  %v451_v42 = vmul.f32 %v3956_v33, %v4596_v0 }
  0xf0   : > { %v427_v40 = vadd.f32 1e-24, %v404_v37  ;;  %v453_v41 = vmul.f32 %v3958_v38, %v4599_v1 }
  0xf1   : > { %3971 = vrsqrt.f32 %v428_v39  ;;  %v474_v0 = vmul.f32 %v4682_v44, %v451_v42 }
  0xf2   : > { %v3960_v43 = vpop.eup %3959  ;;  %3973 = vrsqrt.f32 %v427_v40  ;;  %v410_v45 = vpop.xlane.xlu1 %409  ;;  %v476_v51 = vmul.f32 %v4682_v44, %v453_v41 }
  0xf3   : > { %v408_v46 = vpop.xlane.xlu0 %407  ;;  %v3962_v47 = vpop.eup %3961  ;;  %v452_v48 = vmul.f32 %v3960_v43, %v4602_v2  ;;  %v430_v49 = vadd.f32 1e-24, %v410_v45 }
  0xf4   : > { %v429_v50 = vadd.f32 1e-24, %v408_v46  ;;  %v454_v1 = vmul.f32 %v3962_v47, %v4609_v5 }
  0xf5   : > { %v475_v52 = vmul.f32 %v4682_v44, %v452_v48  ;;  %3975 = vrsqrt.f32 %v430_v49 }
  0xf6   : > { %v3964_v53 = vpop.eup %3963  ;;  %v477_v54 = vmul.f32 %v4682_v44, %v454_v1  ;;  %3977 = vrsqrt.f32 %v429_v50  ;;  %v414_v55 = vpop.xlane.xlu1 %413 }
  0xf7   : > { %v412_v56 = vpop.xlane.xlu0 %411  ;;  %v3966_v57 = vpop.eup %3965  ;;  %v3603_v58 = vpack.c.bf16 %v475_v52, %v474_v0  ;;  %v456_v2 = vmul.f32 %v3964_v53, %v4616_v8  ;;  %v432_v59 = vadd.f32 1e-24, %v414_v55  ;;  %v3927_v53 = vld [vmem:[#allocation9 + $0x70] sm:$0xff]  }
  0xf8   : > { %v431_v60 = vadd.f32 1e-24, %v412_v56  ;;  %v3608_v61 = vpack.c.bf16 %v477_v54, %v476_v51  ;;  %v455_v5 = vmul.f32 %v3966_v57, %v4619_v9  ;;  %v3928_v54 = vld [vmem:[#allocation9 + $0xf0] sm:$0xff]   ;;  %v3931_v57 = vld [vmem:[#allocation9 + $0x68] sm:$0xff]  }
  0xf9   : > { %3604 = vst [vmem:[#allocation2] sm:$0xff] %v3603_v58   ;;  %v479_v62 = vmul.f32 %v4682_v44, %v456_v2  ;;  %3979 = vrsqrt.f32 %v432_v59  ;;  %v3929_v55 = vld [vmem:[#allocation9 + $0x30] sm:$0xff]   ;;  %v3932_v58 = vld [vmem:[#allocation9 + $0xe8] sm:$0xff]  }
  0xfa   : > { %v3968_v63 = vpop.eup %3967  ;;  %3640 = vst [vmem:[#allocation2 + $0x8] sm:$0xff] %v3608_v61   ;;  %v478_v4 = vmul.f32 %v4682_v44, %v455_v5  ;;  %3981 = vrsqrt.f32 %v431_v60  ;;  %v418_v6 = vpop.xlane.xlu1 %417  ;;  %v3930_v56 = vld [vmem:[#allocation9 + $0xb0] sm:$0xff]   ;;  %v3933_v2 = vld [vmem:[#allocation9 + $0x28] sm:$0xff]   ;;  %v634_v5 = vld [vmem:[%s6741_s3] sm:$0xf] }
  0xfb   : > { %v416_v7 = vpop.xlane.xlu0 %415  ;;  %v3970_v12 = vpop.eup %3969  ;;  %v458_v13 = vmul.f32 %v3968_v63, %v4622_v10  ;;  %v434_v8 = vadd.f32 1e-24, %v418_v6  ;;  %v3934_v59 = vld [vmem:[#allocation9 + $0xa8] sm:$0xff]  }
  0xfc   : > { %v433_v16 = vadd.f32 1e-24, %v416_v7  ;;  %v3613_v17 = vpack.c.bf16 %v479_v62, %v478_v4  ;;  %v457_v20 = vmul.f32 %v3970_v12, %v4625_v11 }
  0xfd   : > { %v481_v9 = vmul.f32 %v4682_v44, %v458_v13  ;;  %3983 = vrsqrt.f32 %v434_v8 }
  0xfe   : > { %v3972_v21 = vpop.eup %3971  ;;  %3641 = vst [vmem:[#allocation2 + $0x10] sm:$0xff] %v3613_v17   ;;  %v480_v22 = vmul.f32 %v4682_v44, %v457_v20  ;;  %3985 = vrsqrt.f32 %v433_v16 }
  0xff   : > { %v3974_v23 = vpop.eup %3973  ;;  %v460_v24 = vmul.f32 %v3972_v21, %v4632_v14 }
 0x100   : > { %v3618_v29 = vpack.c.bf16 %v481_v9, %v480_v22  ;;  %v459_v10 = vmul.f32 %v3974_v23, %v4635_v15  ;;  %v3915_v30 = vld [vmem:[#allocation2] sm:$0xff]  }
 0x101   : > { %v483_v31 = vmul.f32 %v4682_v44, %v460_v24  ;;  %897 = vmatmul.mubr.bf16.vlgmr.msra.gmra.mxu0 %v3915_v30  ;;  %1010 = vmatmul.mubr.bf16.vlgmr.msra.gmra.mxu1 %v3915_v30 }
 0x102   : > { %v3976_v11 = vpop.eup %3975  ;;  %3642 = vst [vmem:[#allocation2 + $0x18] sm:$0xff] %v3618_v29   ;;  %v482_v32 = vmul.f32 %v4682_v44, %v459_v10  ;;  %906 = vmatprep.mubr.bf16.mxu0 %v4418_v3  ;;  %1019 = vmatprep.mubr.bf16.mxu1 %v4418_v3 }
 0x103   : > { %v3978_v33 = vpop.eup %3977  ;;  %v462_v36 = vmul.f32 %v3976_v11, %v4642_v18  ;;  %3648 = vmatpush3.bf16.msra.mxu0 %v3925_v25  ;;  %3712 = vmatpush3.bf16.msra.mxu1 %v3926_v28  ;;  %v3916_v18 = vld [vmem:[#allocation2 + $0x8] sm:$0xff]  }
 0x104   : > { %v3623_v14 = vpack.c.bf16 %v483_v31, %v482_v32  ;;  %v461_v37 = vmul.f32 %v3978_v33, %v4645_v19  ;;  %3649 = vmatprep.subr.bf16.mxu0 %v3927_v53  ;;  %3713 = vmatprep.subr.bf16.mxu1 %v3928_v54  ;;  %v3937_v54 = vld [vmem:[#allocation9 + $0x20] sm:$0xff]  }
 0x105   : > { %v485_v15 = vmul.f32 %v4682_v44, %v462_v36  ;;  %v3917_v50 = vld [vmem:[#allocation2 + $0x10] sm:$0xff]  }
 0x106   : > { %v3980_v38 = vpop.eup %3979  ;;  %3643 = vst [vmem:[#allocation2 + $0x20] sm:$0xff] %v3623_v14   ;;  %v484_v39 = vmul.f32 %v4682_v44, %v461_v37 }
 0x107   : > { %v3982_v40 = vpop.eup %3981  ;;  %v464_v41 = vmul.f32 %v3980_v38, %v4652_v26  ;;  %3650 = vmatpush3.bf16.msra.mxu0 %v3929_v55  ;;  %3714 = vmatpush3.bf16.msra.mxu1 %v3930_v56  ;;  %v3938_v55 = vld [vmem:[#allocation9 + $0xa0] sm:$0xff]  }
 0x108   : > { %v3628_v42 = vpack.c.bf16 %v485_v15, %v484_v39  ;;  %v463_v43 = vmul.f32 %v3982_v40, %v4655_v27  ;;  %3651 = vmatprep.subr.bf16.mxu0 %v3931_v57  ;;  %3715 = vmatprep.subr.bf16.mxu1 %v3932_v58 }
 0x109   : > { %v487_v45 = vmul.f32 %v4682_v44, %v464_v41  ;;  %907 = vmatmul.mubr.bf16.gmra.mxu0 %v3916_v18  ;;  %1020 = vmatmul.mubr.bf16.gmra.mxu1 %v3916_v18  ;;  %v3918_v0 = vld [vmem:[#allocation2 + $0x18] sm:$0xff]  }
 0x10a   : > { %v3984_v46 = vpop.eup %3983  ;;  %3644 = vst [vmem:[#allocation2 + $0x28] sm:$0xff] %v3628_v42   ;;  %v486_v19 = vmul.f32 %v4682_v44, %v463_v43  ;;  %916 = vmatprep.mubr.bf16.mxu0 %v4418_v3  ;;  %1029 = vmatprep.mubr.bf16.mxu1 %v4418_v3 }
 0x10b   : > { %v3986_v47 = vpop.eup %3985  ;;  %v466_v48 = vmul.f32 %v3984_v46, %v4662_v34  ;;  %3652 = vmatpush3.bf16.msra.mxu0 %v3933_v2  ;;  %3716 = vmatpush3.bf16.msra.mxu1 %v3934_v59 }
 0x10c   : > { %v3633_v26 = vpack.c.bf16 %v487_v45, %v486_v19  ;;  %v465_v49 = vmul.f32 %v3986_v47, %v4665_v35 }
 0x10d   : > { %v489_v27 = vmul.f32 %v4682_v44, %v466_v48  ;;  %v3919_v34 = vld [vmem:[#allocation2 + $0x20] sm:$0xff]  }
 0x10e   : > { %3645 = vst [vmem:[#allocation2 + $0x30] sm:$0xff] %v3633_v26   ;;  %v488_v51 = vmul.f32 %v4682_v44, %v465_v49 }
 0x110   : > { %v3638_v1 = vpack.c.bf16 %v489_v27, %v488_v51 }
 0x111   : > { %917 = vmatmul.mubr.bf16.gmra.mxu0 %v3917_v50  ;;  %1030 = vmatmul.mubr.bf16.gmra.mxu1 %v3917_v50  ;;  %v3920_v35 = vld [vmem:[#allocation2 + $0x28] sm:$0xff]  }
 0x112   : > { %3646 = vst [vmem:[#allocation2 + $0x38] sm:$0xff] %v3638_v1   ;;  %926 = vmatprep.mubr.bf16.mxu0 %v4418_v3  ;;  %1039 = vmatprep.mubr.bf16.mxu1 %v4418_v3 }
 0x115   : > { %v3921_v44 = vld [vmem:[#allocation2 + $0x30] sm:$0xff]  }
 0x119   : > { %927 = vmatmul.mubr.bf16.gmra.mxu0 %v3918_v0  ;;  %1040 = vmatmul.mubr.bf16.gmra.mxu1 %v3918_v0  ;;  %v3922_v52 = vld [vmem:[#allocation2 + $0x38] sm:$0xff]  }
 0x11a   : > { %936 = vmatprep.mubr.bf16.mxu0 %v4418_v3  ;;  %1049 = vmatprep.mubr.bf16.mxu1 %v4418_v3 }
 0x121   : > { %937 = vmatmul.mubr.bf16.gmra.mxu0 %v3919_v34  ;;  %1050 = vmatmul.mubr.bf16.gmra.mxu1 %v3919_v34 }
 0x122   : > { %946 = vmatprep.mubr.bf16.mxu0 %v4418_v3  ;;  %1059 = vmatprep.mubr.bf16.mxu1 %v4418_v3 }
 0x129   : > { %947 = vmatmul.mubr.bf16.gmra.mxu0 %v3920_v35  ;;  %1060 = vmatmul.mubr.bf16.gmra.mxu1 %v3920_v35 }
 0x12a   : > { %956 = vmatprep.mubr.bf16.mxu0 %v4418_v3  ;;  %1069 = vmatprep.mubr.bf16.mxu1 %v4418_v3 }
 0x131   : > { %957 = vmatmul.mubr.bf16.gmra.mxu0 %v3921_v44  ;;  %1070 = vmatmul.mubr.bf16.gmra.mxu1 %v3921_v44  ;;  %v3935_v44 = vld [vmem:[#allocation9 + $0x60] sm:$0xff]  }
 0x132   : > { %966 = vmatprep.mubr.bf16.mxu0 %v4418_v3  ;;  %1079 = vmatprep.mubr.bf16.mxu1 %v4418_v3  ;;  %v636_v3 = vlaneseq }
 0x133   : > { %3653 = vmatprep.subr.bf16.mxu0 %v3935_v44 }
 0x134   : > { %v637_v60 = vshrl.u32 %v636_v3, 7  ;;  %3654 = vmatpush3.bf16.msra.mxu0 %v3937_v54 }
 0x136   : > { %v638_v61 = vsub.s32 0, %v637_v60  ;;  %v646_v63 = vsub.s32 2, %v637_v60  ;;  %v642_v13 = vsub.s32 1, %v637_v60  ;;  %v650_v20 = vsub.s32 3, %v637_v60 }
 0x138   : > { %v4731_v62 = vrot.slane %v634_v5, %v638_v61  ;;  %v4736_v7 = vrot.slane %v634_v5, %v646_v63  ;;  %v4744_v21 = vrot.slane %v634_v5, %v642_v13  ;;  %v4752_v25 = vrot.slane %v634_v5, %v650_v20 }
 0x139   : > { %967 = vmatmul.mubr.bf16.gmra.mxu0 %v3922_v52  ;;  %1080 = vmatmul.mubr.bf16.gmra.mxu1 %v3922_v52  ;;  %v3936_v52 = vld [vmem:[#allocation9 + $0xe0] sm:$0xff]  }
 0x13a   : > { %6847 = vst [vmem:[#allocation14_spill] sm:$0xff] %v4736_v7  ;;  %6848 = vst [vmem:[#allocation15_spill] sm:$0xff] %v4752_v25  ;;  %3717 = vmatprep.subr.bf16.mxu1 %v3936_v52 }
 0x13b   : > { %3718 = vmatpush3.bf16.msra.mxu1 %v3938_v55 }
 0x1c1   : > { %v898_v4 = vpop.f32.mrf.mxu0  ;;  %v1011_v12 = vpop.f32.mrf.mxu1 }
 0x1c2   : > { %v4734_v6 = vadd.f32 %v898_v4, %v4731_v62  ;;  %v4742_v17 = vadd.f32 %v1011_v12, %v4736_v7 }
 0x1c3   : > { %v900_v8 = vpop.f32.mrf.mxu0  ;;  %v1013_v9 = vpop.f32.mrf.mxu1 }
 0x1c4   : > { %v4739_v16 = vmul.f32 0.70710677, %v4734_v6  ;;  %v4750_v24 = vmul.f32 0.70710677, %v4742_v17  ;;  %v4755_v29 = vadd.f32 %v900_v8, %v4744_v21  ;;  %v4768_v33 = vadd.f32 %v1013_v9, %v4752_v25 }
 0x1c5   : > { %v902_v22 = vpop.f32.mrf.mxu0  ;;  %v1015_v28 = vpop.f32.mrf.mxu1 }
 0x1c6   : > { %v4747_v23 = vand.u32 2147483647, %v4739_v16  ;;  %v4758_v10 = vadd.f32 %v902_v22, %v4731_v62  ;;  %v4761_v31 = vadd.f32 %v1015_v28, %v4736_v7  ;;  %v4765_v32 = vand.u32 2147483647, %v4750_v24 }
 0x1c7   : > { %v904_v30 = vpop.f32.mrf.mxu0  ;;  %v4771_v36 = vmul.f32 0.70710677, %v4755_v29  ;;  %v4784_v40 = vmul.f32 0.70710677, %v4768_v33  ;;  %v1017_v45 = vpop.f32.mrf.mxu1  ;;  %vm2434_vm0 = vcmp.ge.f32.partialorder %v4739_v16, 0.0  ;;  %vm2436_vm3 = vcmp.ge.f32.partialorder %v4750_v24, 0.0 }
 0x1c8   : > { %v1282_v11 = vmul.f32 0.3275911, %v4747_v23  ;;  %v4774_v14 = vadd.f32 %v904_v30, %v4744_v21  ;;  %v4777_v37 = vmul.f32 0.70710677, %v4758_v10  ;;  %v4780_v15 = vmul.f32 0.70710677, %v4761_v31 }
 0x1c9   : > { %v1284_v39 = vmul.f32 0.3275911, %v4765_v32  ;;  %v4787_v41 = vand.u32 2147483647, %v4771_v36  ;;  %v4799_v19 = vand.u32 2147483647, %v4784_v40  ;;  %v4807_v49 = vadd.f32 %v1017_v45, %v4752_v25  ;;  %v908_v35 = vpop.f32.mrf.mxu0  ;;  %v1021_v59 = vpop.f32.mrf.mxu1 }
 0x1ca   : > { %v1346_v38 = vadd.f32 1.0, %v1282_v11  ;;  %v4790_v42 = vmul.f32 0.70710677, %v4774_v14  ;;  %v4793_v18 = vand.u32 2147483647, %v4777_v37  ;;  %v4816_v58 = vadd.f32 %v908_v35, %v4731_v62 }
 0x1cb   : > { %v4796_v43 = vand.u32 2147483647, %v4780_v15  ;;  %v1348_v46 = vadd.f32 1.0, %v1284_v39  ;;  %v1283_v47 = vmul.f32 0.3275911, %v4787_v41  ;;  %v4828_v5 = vadd.f32 %v1021_v59, %v4736_v7 }
 0x1cc   : > { %3987 = vrcp.f32 %v1346_v38  ;;  %v4803_v48 = vand.u32 2147483647, %v4790_v42  ;;  %v1286_v26 = vmul.f32 0.3275911, %v4793_v18  ;;  %v1285_v50 = vmul.f32 0.3275911, %v4799_v19 }
 0x1cd   : > { %v1288_v27 = vmul.f32 0.3275911, %v4796_v43  ;;  %3989 = vrcp.f32 %v1348_v46  ;;  %v1347_v51 = vadd.f32 1.0, %v1283_v47  ;;  %v4813_v34 = vmul.f32 0.70710677, %v4807_v49 }
 0x1ce   : > { %v1287_v1 = vmul.f32 0.3275911, %v4803_v48  ;;  %v1350_v0 = vadd.f32 1.0, %v1286_v26  ;;  %v1349_v56 = vadd.f32 1.0, %v1285_v50  ;;  %v4824_v60 = vmul.f32 0.70710677, %v4816_v58 }
 0x1cf   : > { %v1352_v53 = vadd.f32 1.0, %v1288_v27  ;;  %3991 = vrcp.f32 %v1347_v51  ;;  %v4819_v2 = vand.u32 2147483647, %v4813_v34  ;;  %v4837_v8 = vmul.f32 0.70710677, %v4828_v5 }
 0x1d0   : > { %v1351_v57 = vadd.f32 1.0, %v1287_v1  ;;  %3993 = vrcp.f32 %v1350_v0  ;;  %v4834_v12 = vand.u32 2147483647, %v4824_v60  ;;  %v2050_v38 = vsub.f32 0.0, %v4747_v23 }
 0x1d1   : > { %3995 = vrcp.f32 %v1352_v53  ;;  %v1289_v61 = vmul.f32 0.3275911, %v4819_v2  ;;  %v4844_v30 = vand.u32 2147483647, %v4837_v8  ;;  %v2052_v47 = vsub.f32 0.0, %v4765_v32 }
 0x1d2   : > { %3997 = vrcp.f32 %v1349_v56  ;;  %v1290_v22 = vmul.f32 0.3275911, %v4834_v12  ;;  %v2051_v51 = vsub.f32 0.0, %v4787_v41  ;;  %v2114_v35 = vmul.f32 %v2050_v38, %v4747_v23 }
 0x1d3   : > { %3999 = vrcp.f32 %v1351_v57  ;;  %v1353_v13 = vadd.f32 1.0, %v1289_v61  ;;  %v1292_v0 = vmul.f32 0.3275911, %v4844_v30  ;;  %v2116_v54 = vmul.f32 %v2052_v47, %v4765_v32 }
 0x1d4   : > { %v1354_v27 = vadd.f32 1.0, %v1290_v22  ;;  %v2053_v57 = vsub.f32 0.0, %v4799_v19  ;;  %v2115_v61 = vmul.f32 %v2051_v51, %v4787_v41  ;;  %v4877_v47 = vmul.f32 0.5, %v4755_v29 }
 0x1d5   : > { %4001 = vrcp.f32 %v1353_v13  ;;  %v1356_v23 = vadd.f32 1.0, %v1292_v0  ;;  %v4870_v13 = vmul.f32 0.5, %v4734_v6  ;;  %v4881_v6 = vmul.f32 0.5, %v4768_v33 }
 0x1d6   : > { %4003 = vrcp.f32 %v1354_v27  ;;  %v2117_v41 = vmul.f32 %v2053_v57, %v4799_v19  ;;  %v2054_v29 = vsub.f32 0.0, %v4793_v18  ;;  %vm2438_vm1 = vcmp.ge.f32.partialorder %v4777_v37, 0.0 }
 0x1d7   : > { %4005 = vrcp.f32 %v1356_v23  ;;  %vm2440_vm2 = vcmp.ge.f32.partialorder %v4780_v15, 0.0  ;;  %vm2435_vm4 = vcmp.ge.f32.partialorder %v4771_v36, 0.0  ;;  %vm2437_vm5 = vcmp.ge.f32.partialorder %v4784_v40, 0.0 }
 0x1d8   : > { %vm2439_vm6 = vcmp.ge.f32.partialorder %v4790_v42, 0.0  ;;  %vm2441_vm7 = vcmp.ge.f32.partialorder %v4813_v34, 0.0  ;;  %v5103_v36 = vmul.f32 0.5, %v4828_v5  ;;  %vm2442_vm8 = vcmp.ge.f32.partialorder %v4824_v60, 0.0 }
 0x1d9   : > { %v4821_v3 = vpop.eup %3987  ;;  %vm2444_vm9 = vcmp.ge.f32.partialorder %v4837_v8, 0.0 }
 0x1da   : > { %v1474_v63 = vmul.f32 1.0614054, %v4821_v3  ;;  %v4831_v4 = vpop.eup %3989 }
 0x1db   : > { %v1476_v9 = vmul.f32 1.0614054, %v4831_v4 }
 0x1dc   : > { %v1538_v20 = vadd.f32 -1.4531521, %v1474_v63  ;;  %v4841_v28 = vpop.eup %3991 }
 0x1dd   : > { %v4846_v11 = vpop.eup %3993  ;;  %v1540_v46 = vadd.f32 -1.4531521, %v1476_v9  ;;  %v1475_v55 = vmul.f32 1.0614054, %v4841_v28  ;;  %v4873_v9 = vmul.f32 0.5, %v4742_v17 }
 0x1de   : > { %v4849_v39 = vpop.eup %3995  ;;  %v1602_v45 = vmul.f32 %v4821_v3, %v1538_v20  ;;  %v1478_v1 = vmul.f32 1.0614054, %v4846_v11  ;;  %v2178_v20 = vmul.f32 1.442695, %v2114_v35  ;;  %v4887_v35 = vmul.f32 0.5, %v4758_v10 }
 0x1df   : > { %v4853_v26 = vpop.eup %3997  ;;  %v1480_v44 = vmul.f32 1.0614054, %v4849_v39  ;;  %v1604_v53 = vmul.f32 %v4831_v4, %v1540_v46  ;;  %v1539_v46 = vadd.f32 -1.4531521, %v1475_v55  ;;  %v2184_v55 = vmul.f32 1.442695, %v2117_v41 }
 0x1e0   : > { %v4855_v50 = vpop.eup %3999  ;;  %v1666_v52 = vadd.f32 1.4214138, %v1602_v45  ;;  %v1477_v56 = vmul.f32 1.0614054, %v4853_v26  ;;  %v1542_v63 = vadd.f32 -1.4531521, %v1478_v1  ;;  %4007 = vpow2.f32 %v2178_v20 }
 0x1e1   : > { %v1479_v59 = vmul.f32 1.0614054, %v4855_v50  ;;  %v1544_v32 = vadd.f32 -1.4531521, %v1480_v44  ;;  %v1668_v38 = vadd.f32 1.4214138, %v1604_v53  ;;  %v1603_v33 = vmul.f32 %v4841_v28, %v1539_v46  ;;  %v910_v53 = vpop.f32.mrf.mxu0 }
 0x1e2   : > { %v1730_v22 = vmul.f32 %v4821_v3, %v1666_v52  ;;  %v2182_v45 = vmul.f32 1.442695, %v2116_v54  ;;  %v1541_v27 = vadd.f32 -1.4531521, %v1477_v56  ;;  %v2180_v1 = vmul.f32 1.442695, %v2115_v61  ;;  %v4884_v0 = vpop.eup %4001 }
 0x1e3   : > { %v1543_v51 = vadd.f32 -1.4531521, %v1479_v59  ;;  %v1606_v17 = vmul.f32 %v4846_v11, %v1542_v63  ;;  %v1608_v44 = vmul.f32 %v4849_v39, %v1544_v32  ;;  %v1732_v19 = vmul.f32 %v4831_v4, %v1668_v38 }
 0x1e4   : > { %v1794_v52 = vadd.f32 -0.28449672, %v1730_v22  ;;  %4009 = vpow2.f32 %v2182_v45  ;;  %v1605_v54 = vmul.f32 %v4853_v26, %v1541_v27  ;;  %v2056_v56 = vsub.f32 0.0, %v4796_v43 }
 0x1e5   : > { %v1607_v57 = vmul.f32 %v4855_v50, %v1543_v51  ;;  %4011 = vpow2.f32 %v2180_v1  ;;  %v1670_v10 = vadd.f32 1.4214138, %v1606_v17  ;;  %v2055_v59 = vsub.f32 0.0, %v4803_v48  ;;  %v4911_v1 = vpop.eup %4003 }
 0x1e6   : > { %v1481_v61 = vmul.f32 1.0614054, %v4884_v0  ;;  %v2118_v63 = vmul.f32 %v2054_v29, %v4793_v18  ;;  %v1672_v23 = vadd.f32 1.4214138, %v1608_v44  ;;  %v2057_v20 = vsub.f32 0.0, %v4819_v2 }
 0x1e7   : > { %v4901_v32 = vadd.f32 %v910_v53, %v4744_v21  ;;  %v1858_v22 = vmul.f32 %v4821_v3, %v1794_v52  ;;  %v1796_v38 = vadd.f32 -0.28449672, %v1732_v19  ;;  %v1667_v45 = vadd.f32 1.4214138, %v1603_v33 }
 0x1e8   : > { %v4905_v46 = vmul.f32 0.5, %v4761_v31  ;;  %v1669_v27 = vadd.f32 1.4214138, %v1605_v54  ;;  %v2120_v41 = vmul.f32 %v2056_v56, %v4796_v43  ;;  %v4909_v51 = vmul.f32 0.5, %v4774_v14 }
 0x1e9   : > { %v1671_v18 = vadd.f32 1.4214138, %v1607_v57  ;;  %4013 = vpow2.f32 %v2184_v55  ;;  %v1734_v17 = vmul.f32 %v4846_v11, %v1670_v10  ;;  %v2119_v29 = vmul.f32 %v2055_v59, %v4803_v48 }
 0x1ea   : > { %6849 = vst [vmem:[#allocation16_spill] sm:$0xff] %v4909_v51  ;;  %v1545_v44 = vadd.f32 -1.4531521, %v1481_v61  ;;  %v2186_v52 = vmul.f32 1.442695, %v2118_v63  ;;  %v1736_v19 = vmul.f32 %v4849_v39, %v1672_v23  ;;  %v2121_v31 = vmul.f32 %v2057_v20, %v4819_v2  ;;  %v4932_v63 = vpop.eup %4005 }
 0x1eb   : > { %v4918_v33 = vmul.f32 0.70710677, %v4901_v32  ;;  %v1922_v43 = vadd.f32 0.2548296, %v1858_v22  ;;  %v1860_v14 = vmul.f32 %v4831_v4, %v1796_v38  ;;  %v1731_v53 = vmul.f32 %v4841_v28, %v1667_v45  ;;  %v1023_v22 = vpop.f32.mrf.mxu1 }
 0x1ec   : > { %v4923_v54 = vmul.f32 0.5, %v4807_v49  ;;  %v1733_v55 = vmul.f32 %v4853_v26, %v1669_v27  ;;  %v2190_v48 = vmul.f32 1.442695, %v2120_v41  ;;  %v1735_v56 = vmul.f32 %v4855_v50, %v1671_v18 }
 0x1ed   : > { %6850 = vst [vmem:[#allocation17_spill] sm:$0xff] %v4918_v33  ;;  %v1482_v57 = vmul.f32 1.0614054, %v4911_v1  ;;  %v1798_v10 = vadd.f32 -0.28449672, %v1734_v17  ;;  %v1609_v59 = vmul.f32 %v4884_v0, %v1545_v44  ;;  %v4930_v61 = vmul.f32 0.5, %v4816_v58  ;;  %v4008_v38 = vpop.eup %4007  ;;  %v912_v17 = vpop.f32.mrf.mxu0 }
 0x1ee   : > { %6851 = vst [vmem:[#allocation18_spill] sm:$0xff] %v4923_v54  ;;  %v2188_v2 = vmul.f32 1.442695, %v2119_v29  ;;  %4015 = vpow2.f32 %v2186_v52  ;;  %v1800_v23 = vadd.f32 -0.28449672, %v1736_v19  ;;  %v1986_v45 = vmul.f32 %v4821_v3, %v1922_v43 }
 0x1ef   : > { %6852 = vst [vmem:[#allocation19_spill] sm:$0xff] %v4930_v61  ;;  %v2192_v49 = vmul.f32 1.442695, %v2121_v31  ;;  %v4935_v20 = vand.u32 2147483647, %v4918_v33  ;;  %v2058_v18 = vsub.f32 0.0, %v4834_v12  ;;  %4017 = vpow2.f32 %v2190_v48 }
 0x1f0   : > { %v1924_v27 = vadd.f32 0.2548296, %v1860_v14  ;;  %v1795_v41 = vadd.f32 -0.28449672, %v1731_v53  ;;  %v1797_v58 = vadd.f32 -0.28449672, %v1733_v55  ;;  %v1862_v52 = vmul.f32 %v4846_v11, %v1798_v10 }
 0x1f1   : > { %v4010_v29 = vpop.eup %4009  ;;  %v1799_v44 = vadd.f32 -0.28449672, %v1735_v56  ;;  %v1546_v61 = vadd.f32 -1.4531521, %v1482_v57  ;;  %v1673_v19 = vadd.f32 1.4214138, %v1609_v59  ;;  %v4942_v33 = vadd.f32 %v1023_v22, %v4752_v25  ;;  %v1025_v56 = vpop.f32.mrf.mxu1 }
 0x1f2   : > { %v1484_v31 = vmul.f32 1.0614054, %v4932_v63  ;;  %v4944_v54 = vpop.eup %4011  ;;  %v1864_v3 = vmul.f32 %v4849_v39, %v1800_v23  ;;  %4019 = vpow2.f32 %v2188_v2  ;;  %v1291_v43 = vmul.f32 0.3275911, %v4935_v20  ;;  %v914_v23 = vpop.f32.mrf.mxu0 }
 0x1f3   : > { %6853 = vst [vmem:[#allocation20_spill] sm:$0xff] %v4942_v33  ;;  %v4949_v14 = vadd.f32 %v912_v17, %v4731_v62  ;;  %v4951_v53 = vmul.f32 %v4008_v38, %v1986_v45  ;;  %v1859_v55 = vmul.f32 %v4841_v28, %v1795_v41  ;;  %4021 = vpow2.f32 %v2192_v49 }
 0x1f4   : > { %v2122_v48 = vmul.f32 %v2058_v18, %v4834_v12  ;;  %v1988_v57 = vmul.f32 %v4831_v4, %v1924_v27  ;;  %v1861_v10 = vmul.f32 %v4853_v26, %v1797_v58  ;;  %v1863_v59 = vmul.f32 %v4855_v50, %v1799_v44  ;;  %v3939_v27 = vld [vmem:[#allocation9 + $0x58] sm:$0xff]  }
 0x1f5   : > { %6854 = vst [vmem:[#allocation21_spill] sm:$0xff] %v4949_v14  ;;  %v1610_v2 = vmul.f32 %v4911_v1, %v1546_v61  ;;  %v1926_v22 = vadd.f32 0.2548296, %v1862_v52  ;;  %v1737_v17 = vmul.f32 %v4884_v0, %v1673_v19  ;;  %v1548_v38 = vadd.f32 -1.4531521, %v1484_v31  ;;  %3655 = vmatprep.subr.bf16.mxu0 %v3939_v27 }
 0x1f6   : > { %v4961_v45 = vmul.f32 0.70710677, %v4942_v33  ;;  %v4014_v49 = vpop.eup %4013  ;;  %v1928_v41 = vadd.f32 0.2548296, %v1864_v3  ;;  %v1355_v12 = vadd.f32 1.0, %v1291_v43  ;;  %v4967_v4 = vadd.f32 %v1025_v56, %v4736_v7  ;;  %v1027_v3 = vpop.f32.mrf.mxu1 }
 0x1f7   : > { %v4964_v18 = vmul.f32 0.70710677, %v4949_v14  ;;  %v1923_v61 = vadd.f32 0.2548296, %v1859_v55  ;;  %v2194_v58 = vmul.f32 1.442695, %v2122_v48  ;;  %v4971_v44 = vadd.f32 %v914_v23, %v4744_v21 }
 0x1f8   : > { %6855 = vst [vmem:[#allocation22_spill] sm:$0xff] %v4961_v45  ;;  %6857 = vst [vmem:[#allocation24_spill] sm:$0xff] %v4967_v4  ;;  %v4973_v52 = vmul.f32 %v4010_v29, %v1988_v57  ;;  %v1925_v19 = vadd.f32 0.2548296, %v1861_v10  ;;  %v1927_v31 = vadd.f32 0.2548296, %v1863_v59  ;;  %v1990_v43 = vmul.f32 %v4846_v11, %v1926_v22 }
 0x1f9   : > { %6856 = vst [vmem:[#allocation23_spill] sm:$0xff] %v4964_v18  ;;  %6858 = vst [vmem:[#allocation25_spill] sm:$0xff] %v4971_v44  ;;  %v1674_v33 = vadd.f32 1.4214138, %v1610_v2  ;;  %v1801_v14 = vadd.f32 -0.28449672, %v1737_v17  ;;  %v1612_v51 = vmul.f32 %v4932_v63, %v1548_v38  ;;  %v1992_v55 = vmul.f32 %v4849_v39, %v1928_v41 }
 0x1fa   : > { %v4978_v56 = vand.u32 2147483647, %v4961_v45  ;;  %4023 = vrcp.f32 %v1355_v12  ;;  %v4982_v48 = vand.u32 2147483647, %v4964_v18  ;;  %v4985_v29 = vmul.f32 0.70710677, %v4967_v4 }
 0x1fb   : > { %v3940_v57 = vld [vmem:[#allocation9 + $0xd8] sm:$0xff]   ;;  %v4016_v10 = vpop.eup %4015  ;;  %4025 = vpow2.f32 %v2194_v58  ;;  %v2060_v11 = vsub.f32 0.0, %v4844_v30  ;;  %v4989_v59 = vmul.f32 0.70710677, %v4971_v44  ;;  %v4992_v2 = vadd.f32 %v1027_v3, %v4752_v25  ;;  %v918_v44 = vpop.f32.mrf.mxu0 }
 0x1fc   : > { %6859 = vst [vmem:[#allocation26_spill] sm:$0xff] %v4985_v29  ;;  %v3941_v39 = vld [vmem:[#allocation9 + $0x18] sm:$0xff]   ;;  %v6861_v22 = vsub.f32 1.0, %v4951_v53  ;;  %v6758_v38 = vsub.f32 1.0, %v4973_v52  ;;  %v1987_v41 = vmul.f32 %v4841_v28, %v1923_v61  ;;  %v1738_v12 = vmul.f32 %v4911_v1, %v1674_v33  ;;  %3719 = vmatprep.subr.bf16.mxu1 %v3940_v57  ;;  %v4018_v58 = vpop.eup %4017 }
 0x1fd   : > { %6860 = vst [vmem:[#allocation27_spill] sm:$0xff] %v4989_v59  ;;  %v3942_v23 = vld [vmem:[#allocation9 + $0x98] sm:$0xff]   ;;  %v1989_v18 = vmul.f32 %v4853_v26, %v1925_v19  ;;  %v1865_v3 = vmul.f32 %v4884_v0, %v1801_v14  ;;  %v1676_v45 = vadd.f32 1.4214138, %v1612_v51  ;;  %v1293_v27 = vmul.f32 0.3275911, %v4978_v56  ;;  %3656 = vmatpush3.bf16.msra.mxu0 %v3941_v39 }
 0x1fe   : > { %v4996_v17 = vsub.f32 0.0, %v6861_v22  ;;  %3720 = vmatpush3.bf16.msra.mxu1 %v3942_v23  ;;  %v5004_v22 = vmul.f32 %v4016_v10, %v1990_v43  ;;  %v5006_v4 = vmul.f32 %v4018_v58, %v1992_v55  ;;  %v1294_v28 = vmul.f32 0.3275911, %v4982_v48  ;;  %v1031_v23 = vpop.f32.mrf.mxu1 }
 0x1ff   : > { %v5010_v33 = vand.u32 2147483647, %v4985_v29  ;;  %v4020_v61 = vpop.eup %4019  ;;  %v1991_v26 = vmul.f32 %v4855_v50, %v1927_v31  ;;  %v2124_v14 = vmul.f32 %v2060_v11, %v4844_v30  ;;  %v5015_v51 = vand.u32 2147483647, %v4989_v59 }
 0x200   : > { %v5018_v19 = vmul.f32 0.70710677, %v4992_v2  ;;  %v4022_v43 = vpop.eup %4021  ;;  %v5023_v55 = vsub.f32 0.0, %v6758_v38  ;;  %v5026_v57 = vmul.f32 %v4944_v54, %v1987_v41  ;;  %v1802_v10 = vadd.f32 -0.28449672, %v1738_v12 }
 0x201   : > { %v5029_v50 = vadd.f32 %v918_v44, %v4731_v62  ;;  %v5031_v30 = vmul.f32 %v4014_v49, %v1989_v18  ;;  %v1929_v31 = vadd.f32 0.2548296, %v1865_v3  ;;  %v1740_v11 = vmul.f32 %v4932_v63, %v1676_v45 }
 0x202   : > { %6862 = vst [vmem:[#allocation28_spill] sm:$0xff] %v5018_v19  ;;  %v1357_v39 = vadd.f32 1.0, %v1293_v27  ;;  %v2374_v58 = vsub.f32 1.0, %v5004_v22  ;;  %v2376_v38 = vsub.f32 1.0, %v5006_v4  ;;  %v1358_v59 = vadd.f32 1.0, %v1294_v28 }
 0x203   : > { %v1296_v54 = vmul.f32 0.3275911, %v5010_v33  ;;  %v2311_v44 = vmul.f32 %v4020_v61, %v1991_v26  ;;  %v2198_v41 = vmul.f32 1.442695, %v2124_v14  ;;  %v1295_v49 = vmul.f32 0.3275911, %v5015_v51 }
 0x204   : > { %v5041_v18 = vand.u32 2147483647, %v5018_v19  ;;  %v2371_v45 = vsub.f32 1.0, %v5026_v57  ;;  %v1866_v12 = vmul.f32 %v4911_v1, %v1802_v10  ;;  %v5046_v3 = vmul.f32 0.70710677, %v5029_v50  ;;  %v920_v57 = vpop.f32.mrf.mxu0 }
 0x205   : > { %v5049_v4 = vadd.f32 %v1031_v23, %v4736_v7  ;;  %v2373_v27 = vsub.f32 1.0, %v5031_v30  ;;  %v1993_v22 = vmul.f32 %v4884_v0, %v1929_v31  ;;  %v1804_v28 = vadd.f32 -0.28449672, %v1740_v11 }
 0x206   : > { %6863 = vst [vmem:[#allocation29_spill] sm:$0xff] %v5046_v3  ;;  %4027 = vrcp.f32 %v1357_v39  ;;  %v2502_v61 = vsub.f32 0.0, %v2374_v58  ;;  %v2504_v26 = vsub.f32 0.0, %v2376_v38  ;;  %v1360_v14 = vadd.f32 1.0, %v1296_v54 }
 0x207   : > { %6864 = vst [vmem:[#allocation30_spill] sm:$0xff] %v5049_v4  ;;  %4029 = vrcp.f32 %v1358_v59  ;;  %v5057_v10 = vpop.eup %4023  ;;  %v2375_v23 = vsub.f32 1.0, %v2311_v44  ;;  %v1359_v19 = vadd.f32 1.0, %v1295_v49  ;;  %v1297_v30 = vmul.f32 0.3275911, %v5041_v18 }
 0x208   : > { %4031 = vpow2.f32 %v2198_v41  ;;  %v4026_v29 = vpop.eup %4025  ;;  %v1930_v7 = vadd.f32 0.2548296, %v1866_v12  ;;  %v5061_v0 = vand.u32 2147483647, %v5046_v3  ;;  %v5064_v31 = vmul.f32 0.70710677, %v5049_v4 }
 0x209   : > { %v6865_v59 = vsub.f32 1.0, %v4951_v53  ;;  %v2313_v39 = vmul.f32 %v4022_v43, %v1993_v22  ;;  %v1868_v54 = vmul.f32 %v4932_v63, %v1804_v28  ;;  %v5073_v44 = vadd.f32 %v920_v57, %v4744_v21 }
 0x20a   : > { %v2499_v41 = vsub.f32 0.0, %v2371_v45  ;;  %v2501_v49 = vsub.f32 0.0, %v2373_v27  ;;  %v1483_v12 = vmul.f32 1.0614054, %v5057_v10  ;;  %4033 = vrcp.f32 %v1360_v14 }
 0x20b   : > { %v2562_v11 = vsel %vm2434_vm0, %v6865_v59, %v4996_v17  ;;  %v2566_v3 = vsel %vm2438_vm1, %v2374_v58, %v2502_v61  ;;  %v2503_v4 = vsub.f32 0.0, %v2375_v23  ;;  %4035 = vrcp.f32 %v1359_v19 }
 0x20c   : > { %v1361_v53 = vadd.f32 1.0, %v1297_v30  ;;  %v2568_v16 = vsel %vm2440_vm2, %v2376_v38, %v2504_v26  ;;  %v1994_v17 = vmul.f32 %v4911_v1, %v1930_v7  ;;  %v1298_v43 = vmul.f32 0.3275911, %v5061_v0 }
 0x20d   : > { %v5084_v22 = vand.u32 2147483647, %v5064_v31  ;;  %v2626_v28 = vadd.f32 1.0, %v2562_v11  ;;  %v2377_v14 = vsub.f32 1.0, %v2313_v39  ;;  %v1932_v57 = vadd.f32 0.2548296, %v1868_v54 }
 0x20e   : > { %v5087_v37 = vmul.f32 0.70710677, %v5073_v44  ;;  %v6866_v19 = vsub.f32 1.0, %v4973_v52  ;;  %v2563_v7 = vsel %vm2435_vm4, %v2371_v45, %v2499_v41  ;;  %v2565_v1 = vsel %vm2437_vm5, %v2373_v27, %v2501_v49 }
 0x20f   : > { %v1547_v38 = vadd.f32 -1.4531521, %v1483_v12  ;;  %v2630_v58 = vadd.f32 1.0, %v2566_v3  ;;  %v2632_v61 = vadd.f32 1.0, %v2568_v16  ;;  %v2567_v26 = vsel %vm2439_vm6, %v2375_v23, %v2503_v4 }
 0x210   : > { %v2564_v15 = vsel %vm2436_vm3, %v6866_v19, %v5023_v55  ;;  %4037 = vrcp.f32 %v1361_v53  ;;  %v2314_v30 = vmul.f32 %v4026_v29, %v1994_v17  ;;  %v2059_v59 = vsub.f32 0.0, %v4935_v20 }
 0x211   : > { %v1362_v52 = vadd.f32 1.0, %v1298_v43  ;;  %v1300_v24 = vmul.f32 0.3275911, %v5084_v22  ;;  %v2505_v55 = vsub.f32 0.0, %v2377_v14  ;;  %v1996_v40 = vmul.f32 %v4932_v63, %v1932_v57 }
 0x212   : > { %v5107_v45 = vand.u32 2147483647, %v5087_v37  ;;  %v5112_v42 = vmul.f32 %v2626_v28, %v4870_v13  ;;  %v2628_v29 = vadd.f32 1.0, %v2564_v15  ;;  %v2627_v4 = vadd.f32 1.0, %v2563_v7 }
 0x213   : > { %v5109_v3 = vpop.eup %4027  ;;  %v1611_v27 = vmul.f32 %v5057_v10, %v1547_v38  ;;  %v2629_v11 = vadd.f32 1.0, %v2565_v1  ;;  %v5118_v5 = vmul.f32 %v2630_v58, %v4887_v35  ;;  %v5121_v63 = vmul.f32 %v2632_v61, %v4905_v46 }
 0x214   : > { %6867 = vst [vmem:[#allocation31_spill] sm:$0xff] %v5112_v42  ;;  %v5115_v23 = vpop.eup %4029  ;;  %v2631_v39 = vadd.f32 1.0, %v2567_v26  ;;  %v2378_v41 = vsub.f32 1.0, %v2314_v30  ;;  %v2123_v13 = vmul.f32 %v2059_v59, %v4935_v20  ;;  %4039 = vrcp.f32 %v1362_v52  ;;  %v1033_v52 = vpop.f32.mrf.mxu1 }
 0x215   : > { %6868 = vst [vmem:[#allocation32_spill] sm:$0xff] %v5118_v5  ;;  %6869 = vst [vmem:[#allocation33_spill] sm:$0xff] %v5121_v63  ;;  %v4032_v54 = vpop.eup %4031  ;;  %v1364_v49 = vadd.f32 1.0, %v1300_v24  ;;  %v2569_v12 = vsel %vm2441_vm7, %v2377_v14, %v2505_v55  ;;  %v2061_v16 = vsub.f32 0.0, %v4978_v56  ;;  %v1299_v35 = vmul.f32 0.3275911, %v5107_v45 }
 0x216   : > { %v2316_v53 = vmul.f32 %v4032_v54, %v1996_v40  ;;  %v5130_v46 = vmul.f32 %v2628_v29, %v4873_v9  ;;  %v1675_v17 = vadd.f32 1.4214138, %v1611_v27  ;;  %v1485_v43 = vmul.f32 1.0614054, %v5109_v3  ;;  %v6875_v24 = vld [vmem:[#allocation20_spill] sm:$0xff]  ;;  %v6876_v40 = vld [vmem:[#allocation21_spill] sm:$0xff]  ;;  %v1035_v15 = vpop.f32.mrf.mxu1 }
 0x217   : > { %v1486_v28 = vmul.f32 1.0614054, %v5115_v23  ;;  %v5134_v57 = vpop.eup %4033  ;;  %v5137_v20 = vmul.f32 %v2627_v4, %v4877_v47  ;;  %v5140_v34 = vmul.f32 %v2629_v11, %v4881_v6  ;;  %v5145_v19 = vmul.f32 0.5, %v4901_v32  ;;  %v6873_v47 = vld [vmem:[#allocation16_spill] sm:$0xff] }
 0x218   : > { %6870 = vst [vmem:[#allocation34_spill] sm:$0xff] %v5130_v46  ;;  %v5147_v9 = vpop.eup %4035  ;;  %v2633_v7 = vadd.f32 1.0, %v2569_v12  ;;  %v2506_v1 = vsub.f32 0.0, %v2378_v41  ;;  %4041 = vrcp.f32 %v1364_v49  ;;  %v5153_v38 = vmul.f32 %v2631_v39, %v6873_v47  ;;  %v6877_v39 = vld [vmem:[#allocation18_spill] sm:$0xff] }
 0x219   : > { %6871 = vst [vmem:[#allocation35_spill] sm:$0xff] %v5137_v20  ;;  %6872 = vst [vmem:[#allocation36_spill] sm:$0xff] %v5140_v34  ;;  %v2380_v6 = vsub.f32 1.0, %v2316_v53  ;;  %v2196_v58 = vmul.f32 1.442695, %v2123_v13  ;;  %v1363_v61 = vadd.f32 1.0, %v1299_v35  ;;  %v1739_v26 = vmul.f32 %v5057_v10, %v1675_v17 }
 0x21a   : > { %6874 = vst [vmem:[#allocation16_spill] sm:$0xff] %v5153_v38  ;;  %v1549_v32 = vadd.f32 -1.4531521, %v1485_v43  ;;  %v2125_v30 = vmul.f32 %v2061_v16, %v4978_v56  ;;  %v1550_v59 = vadd.f32 -1.4531521, %v1486_v28  ;;  %v5158_v55 = vmul.f32 0.5, %v6875_v24 }
 0x21b   : > { %v5161_v29 = vmul.f32 0.5, %v6876_v40  ;;  %v1488_v4 = vmul.f32 1.0614054, %v5134_v57  ;;  %v1487_v27 = vmul.f32 1.0614054, %v5147_v9  ;;  %v5168_v54 = vmul.f32 %v2633_v7, %v6877_v39  ;;  %v6879_v24 = vld [vmem:[#allocation24_spill] sm:$0xff] }
 0x21c   : > { %v2570_v56 = vsel %vm2442_vm8, %v2378_v41, %v2506_v1  ;;  %v2062_v13 = vsub.f32 0.0, %v4982_v48  ;;  %v2064_v49 = vsub.f32 0.0, %v5010_v33  ;;  %v2508_v12 = vsub.f32 0.0, %v2380_v6 }
 0x21d   : > { %v5165_v11 = vpop.eup %4037  ;;  %6878 = vst [vmem:[#allocation20_spill] sm:$0xff] %v5168_v54  ;;  %v2063_v53 = vsub.f32 0.0, %v5015_v51  ;;  %4043 = vrcp.f32 %v1363_v61  ;;  %v5176_v16 = vadd.f32 %v1033_v52, %v4752_v25  ;;  %v1803_v35 = vadd.f32 -0.28449672, %v1739_v26  ;;  %v6880_v61 = vld [vmem:[#allocation25_spill] sm:$0xff] }
 0x21e   : > { %v1613_v17 = vmul.f32 %v5109_v3, %v1549_v32  ;;  %v2200_v43 = vmul.f32 1.442695, %v2125_v30  ;;  %v1614_v28 = vmul.f32 %v5115_v23, %v1550_v59  ;;  %4045 = vpow2.f32 %v2196_v58 }
 0x21f   : > { %v1552_v60 = vadd.f32 -1.4531521, %v1488_v4  ;;  %v1551_v41 = vadd.f32 -1.4531521, %v1487_v27  ;;  %v1489_v7 = vmul.f32 1.0614054, %v5165_v11  ;;  %v2126_v47 = vmul.f32 %v2062_v13, %v4982_v48 }
 0x220   : > { %v2634_v1 = vadd.f32 1.0, %v2570_v56  ;;  %v5183_v40 = vmul.f32 0.5, %v6879_v24  ;;  %v5186_v52 = vmul.f32 0.5, %v6880_v61  ;;  %v2572_v32 = vsel %vm2444_vm9, %v2380_v6, %v2508_v12  ;;  %v922_v6 = vpop.f32.mrf.mxu0 }
 0x221   : > { %v5188_v26 = vpop.eup %4039  ;;  %v2128_v58 = vmul.f32 %v2064_v49, %v5010_v33  ;;  %v2127_v30 = vmul.f32 %v2063_v53, %v5015_v51  ;;  %v5195_v59 = vmul.f32 0.70710677, %v5176_v16  ;;  %v1677_v4 = vadd.f32 1.4214138, %v1613_v17  ;;  %v6882_v17 = vld [vmem:[#allocation19_spill] sm:$0xff] }
 0x222   : > { %4047 = vpow2.f32 %v2200_v43  ;;  %v1678_v48 = vadd.f32 1.4214138, %v1614_v28  ;;  %v2065_v27 = vsub.f32 0.0, %v5041_v18  ;;  %v1867_v39 = vmul.f32 %v5057_v10, %v1803_v35 }
 0x223   : > { %6881 = vst [vmem:[#allocation21_spill] sm:$0xff] %v5195_v59  ;;  %v1616_v56 = vmul.f32 %v5134_v57, %v1552_v60  ;;  %v1615_v13 = vmul.f32 %v5147_v9, %v1551_v41  ;;  %v1553_v8 = vadd.f32 -1.4531521, %v1489_v7  ;;  %v2636_v12 = vadd.f32 1.0, %v2572_v32 }
 0x224   : > { %v2202_v33 = vmul.f32 1.442695, %v2126_v47  ;;  %v5202_v51 = vmul.f32 0.5, %v4992_v2  ;;  %v1490_v49 = vmul.f32 1.0614054, %v5188_v26  ;;  %v5208_v43 = vmul.f32 %v2634_v1, %v6882_v17 }
 0x225   : > { %v5205_v53 = vpop.eup %4041  ;;  %v2206_v28 = vmul.f32 1.442695, %v2128_v58  ;;  %v2204_v35 = vmul.f32 1.442695, %v2127_v30  ;;  %v5211_v60 = vand.u32 2147483647, %v5195_v59  ;;  %v1741_v41 = vmul.f32 %v5109_v3, %v1677_v4 }
 0x226   : > { %6883 = vst [vmem:[#allocation18_spill] sm:$0xff] %v5208_v43  ;;  %v1742_v7 = vmul.f32 %v5115_v23, %v1678_v48  ;;  %v2129_v47 = vmul.f32 %v2065_v27, %v5041_v18  ;;  %v5217_v2 = vadd.f32 %v922_v6, %v4731_v62  ;;  %v1931_v24 = vadd.f32 0.2548296, %v1867_v39  ;;  %v3943_v4 = vld [vmem:[#allocation9 + $0x50] sm:$0xff]   ;;  %v6885_v18 = vld [vmem:[#allocation30_spill] sm:$0xff] }
 0x227   : > { %v1680_v61 = vadd.f32 1.4214138, %v1616_v56  ;;  %v1679_v32 = vadd.f32 1.4214138, %v1615_v13  ;;  %v1617_v1 = vmul.f32 %v5165_v11, %v1553_v8  ;;  %4049 = vpow2.f32 %v2202_v33  ;;  %v3944_v56 = vld [vmem:[#allocation9 + $0xd0] sm:$0xff]   ;;  %3657 = vmatprep.subr.bf16.mxu0 %v3943_v4 }
 0x228   : > { %v5221_v58 = vmul.f32 0.5, %v5029_v50  ;;  %v1554_v30 = vadd.f32 -1.4531521, %v1490_v49  ;;  %v1492_v17 = vmul.f32 1.0614054, %v5205_v53  ;;  %v5225_v48 = vmul.f32 %v2636_v12, %v5103_v36  ;;  %v3945_v13 = vld [vmem:[#allocation9 + $0x10] sm:$0xff]   ;;  %3721 = vmatprep.subr.bf16.mxu1 %v3944_v56 }
 0x229   : > { %4051 = vpow2.f32 %v2206_v28  ;;  %v5228_v27 = vmul.f32 0.5, %v6885_v18  ;;  %v1301_v39 = vmul.f32 0.3275911, %v5211_v60  ;;  %v3946_v8 = vld [vmem:[#allocation9 + $0x90] sm:$0xff]   ;;  %v1805_v50 = vadd.f32 -0.28449672, %v1741_v41  ;;  %3658 = vmatpush3.bf16.msra.mxu0 %v3945_v13 }
 0x22a   : > { %6884 = vst [vmem:[#allocation24_spill] sm:$0xff] %v5225_v48  ;;  %v5231_v6 = vpop.eup %4043  ;;  %v1806_v33 = vadd.f32 -0.28449672, %v1742_v7  ;;  %4053 = vpow2.f32 %v2204_v35  ;;  %v5234_v49 = vmul.f32 0.70710677, %v5217_v2  ;;  %v1744_v36 = vmul.f32 %v5134_v57, %v1680_v61  ;;  %3722 = vmatpush3.bf16.msra.mxu1 %v3946_v8 }
 0x22b   : > { %v1681_v12 = vadd.f32 1.4214138, %v1617_v1  ;;  %v2208_v28 = vmul.f32 1.442695, %v2129_v47  ;;  %v2066_v18 = vsub.f32 0.0, %v5061_v0  ;;  %v4046_v14 = vpop.eup %4045  ;;  %v1618_v48 = vmul.f32 %v5188_v26, %v1554_v30  ;;  %v6887_v47 = vld [vmem:[#allocation14_spill] sm:$0xff] }
 0x22c   : > { %6886 = vst [vmem:[#allocation25_spill] sm:$0xff] %v5234_v49  ;;  %v1556_v43 = vadd.f32 -1.4531521, %v1492_v17  ;;  %v2068_v41 = vsub.f32 0.0, %v5084_v22  ;;  %v5241_v35 = vmul.f32 0.5, %v5073_v44  ;;  %v1743_v7 = vmul.f32 %v5147_v9, %v1679_v32 }
 0x22d   : > { %v1491_v61 = vmul.f32 1.0614054, %v5231_v6  ;;  %v1365_v1 = vadd.f32 1.0, %v1301_v39  ;;  %v5246_v4 = vadd.f32 %v1035_v15, %v6887_v47  ;;  %v1995_v56 = vmul.f32 %v5057_v10, %v1931_v24  ;;  %v924_v24 = vpop.f32.mrf.mxu0 }
 0x22e   : > { %v1869_v13 = vmul.f32 %v5109_v3, %v1805_v50  ;;  %v1870_v30 = vmul.f32 %v5115_v23, %v1806_v33  ;;  %v5252_v17 = vand.u32 2147483647, %v5234_v49  ;;  %v1808_v46 = vadd.f32 -0.28449672, %v1744_v36  ;;  %v1037_v36 = vpop.f32.mrf.mxu1 }
 0x22f   : > { %v4048_v44 = vpop.eup %4047  ;;  %v1745_v8 = vmul.f32 %v5165_v11, %v1681_v12  ;;  %4055 = vpow2.f32 %v2208_v28  ;;  %v2067_v32 = vsub.f32 0.0, %v5107_v45  ;;  %v1682_v39 = vadd.f32 1.4214138, %v1618_v48 }
 0x230   : > { %v2130_v15 = vmul.f32 %v2066_v18, %v5061_v0  ;;  %v1620_v63 = vmul.f32 %v5205_v53, %v1556_v43  ;;  %v2132_v10 = vmul.f32 %v2068_v41, %v5084_v22  ;;  %v1807_v50 = vadd.f32 -0.28449672, %v1743_v7 }
 0x231   : > { %v1555_v33 = vadd.f32 -1.4531521, %v1491_v61  ;;  %4057 = vrcp.f32 %v1365_v1  ;;  %v5260_v42 = vmul.f32 0.70710677, %v5246_v4  ;;  %v5262_v5 = vmul.f32 %v4046_v14, %v1995_v56 }
 0x232   : > { %v1933_v12 = vadd.f32 0.2548296, %v1869_v13  ;;  %v1934_v28 = vadd.f32 0.2548296, %v1870_v30  ;;  %v1302_v48 = vmul.f32 0.3275911, %v5252_v17  ;;  %v1872_v0 = vmul.f32 %v5134_v57, %v1808_v46 }
 0x233   : > { %6888 = vst [vmem:[#allocation19_spill] sm:$0xff] %v5260_v42  ;;  %v1809_v18 = vadd.f32 -0.28449672, %v1745_v8  ;;  %v2131_v43 = vmul.f32 %v2067_v32, %v5107_v45  ;;  %v5268_v22 = vadd.f32 %v924_v24, %v4744_v21  ;;  %v1746_v41 = vmul.f32 %v5188_v26, %v1682_v39  ;;  %v928_v45 = vpop.f32.mrf.mxu0 }
 0x234   : > { %v2210_v7 = vmul.f32 1.442695, %v2130_v15  ;;  %v1684_v61 = vadd.f32 1.4214138, %v1620_v63  ;;  %v5272_v1 = vadd.f32 %v1037_v36, %v4752_v25  ;;  %v4050_v14 = vpop.eup %4049  ;;  %v1871_v56 = vmul.f32 %v5147_v9, %v1807_v50 }
 0x235   : > { %v2214_v13 = vmul.f32 1.442695, %v2132_v10  ;;  %v1619_v30 = vmul.f32 %v5231_v6, %v1555_v33  ;;  %v5277_v46 = vand.u32 2147483647, %v5260_v42  ;;  %v2379_v32 = vsub.f32 1.0, %v5262_v5  ;;  %v1041_v33 = vpop.f32.mrf.mxu1 }
 0x236   : > { %v4052_v8 = vpop.eup %4051  ;;  %v1997_v39 = vmul.f32 %v5109_v3, %v1933_v12  ;;  %v1998_v63 = vmul.f32 %v5115_v23, %v1934_v28  ;;  %v1366_v15 = vadd.f32 1.0, %v1302_v48  ;;  %v1936_v36 = vadd.f32 0.2548296, %v1872_v0  ;;  %v6891_v23 = vld [vmem:[#allocation17_spill] sm:$0xff] }
 0x237   : > { %v4054_v24 = vpop.eup %4053  ;;  %v1873_v54 = vmul.f32 %v5165_v11, %v1809_v18  ;;  %v2212_v50 = vmul.f32 1.442695, %v2131_v43  ;;  %v5284_v10 = vmul.f32 0.70710677, %v5268_v22  ;;  %v1810_v34 = vadd.f32 -0.28449672, %v1746_v41 }
 0x238   : > { %v1748_v38 = vmul.f32 %v5205_v53, %v1684_v61  ;;  %v5288_v20 = vmul.f32 0.70710677, %v5272_v1  ;;  %v5291_v3 = vadd.f32 %v928_v45, %v4731_v62  ;;  %vm2443_vm10 = vcmp.ge.f32.partialorder %v6891_v23, 0.0 }
 0x239   : > { %6889 = vst [vmem:[#allocation30_spill] sm:$0xff] %v5284_v10  ;;  %v1935_v5 = vadd.f32 0.2548296, %v1871_v56  ;;  %4059 = vpow2.f32 %v2210_v7  ;;  %v1683_v12 = vadd.f32 1.4214138, %v1619_v30  ;;  %v2317_v48 = vmul.f32 %v4048_v44, %v1997_v39  ;;  %v6893_v39 = vld [vmem:[#allocation22_spill] sm:$0xff] }
 0x23a   : > { %6890 = vst [vmem:[#allocation14_spill] sm:$0xff] %v5288_v20  ;;  %v1304_v28 = vmul.f32 0.3275911, %v5277_v46  ;;  %v2318_v0 = vmul.f32 %v4050_v14, %v1998_v63  ;;  %4061 = vrcp.f32 %v1366_v15  ;;  %v5296_v18 = vadd.f32 %v1041_v33, %v6887_v47  ;;  %v6894_v63 = vld [vmem:[#allocation23_spill] sm:$0xff] }
 0x23b   : > { %v2000_v43 = vmul.f32 %v5134_v57, %v1936_v36  ;;  %v1937_v41 = vadd.f32 0.2548296, %v1873_v54  ;;  %4063 = vpow2.f32 %v2214_v13  ;;  %v5300_v61 = vand.u32 2147483647, %v5284_v10 }
 0x23c   : > { %v4056_v45 = vpop.eup %4055  ;;  %v1874_v56 = vmul.f32 %v5188_v26, %v1810_v34  ;;  %v1812_v7 = vadd.f32 -0.28449672, %v1748_v38  ;;  %v5304_v30 = vand.u32 2147483647, %v5288_v20  ;;  %v5307_v44 = vmul.f32 0.70710677, %v5291_v3 }
 0x23d   : > { %v2507_v14 = vsub.f32 0.0, %v2379_v32  ;;  %vm2445_vm11 = vcmp.ge.f32.partialorder %v6893_v39, 0.0  ;;  %vm2446_vm12 = vcmp.ge.f32.partialorder %v6894_v63, 0.0  ;;  %v1999_v57 = vmul.f32 %v5147_v9, %v1935_v5 }
 0x23e   : > { %6892 = vst [vmem:[#allocation17_spill] sm:$0xff] %v5307_v44  ;;  %v1747_v54 = vmul.f32 %v5231_v6, %v1683_v12  ;;  %v1368_v13 = vadd.f32 1.0, %v1304_v28  ;;  %v5313_v15 = vpop.eup %4057  ;;  %v2381_v34 = vsub.f32 1.0, %v2317_v48  ;;  %v2382_v38 = vsub.f32 1.0, %v2318_v0 }
 0x23f   : > { %4065 = vpow2.f32 %v2212_v50  ;;  %v5316_v36 = vmul.f32 0.70710677, %v5296_v18  ;;  %v2320_v33 = vmul.f32 %v4052_v8, %v2000_v43  ;;  %v2001_v20 = vmul.f32 %v5165_v11, %v1937_v41  ;;  %v930_v50 = vpop.f32.mrf.mxu0  ;;  %v6897_v41 = vld [vmem:[#allocation26_spill] sm:$0xff] }
 0x240   : > { %v5320_v10 = vmul.f32 0.5, %v5176_v16  ;;  %v1303_v42 = vmul.f32 0.3275911, %v5300_v61  ;;  %v1938_v9 = vadd.f32 0.2548296, %v1874_v56  ;;  %v1876_v5 = vmul.f32 %v5205_v53, %v1812_v7  ;;  %v1043_v7 = vpop.f32.mrf.mxu1 }
 0x241   : > { %6895 = vst [vmem:[#allocation22_spill] sm:$0xff] %v5316_v36  ;;  %v1305_v12 = vmul.f32 0.3275911, %v5304_v30  ;;  %v5326_v28 = vand.u32 2147483647, %v5307_v44  ;;  %v2319_v48 = vmul.f32 %v4054_v24, %v1999_v57  ;;  %4067 = vrcp.f32 %v1368_v13  ;;  %v6898_v57 = vld [vmem:[#allocation27_spill] sm:$0xff] }
 0x242   : > { %6896 = vst [vmem:[#allocation23_spill] sm:$0xff] %v5320_v10  ;;  %v1811_v0 = vadd.f32 -0.28449672, %v1747_v54  ;;  %v1493_v8 = vmul.f32 1.0614054, %v5313_v15  ;;  %v2571_v11 = vsel %vm2443_vm10, %v2379_v32, %v2507_v14  ;;  %v2509_v16 = vsub.f32 0.0, %v2381_v34 }
 0x243   : > { %v2510_v43 = vsub.f32 0.0, %v2382_v38  ;;  %vm2448_vm13 = vcmp.ge.f32.partialorder %v6897_v41, 0.0  ;;  %v5333_v56 = vand.u32 2147483647, %v5316_v36  ;;  %v2384_v10 = vsub.f32 1.0, %v2320_v33 }
 0x244   : > { %v5335_v44 = vmul.f32 %v4056_v45, %v2001_v20  ;;  %v1367_v49 = vadd.f32 1.0, %v1303_v42  ;;  %v5338_v24 = vadd.f32 %v930_v50, %v4744_v21  ;;  %vm2447_vm14 = vcmp.ge.f32.partialorder %v6898_v57, 0.0 }
 0x245   : > { %v2002_v23 = vmul.f32 %v5188_v26, %v1938_v9  ;;  %v1940_v32 = vadd.f32 0.2548296, %v1876_v5  ;;  %v1369_v14 = vadd.f32 1.0, %v1305_v12  ;;  %v1306_v54 = vmul.f32 0.3275911, %v5326_v28 }
 0x246   : > { %v2383_v13 = vsub.f32 1.0, %v2319_v48  ;;  %v1875_v36 = vmul.f32 %v5231_v6, %v1811_v0  ;;  %v1557_v59 = vadd.f32 -1.4531521, %v1493_v8  ;;  %v5345_v33 = vadd.f32 %v1043_v7, %v4752_v25  ;;  %v4060_v20 = vpop.eup %4059  ;;  %v6899_v48 = vld [vmem:[#allocation28_spill] sm:$0xff] }
 0x247   : > { %v2635_v42 = vadd.f32 1.0, %v2571_v11  ;;  %v2573_v45 = vsel %vm2445_vm11, %v2381_v34, %v2509_v16  ;;  %v2574_v50 = vsel %vm2446_vm12, %v2382_v38, %v2510_v43  ;;  %v1308_v26 = vmul.f32 0.3275911, %v5333_v56  ;;  %v5352_v9 = vpop.eup %4061 }
 0x248   : > { %v2512_v5 = vsub.f32 0.0, %v2384_v10  ;;  %v2385_v12 = vsub.f32 1.0, %v5335_v44  ;;  %vm2449_vm15 = vcmp.ge.f32.partialorder %v6899_v48, 0.0  ;;  %4069 = vrcp.f32 %v1367_v49  ;;  %v4064_v8 = vpop.eup %4063 }
 0x249   : > { %v5357_v0 = vmul.f32 0.70710677, %v5338_v24  ;;  %v2322_v11 = vmul.f32 %v4060_v20, %v2002_v23  ;;  %v2004_v39 = vmul.f32 %v5205_v53, %v1940_v32  ;;  %4071 = vrcp.f32 %v1369_v14 }
 0x24a   : > { %v1370_v63 = vadd.f32 1.0, %v1306_v54  ;;  %v2511_v34 = vsub.f32 0.0, %v2383_v13  ;;  %v1939_v38 = vadd.f32 0.2548296, %v1875_v36  ;;  %v1621_v16 = vmul.f32 %v5313_v15, %v1557_v59  ;;  %v6901_v36 = vld [vmem:[#allocation29_spill] sm:$0xff] }
 0x24b   : > { %v5362_v43 = vmul.f32 0.70710677, %v5345_v33  ;;  %v5365_v44 = vmul.f32 %v2635_v42, %v5145_v19  ;;  %v2069_v49 = vsub.f32 0.0, %v5211_v60  ;;  %v1494_v7 = vmul.f32 1.0614054, %v5352_v9 }
 0x24c   : > { %v1372_v25 = vadd.f32 1.0, %v1308_v26  ;;  %v4066_v23 = vpop.eup %4065  ;;  %v2637_v20 = vadd.f32 1.0, %v2573_v45  ;;  %v2638_v53 = vadd.f32 1.0, %v2574_v50  ;;  %v2576_v32 = vsel %vm2448_vm13, %v2384_v10, %v2512_v5 }
 0x24d   : > { %6900 = vst [vmem:[#allocation26_spill] sm:$0xff] %v5365_v44  ;;  %vm2450_vm0 = vcmp.ge.f32.partialorder %v6901_v36, 0.0  ;;  %v5373_v59 = vand.u32 2147483647, %v5357_v0  ;;  %v2513_v14 = vsub.f32 0.0, %v2385_v12  ;;  %v2386_v54 = vsub.f32 1.0, %v2322_v11 }
 0x24e   : > { %v2324_v19 = vmul.f32 %v4064_v8, %v2004_v39  ;;  %4073 = vrcp.f32 %v1370_v63  ;;  %v2575_v42 = vsel %vm2447_vm14, %v2383_v13, %v2511_v34  ;;  %v2003_v26 = vmul.f32 %v5231_v6, %v1939_v38  ;;  %v5381_v41 = vpop.eup %4067  ;;  %v932_v13 = vpop.f32.mrf.mxu0 }
 0x24f   : > { %v1685_v44 = vadd.f32 1.4214138, %v1621_v16  ;;  %v5379_v45 = vand.u32 2147483647, %v5362_v43  ;;  %v2640_v10 = vadd.f32 1.0, %v2576_v32  ;;  %v2133_v50 = vmul.f32 %v2069_v49, %v5211_v60 }
 0x250   : > { %v1558_v5 = vadd.f32 -1.4531521, %v1494_v7  ;;  %4075 = vrcp.f32 %v1372_v25  ;;  %v5385_v11 = vmul.f32 %v2637_v20, %v5158_v55  ;;  %v5388_v8 = vmul.f32 %v2638_v53, %v5161_v29 }
 0x251   : > { %vm2452_vm1 = vcmp.ge.f32.partialorder %v5064_v31, 0.0  ;;  %v2070_v6 = vsub.f32 0.0, %v5252_v17  ;;  %v1307_v57 = vmul.f32 0.3275911, %v5373_v59  ;;  %v2639_v39 = vadd.f32 1.0, %v2575_v42 }
 0x252   : > { %6902 = vst [vmem:[#allocation27_spill] sm:$0xff] %v5385_v11  ;;  %6903 = vst [vmem:[#allocation28_spill] sm:$0xff] %v5388_v8  ;;  %v2577_v63 = vsel %vm2449_vm15, %v2385_v12, %v2513_v14  ;;  %v2514_v60 = vsub.f32 0.0, %v2386_v54  ;;  %v2388_v34 = vsub.f32 1.0, %v2324_v19  ;;  %v5395_v25 = vmul.f32 %v4066_v23, %v2003_v26 }
 0x253   : > { %v1749_v55 = vmul.f32 %v5313_v15, %v1685_v44  ;;  %v1496_v29 = vmul.f32 1.0614054, %v5381_v41  ;;  %v1309_v38 = vmul.f32 0.3275911, %v5379_v45  ;;  %v5401_v16 = vmul.f32 %v2640_v10, %v5183_v40 }
 0x254   : > { %v2216_v49 = vmul.f32 1.442695, %v2133_v50  ;;  %v1622_v7 = vmul.f32 %v5352_v9, %v1558_v5  ;;  %v5405_v20 = vadd.f32 %v932_v13, %v4731_v62  ;;  %v5408_v12 = vmul.f32 0.5, %v5217_v2 }
 0x255   : > { %6904 = vst [vmem:[#allocation29_spill] sm:$0xff] %v5401_v16  ;;  %v2134_v48 = vmul.f32 %v2070_v6, %v5252_v17  ;;  %v2072_v44 = vsub.f32 0.0, %v5277_v46  ;;  %v1371_v23 = vadd.f32 1.0, %v1307_v57  ;;  %v5412_v53 = vpop.eup %4069  ;;  %v2641_v32 = vadd.f32 1.0, %v2577_v63  ;;  %v3948_v6 = vld [vmem:[#allocation9 + $0xc8] sm:$0xff]  }
 0x256   : > { %v2578_v40 = vsel %vm2450_vm0, %v2386_v54, %v2514_v60  ;;  %v2516_v14 = vsub.f32 0.0, %v2388_v34  ;;  %vm2451_vm2 = vcmp.ge.f32.partialorder %v5087_v37, 0.0  ;;  %v5418_v19 = vmul.f32 0.5, %v5246_v4  ;;  %v5420_v42 = vpop.eup %4071  ;;  %v3947_v54 = vld [vmem:[#allocation9 + $0x48] sm:$0xff]   ;;  %3723 = vmatprep.subr.bf16.mxu1 %v3948_v6 }
 0x257   : > { %v2387_v2 = vsub.f32 1.0, %v5395_v25  ;;  %v1813_v17 = vadd.f32 -0.28449672, %v1749_v55  ;;  %v1560_v26 = vadd.f32 -1.4531521, %v1496_v29  ;;  %v1373_v10 = vadd.f32 1.0, %v1309_v38  ;;  %3659 = vmatprep.subr.bf16.mxu0 %v3947_v54 }
 0x258   : > { %v5424_v50 = vmul.f32 %v2639_v39, %v5186_v52  ;;  %4077 = vpow2.f32 %v2216_v49  ;;  %v1686_v5 = vadd.f32 1.4214138, %v1622_v7  ;;  %v5427_v36 = vmul.f32 0.70710677, %v5405_v20  ;;  %v3949_v63 = vld [vmem:[#allocation9 + $0x8] sm:$0xff]  }
 0x259   : > { %v2642_v57 = vadd.f32 1.0, %v2578_v40  ;;  %v2218_v4 = vmul.f32 1.442695, %v2134_v48  ;;  %v2136_v13 = vmul.f32 %v2072_v44, %v5277_v46  ;;  %4079 = vrcp.f32 %v1371_v23  ;;  %3660 = vmatpush3.bf16.msra.mxu0 %v3949_v63  ;;  %v3950_v49 = vld [vmem:[#allocation9 + $0x88] sm:$0xff]  }
 0x25a   : > { %6905 = vst [vmem:[#allocation37_spill] sm:$0xff] %v5424_v50  ;;  %v2580_v60 = vsel %vm2452_vm1, %v2388_v34, %v2516_v14  ;;  %v1495_v25 = vmul.f32 1.0614054, %v5412_v53  ;;  %v2071_v52 = vsub.f32 0.0, %v5300_v61  ;;  %v1497_v39 = vmul.f32 1.0614054, %v5420_v42  ;;  %3724 = vmatpush3.bf16.msra.mxu1 %v3950_v49 }
 0x25b   : > { %v5435_v55 = vpop.eup %4073  ;;  %v2515_v29 = vsub.f32 0.0, %v2387_v2  ;;  %v1877_v38 = vmul.f32 %v5313_v15, %v1813_v17  ;;  %v1624_v46 = vmul.f32 %v5381_v41, %v1560_v26  ;;  %4081 = vrcp.f32 %v1373_v10  ;;  %v1045_v26 = vpop.f32.mrf.mxu1 }
 0x25c   : > { %v5440_v31 = vmul.f32 %v2641_v32, %v5202_v51  ;;  %v1750_v34 = vmul.f32 %v5352_v9, %v1686_v5  ;;  %v5444_v7 = vmul.f32 0.5, %v5268_v22  ;;  %v5447_v48 = vand.u32 2147483647, %v5427_v36 }
 0x25d   : > { %v5449_v44 = vpop.eup %4075  ;;  %v5452_v23 = vmul.f32 %v2642_v57, %v5221_v58  ;;  %v2644_v40 = vadd.f32 1.0, %v2580_v60  ;;  %v2222_v14 = vmul.f32 1.442695, %v2136_v13  ;;  %v2073_v17 = vsub.f32 0.0, %v5304_v30 }
 0x25e   : > { %6906 = vst [vmem:[#allocation38_spill] sm:$0xff] %v5440_v31  ;;  %4083 = vpow2.f32 %v2218_v4  ;;  %v1559_v51 = vadd.f32 -1.4531521, %v1495_v25  ;;  %v1561_v32 = vadd.f32 -1.4531521, %v1497_v39  ;;  %v2579_v10 = vsel %vm2451_vm2, %v2387_v2, %v2515_v29 }
 0x25f   : > { %6907 = vst [vmem:[#allocation39_spill] sm:$0xff] %v5452_v23  ;;  %v1498_v22 = vmul.f32 1.0614054, %v5435_v55  ;;  %v1941_v5 = vadd.f32 0.2548296, %v1877_v38  ;;  %v2135_v6 = vmul.f32 %v2071_v52, %v5300_v61  ;;  %v5462_v63 = vadd.f32 %v1045_v26, %v6887_v47 }
 0x260   : > { %v1688_v54 = vadd.f32 1.4214138, %v1624_v46  ;;  %v1814_v58 = vadd.f32 -0.28449672, %v1750_v34  ;;  %v1500_v57 = vmul.f32 1.0614054, %v5449_v44  ;;  %v5465_v4 = vmul.f32 %v2644_v40, %v5228_v27 }
 0x261   : > { %v1310_v13 = vmul.f32 0.3275911, %v5447_v48  ;;  %4085 = vpow2.f32 %v2222_v14  ;;  %v5468_v60 = vmul.f32 0.5, %v5272_v1  ;;  %v2137_v37 = vmul.f32 %v2073_v17, %v5304_v30 }
 0x262   : > { %6908 = vst [vmem:[#allocation40_spill] sm:$0xff] %v5465_v4  ;;  %v2643_v2 = vadd.f32 1.0, %v2579_v10  ;;  %v1623_v61 = vmul.f32 %v5412_v53, %v1559_v51  ;;  %v1625_v25 = vmul.f32 %v5420_v42, %v1561_v32  ;;  %v1562_v52 = vadd.f32 -1.4531521, %v1498_v22 }
 0x263   : > { %v2005_v39 = vmul.f32 %v5313_v15, %v1941_v5  ;;  %v1752_v29 = vmul.f32 %v5381_v41, %v1688_v54  ;;  %v2220_v38 = vmul.f32 1.442695, %v2135_v6  ;;  %v2074_v27 = vsub.f32 0.0, %v5326_v28  ;;  %v934_v5 = vpop.f32.mrf.mxu0 }
 0x264   : > { %v1878_v46 = vmul.f32 %v5352_v9, %v1814_v58  ;;  %v1564_v49 = vadd.f32 -1.4531521, %v1500_v57  ;;  %v1374_v1 = vadd.f32 1.0, %v1310_v13  ;;  %v5478_v34 = vmul.f32 0.70710677, %v5462_v63 }
 0x265   : > { %v4078_v30 = vpop.eup %4077  ;;  %v2224_v40 = vmul.f32 1.442695, %v2137_v37  ;;  %v5481_v14 = vmul.f32 0.5, %v5291_v3  ;;  %v5484_v17 = vmul.f32 0.5, %v5296_v18  ;;  %v2076_v15 = vsub.f32 0.0, %v5333_v56 }
 0x266   : > { %6909 = vst [vmem:[#allocation41_spill] sm:$0xff] %v5478_v34  ;;  %v5487_v26 = vpop.eup %4079  ;;  %v5490_v51 = vmul.f32 %v2643_v2, %v5241_v35  ;;  %v1687_v32 = vadd.f32 1.4214138, %v1623_v61  ;;  %v1689_v22 = vadd.f32 1.4214138, %v1625_v25  ;;  %v1626_v10 = vmul.f32 %v5435_v55, %v1562_v52 }
 0x267   : > { %v5493_v54 = vmul.f32 %v4078_v30, %v2005_v39  ;;  %v1816_v6 = vadd.f32 -0.28449672, %v1752_v29  ;;  %4087 = vpow2.f32 %v2220_v38  ;;  %v2138_v3 = vmul.f32 %v2074_v27, %v5326_v28  ;;  %v1047_v39 = vpop.f32.mrf.mxu1 }
 0x268   : > { %6910 = vst [vmem:[#allocation42_spill] sm:$0xff] %v5490_v51  ;;  %v5496_v18 = vpop.eup %4081  ;;  %v1942_v58 = vadd.f32 0.2548296, %v1878_v46  ;;  %v1628_v57 = vmul.f32 %v5449_v44, %v1564_v49  ;;  %4089 = vrcp.f32 %v1374_v1  ;;  %v5500_v35 = vand.u32 2147483647, %v5478_v34  ;;  %v938_v49 = vpop.f32.mrf.mxu0  ;;  %v6912_v1 = vld [vmem:[#allocation21_spill] sm:$0xff] }
 0x269   : > { %4091 = vpow2.f32 %v2224_v40  ;;  %v2140_v13 = vmul.f32 %v2076_v15, %v5333_v56  ;;  %v1499_v37 = vmul.f32 1.0614054, %v5487_v26  ;;  %v5505_v2 = vadd.f32 %v934_v5, %v4744_v21  ;;  %v6914_v5 = vld [vmem:[#allocation15_spill] sm:$0xff] }
 0x26a   : > { %v1751_v61 = vmul.f32 %v5412_v53, %v1687_v32  ;;  %v1753_v28 = vmul.f32 %v5420_v42, %v1689_v22  ;;  %v1690_v25 = vadd.f32 1.4214138, %v1626_v10  ;;  %v5510_v52 = vmul.f32 0.5, %v5338_v24 }
 0x26b   : > { %v4084_v29 = vpop.eup %4083  ;;  %v2389_v38 = vsub.f32 1.0, %v5493_v54  ;;  %v1880_v27 = vmul.f32 %v5381_v41, %v1816_v6  ;;  %v2226_v56 = vmul.f32 1.442695, %v2138_v3  ;;  %v1501_v46 = vmul.f32 1.0614054, %v5496_v18 }
 0x26c   : > { %6911 = vst [vmem:[#allocation43_spill] sm:$0xff] %v5510_v52  ;;  %vm2453_vm3 = vcmp.ge.f32.partialorder %v6912_v1, 0.0  ;;  %v2006_v30 = vmul.f32 %v5352_v9, %v1942_v58  ;;  %v1692_v40 = vadd.f32 1.4214138, %v1628_v57  ;;  %v2075_v15 = vsub.f32 0.0, %v5373_v59 }
 0x26d   : > { %v1312_v24 = vmul.f32 0.3275911, %v5500_v35  ;;  %v2230_v32 = vmul.f32 1.442695, %v2140_v13  ;;  %v1563_v22 = vadd.f32 -1.4531521, %v1499_v37  ;;  %v5523_v54 = vadd.f32 %v1047_v39, %v6914_v5 }
 0x26e   : > { %v5520_v10 = vmul.f32 0.70710677, %v5505_v2  ;;  %v4086_v6 = vpop.eup %4085  ;;  %v1815_v3 = vadd.f32 -0.28449672, %v1751_v61  ;;  %v1817_v4 = vadd.f32 -0.28449672, %v1753_v28  ;;  %v1754_v23 = vmul.f32 %v5435_v55, %v1690_v25 }
 0x26f   : > { %v5527_v9 = vadd.f32 %v938_v49, %v4731_v62  ;;  %v2517_v58 = vsub.f32 0.0, %v2389_v38  ;;  %v1944_v57 = vadd.f32 0.2548296, %v1880_v27  ;;  %4093 = vpow2.f32 %v2226_v56 }
 0x270   : > { %6913 = vst [vmem:[#allocation21_spill] sm:$0xff] %v5520_v10  ;;  %v1565_v16 = vadd.f32 -1.4531521, %v1501_v46  ;;  %v2326_v13 = vmul.f32 %v4084_v29, %v2006_v30  ;;  %v1756_v37 = vmul.f32 %v5449_v44, %v1692_v40  ;;  %v2139_v51 = vmul.f32 %v2075_v15, %v5373_v59  ;;  %v6917_v46 = vld [vmem:[#allocation25_spill] sm:$0xff] }
 0x271   : > { %v1376_v8 = vadd.f32 1.0, %v1312_v24  ;;  %4095 = vpow2.f32 %v2230_v32  ;;  %v1627_v39 = vmul.f32 %v5487_v26, %v1563_v22  ;;  %v5533_v61 = vand.u32 2147483647, %v5520_v10 }
 0x272   : > { %v5536_v28 = vmul.f32 0.70710677, %v5523_v54  ;;  %v1879_v25 = vmul.f32 %v5412_v53, %v1815_v3  ;;  %v1881_v27 = vmul.f32 %v5420_v42, %v1817_v4  ;;  %v1818_v56 = vadd.f32 -0.28449672, %v1754_v23  ;;  %v1051_v23 = vpop.f32.mrf.mxu1 }
 0x273   : > { %v5541_v29 = vmul.f32 0.70710677, %v5527_v9  ;;  %vm2454_vm4 = vcmp.ge.f32.partialorder %v6917_v46, 0.0  ;;  %v2008_v59 = vmul.f32 %v5381_v41, %v1944_v57  ;;  %v5546_v49 = vmul.f32 0.5, %v5345_v33 }
 0x274   : > { %6915 = vst [vmem:[#allocation15_spill] sm:$0xff] %v5536_v28  ;;  %v1629_v30 = vmul.f32 %v5496_v18, %v1565_v16  ;;  %v2077_v40 = vsub.f32 0.0, %v5379_v45  ;;  %v4088_v15 = vpop.eup %4087  ;;  %v2390_v24 = vsub.f32 1.0, %v2326_v13  ;;  %v1820_v32 = vadd.f32 -0.28449672, %v1756_v37  ;;  %v1053_v52 = vpop.f32.mrf.mxu1 }
 0x275   : > { %6916 = vst [vmem:[#allocation44_spill] sm:$0xff] %v5541_v29  ;;  %6918 = vst [vmem:[#allocation25_spill] sm:$0xff] %v5546_v49  ;;  %v2228_v22 = vmul.f32 1.442695, %v2139_v51  ;;  %4097 = vrcp.f32 %v1376_v8  ;;  %v5550_v4 = vpop.eup %4089  ;;  %v2581_v3 = vsel %vm2453_vm3, %v2389_v38, %v2517_v58  ;;  %v1691_v31 = vadd.f32 1.4214138, %v1627_v39 }
 0x276   : > { %v1311_v41 = vmul.f32 0.3275911, %v5533_v61  ;;  %v5556_v33 = vand.u32 2147483647, %v5536_v28  ;;  %v4092_v16 = vpop.eup %4091  ;;  %v1943_v57 = vadd.f32 0.2548296, %v1879_v25  ;;  %v1882_v13 = vmul.f32 %v5435_v55, %v1818_v56 }
 0x277   : > { %v1945_v11 = vadd.f32 0.2548296, %v1881_v27  ;;  %v5560_v51 = vand.u32 2147483647, %v5541_v29  ;;  %v2328_v8 = vmul.f32 %v4086_v6, %v2008_v59  ;;  %v1693_v37 = vadd.f32 1.4214138, %v1629_v30 }
 0x278   : > { %v2141_v50 = vmul.f32 %v2077_v40, %v5379_v45  ;;  %v5564_v38 = vadd.f32 %v1051_v23, %v6887_v47  ;;  %v2645_v1 = vadd.f32 1.0, %v2581_v3  ;;  %v2518_v58 = vsub.f32 0.0, %v2390_v24  ;;  %v6920_v29 = vld [vmem:[#allocation19_spill] sm:$0xff]  ;;  %v940_v40 = vpop.f32.mrf.mxu0 }
 0x279   : > { %v1884_v39 = vmul.f32 %v5449_v44, %v1820_v32  ;;  %v1502_v28 = vmul.f32 1.0614054, %v5550_v4  ;;  %v1755_v25 = vmul.f32 %v5487_v26, %v1691_v31  ;;  %4099 = vpow2.f32 %v2228_v22 }
 0x27a   : > { %6919 = vst [vmem:[#allocation45_spill] sm:$0xff] %v5564_v38  ;;  %v1375_v27 = vadd.f32 1.0, %v1311_v41  ;;  %v1313_v56 = vmul.f32 0.3275911, %v5556_v33  ;;  %vm2456_vm5 = vcmp.ge.f32.partialorder %v6920_v29, 0.0  ;;  %v2007_v6 = vmul.f32 %v5412_v53, %v1943_v57 }
 0x27b   : > { %v2009_v45 = vmul.f32 %v5420_v42, %v1945_v11  ;;  %v1946_v59 = vadd.f32 0.2548296, %v1882_v13  ;;  %v1314_v30 = vmul.f32 0.3275911, %v5560_v51  ;;  %v2392_v23 = vsub.f32 1.0, %v2328_v8 }
 0x27c   : > { %v1757_v32 = vmul.f32 %v5496_v18, %v1693_v37  ;;  %v2232_v3 = vmul.f32 1.442695, %v2141_v50  ;;  %v5576_v31 = vmul.f32 0.70710677, %v5564_v38  ;;  %v4094_v22 = vpop.eup %4093  ;;  %v2582_v41 = vsel %vm2454_vm4, %v2390_v24, %v2518_v58 }
 0x27d   : > { %v1948_v10 = vadd.f32 0.2548296, %v1884_v39  ;;  %v1566_v34 = vadd.f32 -1.4531521, %v1502_v28  ;;  %v2078_v53 = vsub.f32 0.0, %v5447_v48  ;;  %4101 = vrcp.f32 %v1375_v27 }
 0x27e   : > { %v1819_v11 = vadd.f32 -0.28449672, %v1755_v25  ;;  %v1377_v42 = vadd.f32 1.0, %v1313_v56  ;;  %v5582_v57 = vadd.f32 %v940_v40, %v4744_v21  ;;  %v4096_v13 = vpop.eup %4095  ;;  %v2327_v8 = vmul.f32 %v4088_v15, %v2007_v6  ;;  %v6921_v15 = vld [vmem:[#allocation30_spill] sm:$0xff] }
 0x27f   : > { %v2329_v50 = vmul.f32 %v4092_v16, %v2009_v45  ;;  %v2010_v37 = vmul.f32 %v5435_v55, %v1946_v59  ;;  %v1378_v49 = vadd.f32 1.0, %v1314_v30  ;;  %v2520_v38 = vsub.f32 0.0, %v2392_v23  ;;  %v6922_v55 = vld [vmem:[#allocation14_spill] sm:$0xff] }
 0x280   : > { %v1821_v46 = vadd.f32 -0.28449672, %v1757_v32  ;;  %4103 = vpow2.f32 %v2232_v3  ;;  %v5586_v28 = vand.u32 2147483647, %v5576_v31  ;;  %v2646_v24 = vadd.f32 1.0, %v2582_v41  ;;  %v942_v41 = vpop.f32.mrf.mxu0 }
 0x281   : > { %v2012_v58 = vmul.f32 %v5449_v44, %v1948_v10  ;;  %v1630_v39 = vmul.f32 %v5550_v4, %v1566_v34  ;;  %v2142_v25 = vmul.f32 %v2078_v53, %v5447_v48  ;;  %vm2455_vm6 = vcmp.ge.f32.partialorder %v6921_v15, 0.0  ;;  %v3954_v15 = vld [vmem:[#allocation9 + $0x80] sm:$0xff]  }
 0x282   : > { %v5591_v27 = vpop.eup %4097  ;;  %vm2457_vm7 = vcmp.ge.f32.partialorder %v6922_v55, 0.0  ;;  %v1883_v16 = vmul.f32 %v5487_v26, %v1819_v11  ;;  %4105 = vrcp.f32 %v1377_v42  ;;  %v5597_v56 = vmul.f32 0.70710677, %v5582_v57 }
 0x283   : > { %v5600_v6 = vadd.f32 %v1053_v52, %v6914_v5  ;;  %v2391_v44 = vsub.f32 1.0, %v2327_v8  ;;  %v2393_v10 = vsub.f32 1.0, %v2329_v50  ;;  %v5602_v34 = vmul.f32 %v4094_v22, %v2010_v37  ;;  %v6923_v22 = vld [vmem:[#allocation23_spill] sm:$0xff]  ;;  %v6927_v8 = vld [vmem:[#allocation17_spill] sm:$0xff] }
 0x284   : > { %4107 = vrcp.f32 %v1378_v49  ;;  %v2584_v48 = vsel %vm2456_vm5, %v2392_v23, %v2520_v38  ;;  %v1885_v45 = vmul.f32 %v5496_v18, %v1821_v46  ;;  %v5608_v59 = vmul.f32 0.5, %v5405_v20 }
 0x285   : > { %v1316_v30 = vmul.f32 0.3275911, %v5586_v28  ;;  %v5611_v40 = vmul.f32 %v4096_v13, %v2012_v58  ;;  %v1694_v32 = vadd.f32 1.4214138, %v1630_v39  ;;  %v2234_v52 = vmul.f32 1.442695, %v2142_v25 }
 0x286   : > { %v1504_v3 = vmul.f32 1.0614054, %v5591_v27  ;;  %v5615_v53 = vmul.f32 %v2645_v1, %v6923_v22  ;;  %v1947_v49 = vadd.f32 0.2548296, %v1883_v16  ;;  %v5618_v29 = vand.u32 2147483647, %v5597_v56  ;;  %v4100_v20 = vpop.eup %4099  ;;  %v1055_v16 = vpop.f32.mrf.mxu1 }
 0x287   : > { %v5621_v38 = vmul.f32 0.70710677, %v5600_v6  ;;  %v5624_v23 = vmul.f32 %v2646_v24, %v5408_v12  ;;  %v2519_v11 = vsub.f32 0.0, %v2391_v44  ;;  %v2521_v42 = vsub.f32 0.0, %v2393_v10  ;;  %v6928_v1 = vld [vmem:[#allocation22_spill] sm:$0xff] }
 0x288   : > { %6924 = vst [vmem:[#allocation19_spill] sm:$0xff] %v5615_v53  ;;  %v2394_v13 = vsub.f32 1.0, %v5602_v34  ;;  %vm2458_vm8 = vcmp.ge.f32.partialorder %v6927_v8, 0.0  ;;  %v2648_v50 = vadd.f32 1.0, %v2584_v48  ;;  %vm2460_vm9 = vcmp.ge.f32.partialorder %v6928_v1, 0.0  ;;  %v3952_v22 = vld [vmem:[#allocation9 + $0xc0] sm:$0xff]  }
 0x289   : > { %6925 = vst [vmem:[#allocation30_spill] sm:$0xff] %v5621_v38  ;;  %6926 = vst [vmem:[#allocation14_spill] sm:$0xff] %v5624_v23  ;;  %v1949_v37 = vadd.f32 0.2548296, %v1885_v45  ;;  %v1380_v46 = vadd.f32 1.0, %v1316_v30  ;;  %v5630_v58 = vadd.f32 %v942_v41, %v4731_v62  ;;  %v2396_v39 = vsub.f32 1.0, %v5611_v40  ;;  %3725 = vmatprep.subr.bf16.mxu1 %v3952_v22 }
 0x28a   : > { %v1758_v25 = vmul.f32 %v5550_v4, %v1694_v32  ;;  %v5635_v12 = vmul.f32 0.5, %v5462_v63  ;;  %v1568_v24 = vadd.f32 -1.4531521, %v1504_v3  ;;  %v2011_v34 = vmul.f32 %v5487_v26, %v1947_v49  ;;  %v5642_v30 = vpop.eup %4101  ;;  %v3951_v41 = vld [vmem:[#allocation9 + $0x40] sm:$0xff]   ;;  %3726 = vmatpush3.bf16.msra.mxu1 %v3954_v15 }
 0x28b   : > { %4109 = vpow2.f32 %v2234_v52  ;;  %v1315_v48 = vmul.f32 0.3275911, %v5618_v29  ;;  %v5640_v45 = vand.u32 2147483647, %v5621_v38  ;;  %v2583_v40 = vsel %vm2455_vm6, %v2391_v44, %v2519_v11  ;;  %v3953_v23 = vld [vmem:[#allocation9] sm:$0xff]   ;;  %3661 = vmatprep.subr.bf16.mxu0 %v3951_v41 }
 0x28c   : > { %6929 = vst [vmem:[#allocation23_spill] sm:$0xff] %v5635_v12  ;;  %v2585_v32 = vsel %vm2457_vm7, %v2393_v10, %v2521_v42  ;;  %v2522_v63 = vsub.f32 0.0, %v2394_v13  ;;  %v2080_v3 = vsub.f32 0.0, %v5500_v35  ;;  %v2013_v26 = vmul.f32 %v5496_v18, %v1949_v37  ;;  %3662 = vmatpush3.bf16.msra.mxu0 %v3953_v23 }
 0x28d   : > { %4111 = vrcp.f32 %v1380_v46  ;;  %v5651_v52 = vmul.f32 0.70710677, %v5630_v58  ;;  %v5654_v49 = vadd.f32 %v1055_v16, %v6887_v47  ;;  %v4104_v44 = vpop.eup %4103  ;;  %v5657_v55 = vmul.f32 %v2648_v50, %v5418_v19 }
 0x28e   : > { %v2524_v10 = vsub.f32 0.0, %v2396_v39  ;;  %v1822_v11 = vadd.f32 -0.28449672, %v1758_v25  ;;  %v1632_v42 = vmul.f32 %v5591_v27, %v1568_v24  ;;  %v2331_v18 = vmul.f32 %v4100_v20, %v2011_v34 }
 0x28f   : > { %6930 = vst [vmem:[#allocation17_spill] sm:$0xff] %v5657_v55  ;;  %v1503_v37 = vmul.f32 1.0614054, %v5642_v30  ;;  %v1379_v46 = vadd.f32 1.0, %v1315_v48  ;;  %v1317_v53 = vmul.f32 0.3275911, %v5640_v45  ;;  %v5662_v16 = vpop.eup %4105  ;;  %v2144_v19 = vmul.f32 %v2080_v3, %v5500_v35 }
 0x290   : > { %v2647_v38 = vadd.f32 1.0, %v2583_v40  ;;  %v2649_v12 = vadd.f32 1.0, %v2585_v32  ;;  %v5666_v50 = vmul.f32 0.5, %v5505_v2  ;;  %v2586_v20 = vsel %vm2458_vm8, %v2394_v13, %v2522_v63  ;;  %v944_v63 = vpop.f32.mrf.mxu0 }
 0x291   : > { %v5668_v25 = vpop.eup %4107  ;;  %v2333_v24 = vmul.f32 %v4104_v44, %v2013_v26  ;;  %v5673_v34 = vand.u32 2147483647, %v5651_v52  ;;  %v5676_v23 = vmul.f32 0.70710677, %v5654_v49  ;;  %v2588_v48 = vsel %vm2460_vm9, %v2396_v39, %v2524_v10 }
 0x292   : > { %vm2459_vm10 = vcmp.ge.f32.partialorder %v5357_v0, 0.0  ;;  %v1886_v35 = vmul.f32 %v5550_v4, %v1822_v11  ;;  %v1696_v2 = vadd.f32 1.4214138, %v1632_v42  ;;  %v2079_v40 = vsub.f32 0.0, %v5533_v61 }
 0x293   : > { %v2395_v32 = vsub.f32 1.0, %v2331_v18  ;;  %v1567_v8 = vadd.f32 -1.4531521, %v1503_v37  ;;  %4113 = vrcp.f32 %v1379_v46  ;;  %v1381_v13 = vadd.f32 1.0, %v1317_v53 }
 0x294   : > { %v5684_v3 = vmul.f32 %v2647_v38, %v5444_v7  ;;  %vm2461_vm11 = vcmp.ge.f32.partialorder %v5362_v43, 0.0  ;;  %v2238_v41 = vmul.f32 1.442695, %v2144_v19  ;;  %v1505_v1 = vmul.f32 1.0614054, %v5662_v16 }
 0x295   : > { %v1506_v39 = vmul.f32 1.0614054, %v5668_v25  ;;  %v2650_v22 = vadd.f32 1.0, %v2586_v20  ;;  %v2397_v26 = vsub.f32 1.0, %v2333_v24  ;;  %v1318_v15 = vmul.f32 0.3275911, %v5673_v34 }
 0x296   : > { %6931 = vst [vmem:[#allocation22_spill] sm:$0xff] %v5684_v3  ;;  %v5691_v44 = vand.u32 2147483647, %v5676_v23  ;;  %v2652_v10 = vadd.f32 1.0, %v2588_v48  ;;  %v1950_v53 = vadd.f32 0.2548296, %v1886_v35  ;;  %v1760_v11 = vmul.f32 %v5591_v27, %v1696_v2 }
 0x297   : > { %v5695_v7 = vadd.f32 %v944_v63, %v4744_v21  ;;  %v2523_v38 = vsub.f32 0.0, %v2395_v32  ;;  %v1631_v42 = vmul.f32 %v5642_v30, %v1567_v8  ;;  %v2143_v18 = vmul.f32 %v2079_v40, %v5533_v61 }
 0x298   : > { %4115 = vrcp.f32 %v1381_v13  ;;  %v4110_v37 = vpop.eup %4109  ;;  %v5700_v46 = vmul.f32 %v2649_v12, %v5468_v60  ;;  %v1569_v19 = vadd.f32 -1.4531521, %v1505_v1  ;;  %v2081_v20 = vsub.f32 0.0, %v5556_v33 }
 0x299   : > { %v1570_v24 = vadd.f32 -1.4531521, %v1506_v39  ;;  %v2525_v48 = vsub.f32 0.0, %v2397_v26  ;;  %4117 = vpow2.f32 %v2238_v41  ;;  %v1382_v35 = vadd.f32 1.0, %v1318_v15 }
 0x29a   : > { %6932 = vst [vmem:[#allocation46_spill] sm:$0xff] %v5700_v46  ;;  %v1320_v2 = vmul.f32 0.3275911, %v5691_v44  ;;  %v5704_v63 = vpop.eup %4111  ;;  %v5707_v8 = vmul.f32 %v2650_v22, %v5481_v14  ;;  %v2014_v61 = vmul.f32 %v5550_v4, %v1950_v53  ;;  %v1824_v40 = vadd.f32 -0.28449672, %v1760_v11 }
 0x29b   : > { %v5711_v60 = vmul.f32 0.70710677, %v5695_v7  ;;  %v5714_v12 = vmul.f32 %v2652_v10, %v5484_v17  ;;  %v2587_v13 = vsel %vm2459_vm10, %v2395_v32, %v2523_v38  ;;  %v1695_v41 = vadd.f32 1.4214138, %v1631_v42 }
 0x29c   : > { %6933 = vst [vmem:[#allocation47_spill] sm:$0xff] %v5707_v8  ;;  %v2236_v1 = vmul.f32 1.442695, %v2143_v18  ;;  %v1633_v39 = vmul.f32 %v5662_v16, %v1569_v19  ;;  %v2145_v15 = vmul.f32 %v2081_v20, %v5556_v33  ;;  %v1634_v14 = vmul.f32 %v5668_v25, %v1570_v24  ;;  %v1057_v20 = vpop.f32.mrf.mxu1 }
 0x29d   : > { %6934 = vst [vmem:[#allocation48_spill] sm:$0xff] %v5714_v12  ;;  %v2082_v4 = vsub.f32 0.0, %v5560_v51  ;;  %v2589_v22 = vsel %vm2461_vm11, %v2397_v26, %v2525_v48  ;;  %v1508_v53 = vmul.f32 1.0614054, %v5704_v63  ;;  %4119 = vrcp.f32 %v1382_v35  ;;  %v948_v35 = vpop.f32.mrf.mxu0 }
 0x29e   : > { %v1384_v17 = vadd.f32 1.0, %v1320_v2  ;;  %v2334_v10 = vmul.f32 %v4110_v37, %v2014_v61  ;;  %v1888_v0 = vmul.f32 %v5591_v27, %v1824_v40  ;;  %v5727_v32 = vmul.f32 0.5, %v5523_v54 }
 0x29f   : > { %v5730_v11 = vand.u32 2147483647, %v5711_v60  ;;  %v2651_v33 = vadd.f32 1.0, %v2587_v13  ;;  %v1759_v38 = vmul.f32 %v5642_v30, %v1695_v41  ;;  %4121 = vpow2.f32 %v2236_v1  ;;  %v6936_v41 = vld [vmem:[#allocation43_spill] sm:$0xff] }
 0x2a0   : > { %v5734_v43 = vmul.f32 0.5, %v5527_v9  ;;  %v5736_v26 = vpop.eup %4113  ;;  %v2653_v42 = vadd.f32 1.0, %v2589_v22  ;;  %v1697_v18 = vadd.f32 1.4214138, %v1633_v39  ;;  %v1698_v37 = vadd.f32 1.4214138, %v1634_v14 }
 0x2a1   : > { %v2146_v19 = vmul.f32 %v2082_v4, %v5560_v51  ;;  %vm2462_vm12 = vcmp.ge.f32.partialorder %v5427_v36, 0.0  ;;  %v2240_v54 = vmul.f32 1.442695, %v2145_v15  ;;  %v1572_v24 = vadd.f32 -1.4531521, %v1508_v53  ;;  %v6935_v9 = vld [vmem:[#allocation45_spill] sm:$0xff] }
 0x2a2   : > { %v2084_v48 = vsub.f32 0.0, %v5586_v28  ;;  %4123 = vrcp.f32 %v1384_v17  ;;  %v2398_v2 = vsub.f32 1.0, %v2334_v10  ;;  %v1952_v61 = vadd.f32 0.2548296, %v1888_v0  ;;  %v6938_v10 = vld [vmem:[#allocation25_spill] sm:$0xff] }
 0x2a3   : > { %v5742_v40 = vmul.f32 0.5, %v6935_v9  ;;  %v1319_v13 = vmul.f32 0.3275911, %v5730_v11  ;;  %v5746_v1 = vmul.f32 %v2651_v33, %v6936_v41  ;;  %v1823_v51 = vadd.f32 -0.28449672, %v1759_v38 }
 0x2a4   : > { %v1507_v39 = vmul.f32 1.0614054, %v5736_v26  ;;  %v5750_v15 = vadd.f32 %v1057_v20, %v6914_v5  ;;  %v1761_v4 = vmul.f32 %v5662_v16, %v1697_v18  ;;  %v1762_v22 = vmul.f32 %v5668_v25, %v1698_v37 }
 0x2a5   : > { %6937 = vst [vmem:[#allocation45_spill] sm:$0xff] %v5746_v1  ;;  %v5752_v14 = vpop.eup %4115  ;;  %v2242_v53 = vmul.f32 1.442695, %v2146_v19  ;;  %v5757_v17 = vadd.f32 %v948_v35, %v4731_v62  ;;  %v5760_v0 = vmul.f32 %v2653_v42, %v6938_v10  ;;  %4125 = vpow2.f32 %v2240_v54 }
 0x2a6   : > { %v1636_v33 = vmul.f32 %v5704_v63, %v1572_v24  ;;  %v2148_v38 = vmul.f32 %v2084_v48, %v5586_v28  ;;  %v4118_v20 = vpop.eup %4117  ;;  %v2526_v9 = vsub.f32 0.0, %v2398_v2  ;;  %v2016_v41 = vmul.f32 %v5591_v27, %v1952_v61 }
 0x2a7   : > { %6939 = vst [vmem:[#allocation43_spill] sm:$0xff] %v5760_v0  ;;  %v2083_v18 = vsub.f32 0.0, %v5618_v29  ;;  %v1383_v12 = vadd.f32 1.0, %v1319_v13  ;;  %v1887_v37 = vmul.f32 %v5642_v30, %v1823_v51  ;;  %v1571_v19 = vadd.f32 -1.4531521, %v1507_v39 }
 0x2a8   : > { %v1509_v35 = vmul.f32 1.0614054, %v5752_v14  ;;  %v5769_v42 = vmul.f32 0.70710677, %v5750_v15  ;;  %v1825_v54 = vadd.f32 -0.28449672, %v1761_v4  ;;  %4127 = vpow2.f32 %v2242_v53 }
 0x2a9   : > { %v1826_v10 = vadd.f32 -0.28449672, %v1762_v22  ;;  %v5772_v28 = vmul.f32 0.70710677, %v5757_v17  ;;  %v1700_v24 = vadd.f32 1.4214138, %v1636_v33  ;;  %v2590_v51 = vsel %vm2462_vm12, %v2398_v2, %v2526_v9 }
 0x2aa   : > { %6940 = vst [vmem:[#allocation25_spill] sm:$0xff] %v5769_v42  ;;  %v2246_v48 = vmul.f32 1.442695, %v2148_v38  ;;  %v5775_v27 = vmul.f32 0.5, %v5582_v57  ;;  %v5778_v61 = vmul.f32 0.5, %v5600_v6  ;;  %v5780_v13 = vpop.eup %4119  ;;  %v2336_v39 = vmul.f32 %v4118_v20, %v2016_v41 }
 0x2ab   : > { %6941 = vst [vmem:[#allocation49_spill] sm:$0xff] %v5772_v28  ;;  %v2147_v4 = vmul.f32 %v2083_v18, %v5618_v29  ;;  %4129 = vrcp.f32 %v1383_v12  ;;  %v1951_v22 = vadd.f32 0.2548296, %v1887_v37  ;;  %v1635_v53 = vmul.f32 %v5736_v26, %v1571_v19  ;;  %v6942_v29 = vld [vmem:[#allocation41_spill] sm:$0xff] }
 0x2ac   : > { %v1573_v33 = vadd.f32 -1.4531521, %v1509_v35  ;;  %v5787_v38 = vand.u32 2147483647, %v5769_v42  ;;  %v4122_v57 = vpop.eup %4121  ;;  %v1889_v6 = vmul.f32 %v5662_v16, %v1825_v54  ;;  %v1890_v8 = vmul.f32 %v5668_v25, %v1826_v10 }
 0x2ad   : > { %v2085_v55 = vsub.f32 0.0, %v5640_v45  ;;  %v5793_v36 = vand.u32 2147483647, %v5772_v28  ;;  %v2654_v2 = vadd.f32 1.0, %v2590_v51  ;;  %vm2464_vm13 = vcmp.ge.f32.partialorder %v6942_v29, 0.0 }
 0x2ae   : > { %v1764_v12 = vmul.f32 %v5704_v63, %v1700_v24  ;;  %4131 = vpow2.f32 %v2246_v48  ;;  %v1510_v20 = vmul.f32 1.0614054, %v5780_v13  ;;  %v2400_v41 = vsub.f32 1.0, %v2336_v39  ;;  %v1061_v24 = vpop.f32.mrf.mxu1 }
 0x2af   : > { %v5798_v9 = vpop.eup %4123  ;;  %v2244_v18 = vmul.f32 1.442695, %v2147_v4  ;;  %v5801_v37 = vmul.f32 0.5, %v5630_v58  ;;  %v2086_v19 = vsub.f32 0.0, %v5673_v34  ;;  %v2015_v35 = vmul.f32 %v5642_v30, %v1951_v22  ;;  %v950_v30 = vpop.f32.mrf.mxu0 }
 0x2b0   : > { %v1699_v54 = vadd.f32 1.4214138, %v1635_v53  ;;  %v1637_v10 = vmul.f32 %v5752_v14, %v1573_v33  ;;  %v1321_v51 = vmul.f32 0.3275911, %v5787_v38  ;;  %v1953_v48 = vadd.f32 0.2548296, %v1889_v6 }
 0x2b1   : > { %6943 = vst [vmem:[#allocation41_spill] sm:$0xff] %v5801_v37  ;;  %v1954_v0 = vadd.f32 0.2548296, %v1890_v8  ;;  %v2149_v1 = vmul.f32 %v2085_v55, %v5640_v45  ;;  %v1322_v39 = vmul.f32 0.3275911, %v5793_v36  ;;  %v5810_v4 = vmul.f32 %v2654_v2, %v5608_v59  ;;  %v1063_v2 = vpop.f32.mrf.mxu1 }
 0x2b2   : > { %v1828_v58 = vadd.f32 -0.28449672, %v1764_v12  ;;  %v1574_v46 = vadd.f32 -1.4531521, %v1510_v20  ;;  %v1512_v3 = vmul.f32 1.0614054, %v5798_v9  ;;  %v4126_v22 = vpop.eup %4125  ;;  %4133 = vpow2.f32 %v2244_v18 }
 0x2b3   : > { %6944 = vst [vmem:[#allocation50_spill] sm:$0xff] %v5810_v4  ;;  %v2528_v53 = vsub.f32 0.0, %v2400_v41  ;;  %v2150_v33 = vmul.f32 %v2086_v19, %v5673_v34  ;;  %v5815_v6 = vadd.f32 %v1061_v24, %v6887_v47  ;;  %v5817_v8 = vmul.f32 %v4122_v57, %v2015_v35 }
 0x2b4   : > { %v1763_v45 = vmul.f32 %v5736_v26, %v1699_v54  ;;  %v1701_v55 = vadd.f32 1.4214138, %v1637_v10  ;;  %v1385_v59 = vadd.f32 1.0, %v1321_v51  ;;  %v2017_v12 = vmul.f32 %v5662_v16, %v1953_v48 }
 0x2b5   : > { %v2248_v20 = vmul.f32 1.442695, %v2149_v1  ;;  %v1386_v4 = vadd.f32 1.0, %v1322_v39  ;;  %v5822_v28 = vadd.f32 %v950_v30, %v4744_v21  ;;  %v4128_v18 = vpop.eup %4127  ;;  %v2018_v34 = vmul.f32 %v5668_v25, %v1954_v0  ;;  %v6946_v25 = vld [vmem:[#allocation21_spill] sm:$0xff] }
 0x2b6   : > { %v1892_v19 = vmul.f32 %v5704_v63, %v1828_v58  ;;  %v1638_v57 = vmul.f32 %v5780_v13, %v1574_v46  ;;  %v1576_v35 = vadd.f32 -1.4531521, %v1512_v3  ;;  %v2592_v54 = vsel %vm2464_vm13, %v2400_v41, %v2528_v53 }
 0x2b7   : > { %v2250_v10 = vmul.f32 1.442695, %v2150_v33  ;;  %v5830_v51 = vmul.f32 0.70710677, %v5815_v6  ;;  %v5833_v16 = vadd.f32 %v1063_v2, %v6914_v5  ;;  %v2399_v24 = vsub.f32 1.0, %v5817_v8 }
 0x2b8   : > { %v5835_v1 = vpop.eup %4129  ;;  %vm2463_vm14 = vcmp.ge.f32.partialorder %v6946_v25, 0.0  ;;  %v1827_v0 = vadd.f32 -0.28449672, %v1763_v45  ;;  %v1765_v46 = vmul.f32 %v5752_v14, %v1701_v55  ;;  %4135 = vrcp.f32 %v1385_v59 }
 0x2b9   : > { %6945 = vst [vmem:[#allocation51_spill] sm:$0xff] %v5830_v51  ;;  %v2337_v3 = vmul.f32 %v4126_v22, %v2017_v12  ;;  %v2088_v29 = vsub.f32 0.0, %v5691_v44  ;;  %4137 = vrcp.f32 %v1386_v4  ;;  %v5842_v41 = vmul.f32 0.70710677, %v5822_v28  ;;  %v6950_v12 = vld [vmem:[#allocation15_spill] sm:$0xff] }
 0x2ba   : > { %v2338_v48 = vmul.f32 %v4128_v18, %v2018_v34  ;;  %v1956_v39 = vadd.f32 0.2548296, %v1892_v19  ;;  %v1702_v58 = vadd.f32 1.4214138, %v1638_v57  ;;  %v1640_v30 = vmul.f32 %v5798_v9, %v1576_v35  ;;  %v952_v19 = vpop.f32.mrf.mxu0 }
 0x2bb   : > { %6947 = vst [vmem:[#allocation21_spill] sm:$0xff] %v5842_v41  ;;  %v4132_v53 = vpop.eup %4131  ;;  %4139 = vpow2.f32 %v2248_v20  ;;  %v1511_v33 = vmul.f32 1.0614054, %v5835_v1  ;;  %v5847_v8 = vand.u32 2147483647, %v5830_v51  ;;  %v5852_v45 = vadd.f32 1.0, %v2592_v54 }
 0x2bc   : > { %v5850_v22 = vmul.f32 0.70710677, %v5833_v16  ;;  %v1891_v4 = vmul.f32 %v5736_v26, %v1827_v0  ;;  %v1829_v55 = vadd.f32 -0.28449672, %v1765_v46  ;;  %v5856_v59 = vmul.f32 0.5, %v5654_v49  ;;  %v6951_v20 = vld [vmem:[#allocation44_spill] sm:$0xff] }
 0x2bd   : > { %v2527_v2 = vsub.f32 0.0, %v2399_v24  ;;  %vm2465_vm15 = vcmp.ge.f32.partialorder %v6950_v12, 0.0  ;;  %vm2466_vm0 = vcmp.ge.f32.partialorder %v6951_v20, 0.0  ;;  %4141 = vpow2.f32 %v2250_v10 }
 0x2be   : > { %6948 = vst [vmem:[#allocation52_spill] sm:$0xff] %v5850_v22  ;;  %6949 = vst [vmem:[#allocation53_spill] sm:$0xff] %v5856_v59  ;;  %v2152_v18 = vmul.f32 %v2088_v29, %v5691_v44  ;;  %v5862_v34 = vand.u32 2147483647, %v5842_v41  ;;  %v2401_v57 = vsub.f32 1.0, %v2337_v3  ;;  %v2402_v35 = vsub.f32 1.0, %v2338_v48 }
 0x2bf   : > { %v1766_v54 = vmul.f32 %v5780_v13, %v1702_v58  ;;  %v1704_v0 = vadd.f32 1.4214138, %v1640_v30  ;;  %v2020_v49 = vmul.f32 %v5704_v63, %v1956_v39  ;;  %v1575_v46 = vadd.f32 -1.4531521, %v1511_v33  ;;  %v4134_v10 = vpop.eup %4133  ;;  %v1065_v30 = vpop.f32.mrf.mxu1 }
 0x2c0   : > { %v1324_v51 = vmul.f32 0.3275911, %v5847_v8  ;;  %v5868_v42 = vand.u32 2147483647, %v5850_v22  ;;  %v1955_v59 = vadd.f32 0.2548296, %v1891_v4  ;;  %v1893_v44 = vmul.f32 %v5752_v14, %v1829_v55 }
 0x2c1   : > { %v5872_v29 = vmul.f32 0.5, %v5695_v7  ;;  %v5875_v3 = vadd.f32 %v952_v19, %v4731_v62  ;;  %v2591_v48 = vsel %vm2463_vm14, %v2399_v24, %v2527_v2  ;;  %v2254_v63 = vmul.f32 1.442695, %v2152_v18 }
 0x2c2   : > { %v2087_v39 = vsub.f32 0.0, %v5730_v11  ;;  %v1323_v58 = vmul.f32 0.3275911, %v5862_v34  ;;  %v2529_v33 = vsub.f32 0.0, %v2401_v57  ;;  %v2530_v22 = vsub.f32 0.0, %v2402_v35 }
 0x2c3   : > { %6952 = vst [vmem:[#allocation15_spill] sm:$0xff] %v5872_v29  ;;  %v1830_v4 = vadd.f32 -0.28449672, %v1766_v54  ;;  %v1768_v55 = vmul.f32 %v5798_v9, %v1704_v0  ;;  %v2340_v41 = vmul.f32 %v4132_v53, %v2020_v49  ;;  %v1639_v7 = vmul.f32 %v5835_v1, %v1575_v46 }
 0x2c4   : > { %v1388_v29 = vadd.f32 1.0, %v1324_v51  ;;  %v1325_v19 = vmul.f32 0.3275911, %v5868_v42  ;;  %v2019_v25 = vmul.f32 %v5736_v26, %v1955_v59  ;;  %v1957_v24 = vadd.f32 0.2548296, %v1893_v44  ;;  %v954_v44 = vpop.f32.mrf.mxu0 }
 0x2c5   : > { %v5886_v2 = vmul.f32 0.70710677, %v5875_v3  ;;  %v5889_v18 = vadd.f32 %v1065_v30, %v6887_v47  ;;  %v5891_v37 = vpop.eup %4135  ;;  %v2655_v54 = vadd.f32 1.0, %v2591_v48  ;;  %4143 = vpow2.f32 %v2254_v63 }
 0x2c6   : > { %v2151_v53 = vmul.f32 %v2087_v39, %v5730_v11  ;;  %v1387_v0 = vadd.f32 1.0, %v1323_v58  ;;  %v5894_v49 = vpop.eup %4137  ;;  %v2593_v51 = vsel %vm2465_vm15, %v2401_v57, %v2529_v33  ;;  %v2594_v26 = vsel %vm2466_vm0, %v2402_v35, %v2530_v22 }
 0x2c7   : > { %v1894_v59 = vmul.f32 %v5780_v13, %v1830_v4  ;;  %v1832_v46 = vadd.f32 -0.28449672, %v1768_v55  ;;  %v2404_v30 = vsub.f32 1.0, %v2340_v41  ;;  %vm2468_vm1 = vcmp.ge.f32.partialorder %v5576_v31, 0.0 }
 0x2c8   : > { %v1703_v48 = vadd.f32 1.4214138, %v1639_v7  ;;  %4145 = vrcp.f32 %v1388_v29  ;;  %v1389_v63 = vadd.f32 1.0, %v1325_v19  ;;  %v4140_v11 = vpop.eup %4139  ;;  %v2339_v39 = vmul.f32 %v4134_v10, %v2019_v25 }
 0x2c9   : > { %v2021_v58 = vmul.f32 %v5752_v14, %v1957_v24  ;;  %v5904_v12 = vand.u32 2147483647, %v5886_v2  ;;  %v5907_v20 = vmul.f32 0.70710677, %v5889_v18  ;;  %v1513_v22 = vmul.f32 1.0614054, %v5891_v37 }
 0x2ca   : > { %v1514_v57 = vmul.f32 1.0614054, %v5894_v49  ;;  %4147 = vrcp.f32 %v1387_v0  ;;  %v5912_v41 = vadd.f32 %v954_v44, %v4744_v21  ;;  %v4142_v35 = vpop.eup %4141  ;;  %v2657_v29 = vadd.f32 1.0, %v2593_v51  ;;  %v6953_v44 = vld [vmem:[#allocation23_spill] sm:$0xff] }
 0x2cb   : > { %v1958_v33 = vadd.f32 0.2548296, %v1894_v59  ;;  %v1896_v10 = vmul.f32 %v5798_v9, %v1832_v46  ;;  %v2252_v14 = vmul.f32 1.442695, %v2151_v53  ;;  %v2658_v4 = vadd.f32 1.0, %v2594_v26 }
 0x2cc   : > { %v2532_v55 = vsub.f32 0.0, %v2404_v30  ;;  %v1767_v7 = vmul.f32 %v5835_v1, %v1703_v48  ;;  %4149 = vrcp.f32 %v1389_v63  ;;  %v2403_v19 = vsub.f32 1.0, %v2339_v39 }
 0x2cd   : > { %vm2467_vm2 = vcmp.ge.f32.partialorder %v5597_v56, 0.0  ;;  %v2341_v25 = vmul.f32 %v4140_v11, %v2021_v58  ;;  %v1326_v24 = vmul.f32 0.3275911, %v5904_v12  ;;  %v5919_v0 = vand.u32 2147483647, %v5907_v20 }
 0x2ce   : > { %v5923_v51 = vmul.f32 %v5852_v45, %v6953_v44  ;;  %v1577_v59 = vadd.f32 -1.4531521, %v1513_v22  ;;  %v1578_v53 = vadd.f32 -1.4531521, %v1514_v57  ;;  %v5926_v26 = vmul.f32 0.70710677, %v5912_v41 }
 0x2cf   : > { %v5929_v46 = vmul.f32 %v2655_v54, %v5666_v50  ;;  %v2022_v48 = vmul.f32 %v5780_v13, %v1958_v33  ;;  %v1960_v63 = vadd.f32 0.2548296, %v1896_v10  ;;  %v2089_v11 = vsub.f32 0.0, %v5787_v38  ;;  %v6958_v45 = vld [vmem:[#allocation30_spill] sm:$0xff]  ;;  %v1067_v33 = vpop.f32.mrf.mxu1 }
 0x2d0   : > { %6954 = vst [vmem:[#allocation44_spill] sm:$0xff] %v5923_v51  ;;  %v5934_v39 = vmul.f32 %v2657_v29, %v5727_v32  ;;  %v5937_v58 = vmul.f32 %v2658_v4, %v5734_v43  ;;  %vm2469_vm3 = vcmp.ge.f32.partialorder %v6958_v45, 0.0  ;;  %v1831_v22 = vadd.f32 -0.28449672, %v1767_v7 }
 0x2d1   : > { %6955 = vst [vmem:[#allocation23_spill] sm:$0xff] %v5929_v46  ;;  %4151 = vpow2.f32 %v2252_v14  ;;  %v2596_v57 = vsel %vm2468_vm1, %v2404_v30, %v2532_v55  ;;  %v2405_v50 = vsub.f32 1.0, %v2341_v25  ;;  %v1390_v54 = vadd.f32 1.0, %v1326_v24 }
 0x2d2   : > { %6956 = vst [vmem:[#allocation54_spill] sm:$0xff] %v5934_v39  ;;  %6957 = vst [vmem:[#allocation55_spill] sm:$0xff] %v5937_v58  ;;  %v1328_v13 = vmul.f32 0.3275911, %v5919_v0  ;;  %v2531_v10 = vsub.f32 0.0, %v2403_v19  ;;  %v1641_v44 = vmul.f32 %v5891_v37, %v1577_v59  ;;  %v1642_v32 = vmul.f32 %v5894_v49, %v1578_v53  ;;  %v4144_v29 = vpop.eup %4143  ;;  %v6972_v39 = vld [vmem:[#allocation49_spill] sm:$0xff] }
 0x2d3   : > { %v5946_v43 = vand.u32 2147483647, %v5926_v26  ;;  %v2342_v4 = vmul.f32 %v4142_v35, %v2022_v48  ;;  %v2024_v14 = vmul.f32 %v5798_v9, %v1960_v63  ;;  %v2153_v31 = vmul.f32 %v2089_v11, %v5787_v38 }
 0x2d4   : > { %v2090_v30 = vsub.f32 0.0, %v5793_v36  ;;  %v2660_v55 = vadd.f32 1.0, %v2596_v57  ;;  %v1895_v7 = vmul.f32 %v5835_v1, %v1831_v22  ;;  %v5953_v25 = vmul.f32 0.5, %v5750_v15 }
 0x2d5   : > { %v5956_v24 = vadd.f32 %v1067_v33, %v6914_v5  ;;  %v5958_v59 = vpop.eup %4145  ;;  %v2533_v53 = vsub.f32 0.0, %v2405_v50  ;;  %v5961_v35 = vmul.f32 0.5, %v5757_v17  ;;  %4153 = vrcp.f32 %v1390_v54 }
 0x2d6   : > { %v1392_v9 = vadd.f32 1.0, %v1328_v13  ;;  %v2595_v38 = vsel %vm2467_vm2, %v2403_v19, %v2531_v10  ;;  %v1705_v48 = vadd.f32 1.4214138, %v1641_v44  ;;  %v1706_v63 = vadd.f32 1.4214138, %v1642_v32 }
 0x2d7   : > { %v1327_v11 = vmul.f32 0.3275911, %v5946_v43  ;;  %v5966_v15 = vpop.eup %4147  ;;  %v2406_v22 = vsub.f32 1.0, %v2342_v4  ;;  %vm2470_vm4 = vcmp.ge.f32.partialorder %v5651_v52, 0.0  ;;  %v2344_v57 = vmul.f32 %v4144_v29, %v2024_v14 }
 0x2d8   : > { %v2256_v33 = vmul.f32 1.442695, %v2153_v31  ;;  %v2154_v58 = vmul.f32 %v2090_v30, %v5793_v36  ;;  %v5971_v17 = vmul.f32 %v2660_v55, %v5742_v40  ;;  %v1959_v54 = vadd.f32 0.2548296, %v1895_v7 }
 0x2d9   : > { %v1516_v56 = vmul.f32 1.0614054, %v5958_v59  ;;  %v5975_v19 = vmul.f32 0.70710677, %v5956_v24  ;;  %v5977_v13 = vpop.eup %4149  ;;  %v2659_v10 = vadd.f32 1.0, %v2595_v38  ;;  %v2597_v44 = vsel %vm2469_vm3, %v2405_v50, %v2533_v53  ;;  %v958_v53 = vpop.f32.mrf.mxu0 }
 0x2da   : > { %6959 = vst [vmem:[#allocation30_spill] sm:$0xff] %v5971_v17  ;;  %v2092_v32 = vsub.f32 0.0, %v5847_v8  ;;  %4155 = vrcp.f32 %v1392_v9  ;;  %vm2472_vm5 = vcmp.ge.f32.partialorder %v5676_v23, 0.0  ;;  %v1769_v40 = vmul.f32 %v5891_v37, %v1705_v48 }
 0x2db   : > { %6960 = vst [vmem:[#allocation56_spill] sm:$0xff] %v5975_v19  ;;  %v1770_v36 = vmul.f32 %v5894_v49, %v1706_v63  ;;  %v1515_v29 = vmul.f32 1.0614054, %v5966_v15  ;;  %v1391_v4 = vadd.f32 1.0, %v1327_v11  ;;  %v2408_v14 = vsub.f32 1.0, %v2344_v57 }
 0x2dc   : > { %4157 = vpow2.f32 %v2256_v33  ;;  %v2258_v31 = vmul.f32 1.442695, %v2154_v58  ;;  %v5987_v30 = vand.u32 2147483647, %v5975_v19  ;;  %v2534_v45 = vsub.f32 0.0, %v2406_v22 }
 0x2dd   : > { %v2023_v50 = vmul.f32 %v5835_v1, %v1959_v54  ;;  %v1580_v55 = vadd.f32 -1.4531521, %v1516_v56  ;;  %v1517_v7 = vmul.f32 1.0614054, %v5977_v13  ;;  %v5992_v38 = vmul.f32 %v2659_v10, %v5775_v27 }
 0x2de   : > { %v4152_v9 = vpop.eup %4151  ;;  %v2661_v48 = vadd.f32 1.0, %v2597_v44  ;;  %v2156_v63 = vmul.f32 %v2092_v32, %v5847_v8  ;;  %v2091_v11 = vsub.f32 0.0, %v5862_v34  ;;  %v1833_v58 = vadd.f32 -0.28449672, %v1769_v40 }
 0x2df   : > { %6961 = vst [vmem:[#allocation57_spill] sm:$0xff] %v5992_v38  ;;  %v1834_v57 = vadd.f32 -0.28449672, %v1770_v36  ;;  %v1579_v33 = vadd.f32 -1.4531521, %v1515_v29  ;;  %4159 = vrcp.f32 %v1391_v4  ;;  %v2536_v17 = vsub.f32 0.0, %v2408_v14 }
 0x2e0   : > { %4161 = vpow2.f32 %v2258_v31  ;;  %v1329_v1 = vmul.f32 0.3275911, %v5987_v30  ;;  %v5998_v54 = vadd.f32 %v958_v53, %v4731_v62  ;;  %v2598_v27 = vsel %vm2470_vm4, %v2406_v22, %v2534_v45  ;;  %v1071_v45 = vpop.f32.mrf.mxu1 }
 0x2e1   : > { %v2343_v56 = vmul.f32 %v4152_v9, %v2023_v50  ;;  %v1644_v10 = vmul.f32 %v5958_v59, %v1580_v55  ;;  %v1581_v8 = vadd.f32 -1.4531521, %v1517_v7  ;;  %v6004_v44 = vmul.f32 %v2661_v48, %v5778_v61 }
 0x2e2   : > { %v6007_v32 = vmul.f32 0.5, %v5815_v6  ;;  %v6010_v40 = vmul.f32 0.5, %v5822_v28  ;;  %v2155_v36 = vmul.f32 %v2091_v11, %v5862_v34  ;;  %v6013_v29 = vpop.eup %4153  ;;  %v1897_v52 = vmul.f32 %v5891_v37, %v1833_v58 }
 0x2e3   : > { %6962 = vst [vmem:[#allocation58_spill] sm:$0xff] %v6004_v44  ;;  %v1898_v22 = vmul.f32 %v5894_v49, %v1834_v57  ;;  %v2262_v4 = vmul.f32 1.442695, %v2156_v63  ;;  %v1643_v31 = vmul.f32 %v5966_v15, %v1579_v33  ;;  %v2662_v61 = vadd.f32 1.0, %v2598_v27  ;;  %v6964_v57 = vld [vmem:[#allocation41_spill] sm:$0xff] }
 0x2e4   : > { %v2600_v6 = vsel %vm2472_vm5, %v2408_v14, %v2536_v17  ;;  %vm2471_vm6 = vcmp.ge.f32.partialorder %v5711_v60, 0.0  ;;  %v1393_v28 = vadd.f32 1.0, %v1329_v1  ;;  %v6022_v50 = vmul.f32 0.70710677, %v5998_v54 }
 0x2e5   : > { %v2407_v34 = vsub.f32 1.0, %v2343_v56  ;;  %v1708_v55 = vadd.f32 1.4214138, %v1644_v10  ;;  %v1645_v7 = vmul.f32 %v5977_v13, %v1581_v8  ;;  %v2093_v53 = vsub.f32 0.0, %v5868_v42 }
 0x2e6   : > { %6963 = vst [vmem:[#allocation59_spill] sm:$0xff] %v6022_v50  ;;  %v2260_v9 = vmul.f32 1.442695, %v2155_v36  ;;  %v6027_v48 = vmul.f32 0.5, %v5833_v16  ;;  %v1518_v63 = vmul.f32 1.0614054, %v6013_v29  ;;  %v6031_v23 = vadd.f32 %v1071_v45, %v6887_v47  ;;  %v960_v16 = vpop.f32.mrf.mxu0 }
 0x2e7   : > { %v6033_v17 = vpop.eup %4155  ;;  %v1961_v14 = vadd.f32 0.2548296, %v1897_v52  ;;  %v1962_v11 = vadd.f32 0.2548296, %v1898_v22  ;;  %4163 = vpow2.f32 %v2262_v4  ;;  %v1707_v58 = vadd.f32 1.4214138, %v1643_v31 }
 0x2e8   : > { %v6036_v33 = vmul.f32 %v2662_v61, %v6964_v57  ;;  %v2664_v1 = vadd.f32 1.0, %v2600_v6  ;;  %4165 = vrcp.f32 %v1393_v28  ;;  %v6039_v27 = vand.u32 2147483647, %v6022_v50  ;;  %v1073_v57 = vpop.f32.mrf.mxu1 }
 0x2e9   : > { %v4158_v56 = vpop.eup %4157  ;;  %v2535_v10 = vsub.f32 0.0, %v2407_v34  ;;  %v1772_v8 = vmul.f32 %v5958_v59, %v1708_v55  ;;  %v1709_v36 = vadd.f32 1.4214138, %v1645_v7  ;;  %v2157_v45 = vmul.f32 %v2093_v53, %v5868_v42  ;;  %v6967_v7 = vld [vmem:[#allocation53_spill] sm:$0xff] }
 0x2ea   : > { %6965 = vst [vmem:[#allocation41_spill] sm:$0xff] %v6036_v33  ;;  %4167 = vpow2.f32 %v2260_v9  ;;  %v1582_v52 = vadd.f32 -1.4531521, %v1518_v63  ;;  %v1520_v22 = vmul.f32 1.0614054, %v6033_v17  ;;  %v2025_v31 = vmul.f32 %v5891_v37, %v1961_v14 }
 0x2eb   : > { %v6045_v4 = vmul.f32 0.70710677, %v6031_v23  ;;  %v2026_v61 = vmul.f32 %v5894_v49, %v1962_v11  ;;  %v1771_v6 = vmul.f32 %v5966_v15, %v1707_v58  ;;  %v6051_v28 = vadd.f32 %v960_v16, %v4744_v21 }
 0x2ec   : > { %v6053_v55 = vpop.eup %4159  ;;  %v6056_v42 = vmul.f32 %v2664_v1, %v6967_v7  ;;  %v6059_v53 = vmul.f32 0.5, %v5875_v3  ;;  %v1330_v9 = vmul.f32 0.3275911, %v6039_v27  ;;  %v2599_v49 = vsel %vm2471_vm6, %v2407_v34, %v2535_v10 }
 0x2ed   : > { %6966 = vst [vmem:[#allocation60_spill] sm:$0xff] %v6045_v4  ;;  %v6063_v63 = vand.u32 2147483647, %v6045_v4  ;;  %v4162_v37 = vpop.eup %4161  ;;  %v1836_v14 = vadd.f32 -0.28449672, %v1772_v8  ;;  %v1773_v11 = vmul.f32 %v5977_v13, %v1709_v36  ;;  %v1646_v1 = vmul.f32 %v6013_v29, %v1582_v52 }
 0x2ee   : > { %6968 = vst [vmem:[#allocation53_spill] sm:$0xff] %v6056_v42  ;;  %6969 = vst [vmem:[#allocation61_spill] sm:$0xff] %v6059_v53  ;;  %v2264_v58 = vmul.f32 1.442695, %v2157_v45  ;;  %v2094_v16 = vsub.f32 0.0, %v5904_v12  ;;  %v2345_v42 = vmul.f32 %v4158_v56, %v2025_v31  ;;  %v6073_v33 = vmul.f32 %v4162_v37, %v2026_v61  ;;  %v6971_v37 = vld [vmem:[#allocation25_spill] sm:$0xff] }
 0x2ef   : > { %v1584_v3 = vadd.f32 -1.4531521, %v1520_v22  ;;  %v6071_v7 = vmul.f32 0.70710677, %v6051_v28  ;;  %v1835_v51 = vadd.f32 -0.28449672, %v1771_v6  ;;  %v6081_v36 = vadd.f32 %v1073_v57, %v6914_v5 }
 0x2f0   : > { %v1519_v60 = vmul.f32 1.0614054, %v6053_v55  ;;  %v1394_v34 = vadd.f32 1.0, %v1330_v9  ;;  %v1332_v10 = vmul.f32 0.3275911, %v6063_v63  ;;  %v2663_v45 = vadd.f32 1.0, %v2599_v49 }
 0x2f1   : > { %6970 = vst [vmem:[#allocation62_spill] sm:$0xff] %v6071_v7  ;;  %v6078_v8 = vand.u32 2147483647, %v6071_v7  ;;  %v1900_v52 = vmul.f32 %v5958_v59, %v1836_v14  ;;  %v1837_v22 = vadd.f32 -0.28449672, %v1773_v11  ;;  %4169 = vpow2.f32 %v2264_v58 }
 0x2f2   : > { %v1710_v56 = vadd.f32 1.4214138, %v1646_v1  ;;  %v2158_v31 = vmul.f32 %v2094_v16, %v5904_v12  ;;  %v1648_v61 = vmul.f32 %v6033_v17, %v1584_v3  ;;  %v2409_v9 = vsub.f32 1.0, %v2345_v42 }
 0x2f3   : > { %v1331_v6 = vmul.f32 0.3275911, %v6078_v8  ;;  %vm2473_vm7 = vcmp.ge.f32.partialorder %v6971_v37, 0.0  ;;  %v2410_v44 = vsub.f32 1.0, %v6073_v33  ;;  %v2096_v57 = vsub.f32 0.0, %v5919_v0 }
 0x2f4   : > { %v1583_v38 = vadd.f32 -1.4531521, %v1519_v60  ;;  %v4164_v49 = vpop.eup %4163  ;;  %vm2474_vm8 = vcmp.ge.f32.partialorder %v6972_v39, 0.0  ;;  %v1899_v14 = vmul.f32 %v5966_v15, %v1835_v51  ;;  %4171 = vrcp.f32 %v1394_v34 }
 0x2f5   : > { %v1396_v11 = vadd.f32 1.0, %v1332_v10  ;;  %v6093_v12 = vmul.f32 0.70710677, %v6081_v36  ;;  %v6095_v58 = vpop.eup %4165  ;;  %v1964_v42 = vadd.f32 0.2548296, %v1900_v52  ;;  %v1901_v1 = vmul.f32 %v5977_v13, %v1837_v22 }
 0x2f6   : > { %v6099_v33 = vmul.f32 0.5, %v5889_v18  ;;  %v1395_v16 = vadd.f32 1.0, %v1331_v6  ;;  %v1774_v3 = vmul.f32 %v6013_v29, %v1710_v56  ;;  %v2266_v60 = vmul.f32 1.442695, %v2158_v31  ;;  %v962_v6 = vpop.f32.mrf.mxu0 }
 0x2f7   : > { %6973 = vst [vmem:[#allocation25_spill] sm:$0xff] %v6093_v12  ;;  %v1712_v46 = vadd.f32 1.4214138, %v1648_v61  ;;  %v6103_v51 = vand.u32 2147483647, %v6093_v12  ;;  %v4168_v34 = vpop.eup %4167  ;;  %v2537_v10 = vsub.f32 0.0, %v2409_v9  ;;  %v2160_v7 = vmul.f32 %v2096_v57, %v5919_v0  ;;  %v1075_v12 = vpop.f32.mrf.mxu1 }
 0x2f8   : > { %6974 = vst [vmem:[#allocation49_spill] sm:$0xff] %v6099_v33  ;;  %v1647_v4 = vmul.f32 %v6053_v55, %v1583_v38  ;;  %v2095_v52 = vsub.f32 0.0, %v5946_v43  ;;  %v2538_v22 = vsub.f32 0.0, %v2410_v44  ;;  %v1963_v50 = vadd.f32 0.2548296, %v1899_v14  ;;  %v6975_v33 = vld [vmem:[#allocation15_spill] sm:$0xff] }
 0x2f9   : > { %v1521_v18 = vmul.f32 1.0614054, %v6095_v58  ;;  %4173 = vrcp.f32 %v1396_v11  ;;  %v2028_v56 = vmul.f32 %v5958_v59, %v1964_v42  ;;  %v1965_v31 = vadd.f32 0.2548296, %v1901_v1 }
 0x2fa   : > { %4175 = vrcp.f32 %v1395_v16  ;;  %v1333_v61 = vmul.f32 0.3275911, %v6103_v51  ;;  %v6112_v19 = vmul.f32 %v2663_v45, %v6975_v33  ;;  %v1838_v0 = vadd.f32 -0.28449672, %v1774_v3 }
 0x2fb   : > { %4177 = vpow2.f32 %v2266_v60  ;;  %v1776_v38 = vmul.f32 %v6033_v17, %v1712_v46  ;;  %v2270_v57 = vmul.f32 1.442695, %v2160_v7  ;;  %v1711_v14 = vadd.f32 1.4214138, %v1647_v4 }
 0x2fc   : > { %v1397_v53 = vadd.f32 1.0, %v1333_v61  ;;  %v6116_v11 = vadd.f32 %v962_v6, %v4731_v62  ;;  %v2601_v59 = vsel %vm2473_vm7, %v2409_v9, %v2537_v10  ;;  %v2159_v42 = vmul.f32 %v2095_v52, %v5946_v43  ;;  %v6977_v10 = vld [vmem:[#allocation51_spill] sm:$0xff] }
 0x2fd   : > { %v1585_v1 = vadd.f32 -1.4531521, %v1521_v18  ;;  %v6122_v16 = vadd.f32 %v1075_v12, %v6887_v47  ;;  %v2602_v45 = vsel %vm2474_vm8, %v2410_v44, %v2538_v22  ;;  %v6126_v33 = vmul.f32 %v4164_v49, %v2028_v56 }
 0x2fe   : > { %v2027_v46 = vmul.f32 %v5966_v15, %v1963_v50  ;;  %v2029_v4 = vmul.f32 %v5977_v13, %v1965_v31  ;;  %v4170_v7 = vpop.eup %4169  ;;  %v1902_v3 = vmul.f32 %v6013_v29, %v1838_v0  ;;  %v1840_v37 = vadd.f32 -0.28449672, %v1776_v38  ;;  %v964_v31 = vpop.f32.mrf.mxu0 }
 0x2ff   : > { %4179 = vrcp.f32 %v1397_v53  ;;  %v6132_v43 = vmul.f32 0.70710677, %v6116_v11  ;;  %v2665_v9 = vadd.f32 1.0, %v2601_v59  ;;  %v6135_v12 = vmul.f32 0.5, %v5912_v41 }
 0x300   : > { %v1775_v39 = vmul.f32 %v6053_v55, %v1711_v14  ;;  %v6139_v44 = vmul.f32 0.70710677, %v6122_v16  ;;  %v2268_v15 = vmul.f32 1.442695, %v2159_v42  ;;  %v1649_v13 = vmul.f32 %v6095_v58, %v1585_v1 }
 0x301   : > { %v2097_v50 = vsub.f32 0.0, %v5987_v30  ;;  %v6144_v49 = vand.u32 2147483647, %v6132_v43  ;;  %v6146_v53 = vpop.eup %4171  ;;  %v2666_v60 = vadd.f32 1.0, %v2602_v45  ;;  %vm2476_vm9 = vcmp.ge.f32.partialorder %v6977_v10, 0.0  ;;  %v6981_v45 = vld [vmem:[#allocation52_spill] sm:$0xff] }
 0x302   : > { %6976 = vst [vmem:[#allocation15_spill] sm:$0xff] %v6139_v44  ;;  %v2347_v41 = vmul.f32 %v4168_v34, %v2027_v46  ;;  %4181 = vpow2.f32 %v2270_v57  ;;  %v6150_v52 = vmul.f32 0.5, %v5956_v24  ;;  %v2412_v22 = vsub.f32 1.0, %v6126_v33  ;;  %v6979_v34 = vld [vmem:[#allocation21_spill] sm:$0xff] }
 0x303   : > { %v2349_v18 = vmul.f32 %v4170_v7, %v2029_v4  ;;  %v1966_v6 = vadd.f32 0.2548296, %v1902_v3  ;;  %v1904_v56 = vmul.f32 %v6033_v17, %v1840_v37  ;;  %v6155_v61 = vmul.f32 %v2665_v9, %v5953_v25 }
 0x304   : > { %v1839_v0 = vadd.f32 -0.28449672, %v1775_v39  ;;  %v1334_v38 = vmul.f32 0.3275911, %v6144_v49  ;;  %v6159_v14 = vand.u32 2147483647, %v6139_v44  ;;  %4183 = vpow2.f32 %v2268_v15 }
 0x305   : > { %6978 = vst [vmem:[#allocation51_spill] sm:$0xff] %v6155_v61  ;;  %vm2475_vm10 = vcmp.ge.f32.partialorder %v6979_v34, 0.0  ;;  %v1713_v24 = vadd.f32 1.4214138, %v1649_v13  ;;  %v2161_v57 = vmul.f32 %v2097_v50, %v5987_v30  ;;  %v1522_v59 = vmul.f32 1.0614054, %v6146_v53 }
 0x306   : > { %v6164_v42 = vpop.eup %4173  ;;  %v6167_v1 = vmul.f32 %v2666_v60, %v5961_v35  ;;  %v2411_v25 = vsub.f32 1.0, %v2347_v41  ;;  %vm2477_vm11 = vcmp.ge.f32.partialorder %v6981_v45, 0.0  ;;  %v6171_v33 = vmul.f32 0.5, %v5998_v54 }
 0x307   : > { %v6174_v46 = vadd.f32 %v964_v31, %v4744_v21  ;;  %v6176_v4 = vpop.eup %4175  ;;  %v2540_v7 = vsub.f32 0.0, %v2412_v22  ;;  %v2413_v30 = vsub.f32 1.0, %v2349_v18  ;;  %v2030_v3 = vmul.f32 %v6013_v29, %v1966_v6  ;;  %v1077_v31 = vpop.f32.mrf.mxu1 }
 0x308   : > { %6980 = vst [vmem:[#allocation21_spill] sm:$0xff] %v6167_v1  ;;  %6982 = vst [vmem:[#allocation52_spill] sm:$0xff] %v6171_v33  ;;  %v1968_v37 = vadd.f32 0.2548296, %v1904_v56  ;;  %v4178_v9 = vpop.eup %4177  ;;  %v1903_v35 = vmul.f32 %v6053_v55, %v1839_v0  ;;  %v6181_v39 = vmul.f32 0.5, %v6031_v23  ;;  %v1398_v15 = vadd.f32 1.0, %v1334_v38 }
 0x309   : > { %v1336_v54 = vmul.f32 0.3275911, %v6159_v14  ;;  %v1777_v13 = vmul.f32 %v6095_v58, %v1713_v24  ;;  %v2272_v50 = vmul.f32 1.442695, %v2161_v57  ;;  %v1586_v60 = vadd.f32 -1.4531521, %v1522_v59 }
 0x30a   : > { %6983 = vst [vmem:[#allocation63_spill] sm:$0xff] %v6181_v39  ;;  %v1524_v41 = vmul.f32 1.0614054, %v6164_v42  ;;  %v2539_v18 = vsub.f32 0.0, %v2411_v25  ;;  %v2098_v29 = vsub.f32 0.0, %v6039_v27  ;;  %v2604_v23 = vsel %vm2476_vm9, %v2412_v22, %v2540_v7 }
 0x30b   : > { %v1523_v6 = vmul.f32 1.0614054, %v6176_v4  ;;  %v6189_v56 = vmul.f32 0.70710677, %v6174_v46  ;;  %v2541_v0 = vsub.f32 0.0, %v2413_v30  ;;  %v2350_v38 = vmul.f32 %v4178_v9, %v2030_v3 }
 0x30c   : > { %v2032_v24 = vmul.f32 %v6033_v17, %v1968_v37  ;;  %v6194_v57 = vpop.eup %4179  ;;  %v1967_v59 = vadd.f32 0.2548296, %v1903_v35  ;;  %4185 = vrcp.f32 %v1398_v15  ;;  %v1400_v39 = vadd.f32 1.0, %v1336_v54 }
 0x30d   : > { %v6197_v33 = vadd.f32 %v1077_v31, %v6914_v5  ;;  %v1841_v1 = vadd.f32 -0.28449672, %v1777_v13  ;;  %4187 = vpow2.f32 %v2272_v50  ;;  %v1650_v44 = vmul.f32 %v6146_v53, %v1586_v60 }
 0x30e   : > { %v1588_v61 = vadd.f32 -1.4531521, %v1524_v41  ;;  %v2603_v10 = vsel %vm2475_vm10, %v2411_v25, %v2539_v18  ;;  %v2162_v22 = vmul.f32 %v2098_v29, %v6039_v27  ;;  %v1587_v7 = vadd.f32 -1.4531521, %v1523_v6 }
 0x30f   : > { %v6204_v17 = vand.u32 2147483647, %v6189_v56  ;;  %v4182_v3 = vpop.eup %4181  ;;  %v2668_v37 = vadd.f32 1.0, %v2604_v23  ;;  %v2605_v9 = vsel %vm2477_vm11, %v2413_v30, %v2541_v0  ;;  %v2414_v35 = vsub.f32 1.0, %v2350_v38 }
 0x310   : > { %vm2478_vm12 = vcmp.ge.f32.partialorder %v5886_v2, 0.0  ;;  %v1525_v15 = vmul.f32 1.0614054, %v6194_v57  ;;  %v2352_v54 = vmul.f32 %v4182_v3, %v2032_v24  ;;  %v2031_v34 = vmul.f32 %v6053_v55, %v1967_v59 }
 0x311   : > { %4189 = vrcp.f32 %v1400_v39  ;;  %v6212_v27 = vmul.f32 0.70710677, %v6197_v33  ;;  %v2667_v25 = vadd.f32 1.0, %v2603_v10  ;;  %v1905_v13 = vmul.f32 %v6095_v58, %v1841_v1  ;;  %v4184_v45 = vpop.eup %4183 }
 0x312   : > { %v1714_v50 = vadd.f32 1.4214138, %v1650_v44  ;;  %v1652_v60 = vmul.f32 %v6164_v42, %v1588_v61  ;;  %v2274_v30 = vmul.f32 1.442695, %v2162_v22  ;;  %v2100_v41 = vsub.f32 0.0, %v6063_v63 }
 0x313   : > { %v1651_v31 = vmul.f32 %v6176_v4, %v1587_v7  ;;  %v1335_v18 = vmul.f32 0.3275911, %v6204_v17  ;;  %v6220_v55 = vmul.f32 %v2668_v37, %v6007_v32  ;;  %v2669_v39 = vadd.f32 1.0, %v2605_v9  ;;  %v968_v9 = vpop.f32.mrf.mxu0 }
 0x314   : > { %vm2480_vm13 = vcmp.ge.f32.partialorder %v5907_v20, 0.0  ;;  %v2099_v29 = vsub.f32 0.0, %v6078_v8  ;;  %v1589_v1 = vadd.f32 -1.4531521, %v1525_v15  ;;  %v2542_v44 = vsub.f32 0.0, %v2414_v35 }
 0x315   : > { %6984 = vst [vmem:[#allocation64_spill] sm:$0xff] %v6220_v55  ;;  %v2416_v6 = vsub.f32 1.0, %v2352_v54  ;;  %v2351_v61 = vmul.f32 %v4184_v45, %v2031_v34  ;;  %v6225_v23 = vand.u32 2147483647, %v6212_v27  ;;  %v6228_v0 = vmul.f32 %v2667_v25, %v6010_v40  ;;  %v7028_v55 = vld [vmem:[#allocation29_spill] sm:$0xff] }
 0x316   : > { %v1969_v38 = vadd.f32 0.2548296, %v1905_v13  ;;  %v1778_v24 = vmul.f32 %v6146_v53, %v1714_v50  ;;  %v1716_v32 = vadd.f32 1.4214138, %v1652_v60  ;;  %4191 = vpow2.f32 %v2274_v30 }
 0x317   : > { %v2164_v59 = vmul.f32 %v2100_v41, %v6063_v63  ;;  %v1715_v10 = vadd.f32 1.4214138, %v1651_v31  ;;  %v1399_v22 = vadd.f32 1.0, %v1335_v18  ;;  %v6233_v7 = vmul.f32 %v2669_v39, %v6027_v48 }
 0x318   : > { %vm2479_vm14 = vcmp.ge.f32.partialorder %v5926_v26, 0.0  ;;  %v6237_v3 = vmul.f32 0.5, %v6051_v28  ;;  %v2163_v40 = vmul.f32 %v2099_v29, %v6078_v8  ;;  %v1653_v37 = vmul.f32 %v6194_v57, %v1589_v1 }
 0x319   : > { %v2606_v15 = vsel %vm2478_vm12, %v2414_v35, %v2542_v44  ;;  %v2544_v54 = vsub.f32 0.0, %v2416_v6  ;;  %v2415_v63 = vsub.f32 1.0, %v2351_v61  ;;  %v1337_v34 = vmul.f32 0.3275911, %v6225_v23  ;;  %v6244_v25 = vpop.eup %4185 }
 0x31a   : > { %v2033_v48 = vmul.f32 %v6095_v58, %v1969_v38  ;;  %v1842_v13 = vadd.f32 -0.28449672, %v1778_v24  ;;  %v1780_v28 = vmul.f32 %v6164_v42, %v1716_v32  ;;  %v2101_v50 = vsub.f32 0.0, %v6103_v51  ;;  %v4188_v8 = vpop.eup %4187  ;;  %v970_v58 = vpop.f32.mrf.mxu0 }
 0x31b   : > { %v2278_v60 = vmul.f32 1.442695, %v2164_v59  ;;  %v1779_v45 = vmul.f32 %v6176_v4, %v1715_v10  ;;  %4193 = vrcp.f32 %v1399_v22  ;;  %v6251_v2 = vadd.f32 %v968_v9, %v4731_v62  ;;  %v6988_v9 = vld [vmem:[#allocation56_spill] sm:$0xff] }
 0x31c   : > { %v2670_v35 = vadd.f32 1.0, %v2606_v15  ;;  %v2276_v30 = vmul.f32 1.442695, %v2163_v40  ;;  %v6254_v41 = vmul.f32 0.5, %v6081_v36  ;;  %v1717_v31 = vadd.f32 1.4214138, %v1653_v37 }
 0x31d   : > { %6985 = vst [vmem:[#allocation65_spill] sm:$0xff] %v6251_v2  ;;  %v2608_v18 = vsel %vm2480_vm13, %v2416_v6, %v2544_v54  ;;  %v2543_v39 = vsub.f32 0.0, %v2415_v63  ;;  %v1526_v29 = vmul.f32 1.0614054, %v6244_v25  ;;  %v1401_v1 = vadd.f32 1.0, %v1337_v34  ;;  %v6986_v6 = vld [vmem:[#allocation61_spill] sm:$0xff]  ;;  %v1081_v54 = vpop.f32.mrf.mxu1 }
 0x31e   : > { %v6259_v44 = vpop.eup %4189  ;;  %v2353_v61 = vmul.f32 %v4188_v8, %v2033_v48  ;;  %v1906_v38 = vmul.f32 %v6146_v53, %v1842_v13  ;;  %v1844_v24 = vadd.f32 -0.28449672, %v1780_v28  ;;  %v2165_v32 = vmul.f32 %v2101_v50, %v6103_v51 }
 0x31f   : > { %4195 = vpow2.f32 %v2278_v60  ;;  %v1843_v36 = vadd.f32 -0.28449672, %v1779_v45  ;;  %v6264_v59 = vmul.f32 0.70710677, %v6251_v2  ;;  %v6267_v20 = vadd.f32 %v970_v58, %v4744_v21 }
 0x320   : > { %v6270_v10 = vmul.f32 %v2670_v35, %v6986_v6  ;;  %v2672_v22 = vadd.f32 1.0, %v2608_v18  ;;  %4197 = vpow2.f32 %v2276_v30  ;;  %v1781_v40 = vmul.f32 %v6194_v57, %v1717_v31 }
 0x321   : > { %v2607_v37 = vsel %vm2479_vm14, %v2415_v63, %v2543_v39  ;;  %vm2481_vm15 = vcmp.ge.f32.partialorder %v6988_v9, 0.0  ;;  %v1590_v51 = vadd.f32 -1.4531521, %v1526_v29  ;;  %v1528_v15 = vmul.f32 1.0614054, %v6259_v44 }
 0x322   : > { %6987 = vst [vmem:[#allocation61_spill] sm:$0xff] %v6270_v10  ;;  %4199 = vrcp.f32 %v1401_v1  ;;  %v2417_v34 = vsub.f32 1.0, %v2353_v61  ;;  %v1970_v48 = vadd.f32 0.2548296, %v1906_v38  ;;  %v1908_v13 = vmul.f32 %v6164_v42, %v1844_v24  ;;  %v1083_v38 = vpop.f32.mrf.mxu1  ;;  %v6991_v24 = vld [vmem:[#allocation49_spill] sm:$0xff]  ;;  %v7029_v10 = vld [vmem:[#allocation19_spill] sm:$0xff] }
 0x323   : > { %v2280_v28 = vmul.f32 1.442695, %v2165_v32  ;;  %v1907_v50 = vmul.f32 %v6176_v4, %v1843_v36  ;;  %v6280_v8 = vmul.f32 0.5, %v6116_v11  ;;  %v6283_v26 = vand.u32 2147483647, %v6264_v59  ;;  %v4192_v60 = vpop.eup %4191 }
 0x324   : > { %v6286_v63 = vmul.f32 0.70710677, %v6267_v20  ;;  %v2671_v45 = vadd.f32 1.0, %v2607_v37  ;;  %v1845_v35 = vadd.f32 -0.28449672, %v1781_v40  ;;  %v2102_v30 = vsub.f32 0.0, %v6144_v49 }
 0x325   : > { %6989 = vst [vmem:[#allocation56_spill] sm:$0xff] %v6280_v8  ;;  %v6290_v31 = vadd.f32 %v1081_v54, %v6887_v47  ;;  %v1654_v58 = vmul.f32 %v6244_v25, %v1590_v51  ;;  %v1592_v18 = vadd.f32 -1.4531521, %v1528_v15  ;;  %v2104_v11 = vsub.f32 0.0, %v6159_v14 }
 0x326   : > { %v6295_v39 = vand.u32 2147483647, %v6286_v63  ;;  %v2545_v29 = vsub.f32 0.0, %v2417_v34  ;;  %v2034_v1 = vmul.f32 %v6146_v53, %v1970_v48  ;;  %v1972_v61 = vadd.f32 0.2548296, %v1908_v13 }
 0x327   : > { %6990 = vst [vmem:[#allocation66_spill] sm:$0xff] %v6290_v31  ;;  %4201 = vpow2.f32 %v2280_v28  ;;  %v6299_v32 = vmul.f32 %v2672_v22, %v6991_v24  ;;  %v1971_v36 = vadd.f32 0.2548296, %v1907_v50  ;;  %v1338_v6 = vmul.f32 0.3275911, %v6283_v26 }
 0x328   : > { %v1339_v40 = vmul.f32 0.3275911, %v6295_v39  ;;  %v6303_v37 = vpop.eup %4193  ;;  %v1909_v51 = vmul.f32 %v6194_v57, %v1845_v35  ;;  %v2166_v15 = vmul.f32 %v2102_v30, %v6144_v49  ;;  %v6308_v54 = vmul.f32 0.5, %v6122_v16 }
 0x329   : > { %6992 = vst [vmem:[#allocation49_spill] sm:$0xff] %v6299_v32  ;;  %v6311_v53 = vmul.f32 0.70710677, %v6290_v31  ;;  %v1718_v48 = vadd.f32 1.4214138, %v1654_v58  ;;  %v1656_v22 = vmul.f32 %v6259_v44, %v1592_v18  ;;  %v2168_v13 = vmul.f32 %v2104_v11, %v6159_v14 }
 0x32a   : > { %6993 = vst [vmem:[#allocation67_spill] sm:$0xff] %v6308_v54  ;;  %v6316_v28 = vadd.f32 %v1083_v38, %v6914_v5  ;;  %v2609_v50 = vsel %vm2481_vm15, %v2417_v34, %v2545_v29  ;;  %v6320_v35 = vmul.f32 %v4192_v60, %v2034_v1  ;;  %v2036_v49 = vmul.f32 %v6164_v42, %v1972_v61  ;;  %v972_v60 = vpop.f32.mrf.mxu0 }
 0x32b   : > { %6994 = vst [vmem:[#allocation68_spill] sm:$0xff] %v6311_v53  ;;  %v1403_v16 = vadd.f32 1.0, %v1339_v40  ;;  %v2035_v30 = vmul.f32 %v6176_v4, %v1971_v36  ;;  %v6325_v24 = vmul.f32 0.5, %v6174_v46  ;;  %v1527_v58 = vmul.f32 1.0614054, %v6303_v37 }
 0x32c   : > { %v1402_v18 = vadd.f32 1.0, %v1338_v6  ;;  %v4196_v14 = vpop.eup %4195  ;;  %v6329_v11 = vmul.f32 %v2671_v45, %v6135_v12  ;;  %v1973_v38 = vadd.f32 0.2548296, %v1909_v51  ;;  %v2282_v9 = vmul.f32 1.442695, %v2166_v15  ;;  %v6995_v6 = vld [vmem:[#allocation59_spill] sm:$0xff]  ;;  %v974_v8 = vpop.f32.mrf.mxu0 }
 0x32d   : > { %v6332_v34 = vand.u32 2147483647, %v6311_v53  ;;  %v4198_v42 = vpop.eup %4197  ;;  %v2673_v29 = vadd.f32 1.0, %v2609_v50  ;;  %v1782_v4 = vmul.f32 %v6244_v25, %v1718_v48  ;;  %v1720_v1 = vadd.f32 1.4214138, %v1656_v22 }
 0x32e   : > { %v6336_v46 = vmul.f32 0.70710677, %v6316_v28  ;;  %v2418_v36 = vsub.f32 1.0, %v6320_v35  ;;  %v2356_v12 = vmul.f32 %v4196_v14, %v2036_v49  ;;  %v2286_v45 = vmul.f32 1.442695, %v2168_v13  ;;  %v6997_v13 = vld [vmem:[#allocation60_spill] sm:$0xff] }
 0x32f   : > { %v6338_v61 = vpop.eup %4199  ;;  %4203 = vrcp.f32 %v1403_v16  ;;  %vm2482_vm0 = vcmp.ge.f32.partialorder %v6995_v6, 0.0  ;;  %v2355_v40 = vmul.f32 %v4198_v42, %v2035_v30  ;;  %v1591_v51 = vadd.f32 -1.4531521, %v1527_v58  ;;  %v6998_v58 = vld [vmem:[#allocation62_spill] sm:$0xff] }
 0x330   : > { %4205 = vrcp.f32 %v1402_v18  ;;  %v6343_v15 = vadd.f32 %v972_v60, %v4731_v62  ;;  %v2037_v48 = vmul.f32 %v6194_v57, %v1973_v38  ;;  %v1340_v22 = vmul.f32 0.3275911, %v6332_v34 }
 0x331   : > { %4207 = vpow2.f32 %v2282_v9  ;;  %v6348_v50 = vand.u32 2147483647, %v6336_v46  ;;  %v6351_v35 = vmul.f32 %v2673_v29, %v6150_v52  ;;  %vm2484_vm1 = vcmp.ge.f32.partialorder %v6997_v13, 0.0 }
 0x332   : > { %6996 = vst [vmem:[#allocation59_spill] sm:$0xff] %v6343_v15  ;;  %v1846_v49 = vadd.f32 -0.28449672, %v1782_v4  ;;  %v1784_v16 = vmul.f32 %v6259_v44, %v1720_v1  ;;  %v1529_v30 = vmul.f32 1.0614054, %v6338_v61  ;;  %v2420_v62 = vsub.f32 1.0, %v2356_v12  ;;  %v1085_v12 = vpop.f32.mrf.mxu1 }
 0x333   : > { %vm2483_vm2 = vcmp.ge.f32.partialorder %v6998_v58, 0.0  ;;  %4209 = vpow2.f32 %v2286_v45  ;;  %v2103_v57 = vsub.f32 0.0, %v6204_v17  ;;  %v1341_v18 = vmul.f32 0.3275911, %v6348_v50 }
 0x334   : > { %v4202_v14 = vpop.eup %4201  ;;  %v2546_v38 = vsub.f32 0.0, %v2418_v36  ;;  %v2419_v9 = vsub.f32 1.0, %v2355_v40  ;;  %v1655_v52 = vmul.f32 %v6303_v37, %v1591_v51  ;;  %v6361_v60 = vmul.f32 0.70710677, %v6343_v15 }
 0x335   : > { %v2357_v42 = vmul.f32 %v4202_v14, %v2037_v48  ;;  %v2105_v29 = vsub.f32 0.0, %v6225_v23  ;;  %v1404_v4 = vadd.f32 1.0, %v1340_v22  ;;  %v1405_v1 = vadd.f32 1.0, %v1341_v18  ;;  %v7000_v48 = vld [vmem:[#allocation25_spill] sm:$0xff] }
 0x336   : > { %6999 = vst [vmem:[#allocation60_spill] sm:$0xff] %v6361_v60  ;;  %v1910_v45 = vmul.f32 %v6244_v25, %v1846_v49  ;;  %v1848_v31 = vadd.f32 -0.28449672, %v1784_v16  ;;  %v1593_v2 = vadd.f32 -1.4531521, %v1529_v30  ;;  %v2548_v54 = vsub.f32 0.0, %v2420_v62 }
 0x337   : > { %v6366_v53 = vand.u32 2147483647, %v6361_v60  ;;  %v2167_v40 = vmul.f32 %v2103_v57, %v6204_v17  ;;  %v2106_v51 = vsub.f32 0.0, %v6283_v26  ;;  %4211 = vrcp.f32 %v1405_v1 }
 0x338   : > { %v2547_v15 = vsub.f32 0.0, %v2419_v9  ;;  %vm2485_vm3 = vcmp.ge.f32.partialorder %v7000_v48, 0.0  ;;  %v1719_v14 = vadd.f32 1.4214138, %v1655_v52  ;;  %v6373_v18 = vadd.f32 %v1085_v12, %v6887_v47 }
 0x339   : > { %v1342_v22 = vmul.f32 0.3275911, %v6366_v53  ;;  %v2610_v49 = vsel %vm2482_vm0, %v2418_v36, %v2546_v38  ;;  %v2421_v16 = vsub.f32 1.0, %v2357_v42  ;;  %v2169_v30 = vmul.f32 %v2105_v29, %v6225_v23 }
 0x33a   : > { %7001 = vst [vmem:[#allocation62_spill] sm:$0xff] %v6373_v18  ;;  %4213 = vrcp.f32 %v1404_v4  ;;  %v1974_v17 = vadd.f32 0.2548296, %v1910_v45  ;;  %v1912_v57 = vmul.f32 %v6259_v44, %v1848_v31  ;;  %v1657_v1 = vmul.f32 %v6338_v61, %v1593_v2 }
 0x33b   : > { %v1406_v60 = vadd.f32 1.0, %v1342_v22  ;;  %v2612_v52 = vsel %vm2484_vm1, %v2420_v62, %v2548_v54  ;;  %v2284_v32 = vmul.f32 1.442695, %v2167_v40  ;;  %v6383_v47 = vmul.f32 0.5, %v6197_v33 }
 0x33c   : > { %v2170_v36 = vmul.f32 %v2106_v51, %v6283_v26  ;;  %v6386_v6 = vpop.eup %4203  ;;  %v2611_v23 = vsel %vm2483_vm2, %v2419_v9, %v2547_v15  ;;  %v1783_v31 = vmul.f32 %v6303_v37, %v1719_v14  ;;  %v6392_v2 = vmul.f32 0.70710677, %v6373_v18  ;;  %v1087_v51 = vpop.f32.mrf.mxu1  ;;  %v7013_v18 = vld [vmem:[#allocation31_spill] sm:$0xff] }
 0x33d   : > { %4215 = vrcp.f32 %v1406_v60  ;;  %v6394_v38 = vpop.eup %4205  ;;  %v6396_v54 = vadd.f32 1.0, %v2610_v49  ;;  %v2549_v13 = vsub.f32 0.0, %v2421_v16  ;;  %v2288_v33 = vmul.f32 1.442695, %v2169_v30 }
 0x33e   : > { %7002 = vst [vmem:[#allocation25_spill] sm:$0xff] %v6392_v2  ;;  %v6399_v62 = vadd.f32 %v974_v8, %v4744_v21  ;;  %v4208_v26 = vpop.eup %4207  ;;  %v2038_v42 = vmul.f32 %v6244_v25, %v1974_v17  ;;  %v1976_v58 = vadd.f32 0.2548296, %v1912_v57  ;;  %v1721_v15 = vadd.f32 1.4214138, %v1657_v1 }
 0x33f   : > { %7003 = vst [vmem:[#allocation69_spill] sm:$0xff] %v6396_v54  ;;  %v6403_v9 = vand.u32 2147483647, %v6392_v2  ;;  %v6405_v60 = vadd.f32 1.0, %v2612_v52  ;;  %v2675_v29 = vadd.f32 1.0, %v2611_v23  ;;  %4217 = vpow2.f32 %v2284_v32 }
 0x340   : > { %7004 = vst [vmem:[#allocation70_spill] sm:$0xff] %v6399_v62  ;;  %v2290_v4 = vmul.f32 1.442695, %v2170_v36  ;;  %v1531_v12 = vmul.f32 1.0614054, %v6386_v6  ;;  %v4210_v45 = vpop.eup %4209  ;;  %v2613_v25 = vsel %vm2485_vm3, %v2421_v16, %v2549_v13  ;;  %4219 = vpow2.f32 %v2288_v33 }
 0x341   : > { %7005 = vst [vmem:[#allocation71_spill] sm:$0xff] %v6405_v60  ;;  %v1847_v40 = vadd.f32 -0.28449672, %v1783_v31  ;;  %v1530_v21 = vmul.f32 1.0614054, %v6394_v38  ;;  %v2108_v14 = vsub.f32 0.0, %v6332_v34  ;;  %v6416_v49 = vmul.f32 %v4208_v26, %v2038_v42 }
 0x342   : > { %v1344_v8 = vmul.f32 0.3275911, %v6403_v9  ;;  %v6414_v22 = vmul.f32 0.70710677, %v6399_v62  ;;  %v2040_v30 = vmul.f32 %v6259_v44, %v1976_v58  ;;  %v1785_v32 = vmul.f32 %v6338_v61, %v1721_v15  ;;  %v7030_v62 = vld [vmem:[#allocation46_spill] sm:$0xff] }
 0x343   : > { %4221 = vpow2.f32 %v2290_v4  ;;  %v1595_v57 = vadd.f32 -1.4531521, %v1531_v12  ;;  %v6424_v48 = vadd.f32 %v1087_v51, %v6914_v5  ;;  %v6429_v52 = vmul.f32 %v2675_v29, %v6237_v3  ;;  %v7009_v51 = vld [vmem:[#allocation16_spill] sm:$0xff] }
 0x344   : > { %v1408_v17 = vadd.f32 1.0, %v1344_v8  ;;  %v6421_v1 = vand.u32 2147483647, %v6414_v22  ;;  %v6426_v16 = vpop.eup %4211  ;;  %v1911_v36 = vmul.f32 %v6303_v37, %v1847_v40  ;;  %v1594_v23 = vadd.f32 -1.4531521, %v1530_v21  ;;  %v7008_v8 = vld [vmem:[#allocation35_spill] sm:$0xff] }
 0x345   : > { %7006 = vst [vmem:[#allocation72_spill] sm:$0xff] %v6424_v48  ;;  %v6432_v44 = vadd.f32 1.0, %v2613_v25  ;;  %v2172_v31 = vmul.f32 %v2108_v14, %v6332_v34  ;;  %v1533_v13 = vmul.f32 1.0614054, %v6426_v16  ;;  %v6440_v42 = vmul.f32 %v4210_v45, %v2040_v30 }
 0x346   : > { %4223 = vrcp.f32 %v1408_v17  ;;  %v1343_v33 = vmul.f32 0.3275911, %v6421_v1  ;;  %v1849_v3 = vadd.f32 -0.28449672, %v1785_v32  ;;  %v2107_v58 = vsub.f32 0.0, %v6295_v39 }
 0x347   : > { %v6437_v26 = vpop.eup %4213  ;;  %v1659_v15 = vmul.f32 %v6386_v6, %v1595_v57  ;;  %v1597_v29 = vadd.f32 -1.4531521, %v1533_v13  ;;  %v6445_v12 = vmul.f32 0.70710677, %v6424_v48  ;;  %v1975_v34 = vadd.f32 0.2548296, %v1911_v36 }
 0x348   : > { %v1407_v4 = vadd.f32 1.0, %v1343_v33  ;;  %v1658_v40 = vmul.f32 %v6394_v38, %v1594_v23  ;;  %v2109_v21 = vsub.f32 0.0, %v6348_v50  ;;  %v2771_v25 = vpack.c.bf16 %v7009_v51, %v7008_v8  ;;  %v7010_v23 = vld [vmem:[#allocation36_spill] sm:$0xff]  ;;  %v7016_v8 = vld [vmem:[#allocation33_spill] sm:$0xff]  ;;  %v7017_v48 = vld [vmem:[#allocation34_spill] sm:$0xff] }
 0x349   : > { %7007 = vst [vmem:[#allocation73_spill] sm:$0xff] %v6445_v12  ;;  %v1532_v14 = vmul.f32 1.0614054, %v6437_v26  ;;  %v1661_v30 = vmul.f32 %v6426_v16, %v1597_v29  ;;  %v6456_v32 = vand.u32 2147483647, %v6445_v12  ;;  %v1913_v17 = vmul.f32 %v6338_v61, %v1849_v3  ;;  %v7011_v13 = vld [vmem:[#allocation20_spill] sm:$0xff] }
 0x34a   : > { %v6451_v45 = vpop.eup %4215  ;;  %4225 = vrcp.f32 %v1407_v4  ;;  %v6459_v57 = vmul.f32 1.442695, %v2172_v31  ;;  %3090 = vmatprep.mubr.bf16.mxu0 %v2771_v25  ;;  %v2773_v33 = vpack.c.bf16 %v7011_v13, %v7010_v23  ;;  %v1723_v51 = vadd.f32 1.4214138, %v1659_v15  ;;  %v7012_v4 = vld [vmem:[#allocation32_spill] sm:$0xff] }
 0x34b   : > { %v1534_v36 = vmul.f32 1.0614054, %v6451_v45  ;;  %v2171_v5 = vmul.f32 %v2107_v58, %v6295_v39  ;;  %v1345_v29 = vmul.f32 0.3275911, %v6456_v32  ;;  %v7014_v60 = vpack.c.bf16 %v7012_v4, %v7013_v18 }
 0x34c   : > { %v2039_v31 = vmul.f32 %v6303_v37, %v1975_v34  ;;  %v1722_v3 = vadd.f32 1.4214138, %v1658_v40  ;;  %v2173_v2 = vmul.f32 %v2109_v21, %v6348_v50  ;;  %3187 = vmatprep.mubr.bf16.mxu1 %v2773_v33  ;;  %v4218_v54 = vpop.eup %4217  ;;  %v7015_v23 = vsub.f32 1.0, %v6416_v49  ;;  %v7019_v34 = vld [vmem:[#allocation26_spill] sm:$0xff]  ;;  %v7020_v50 = vld [vmem:[#allocation37_spill] sm:$0xff]  ;;  %v7021_v21 = vld [vmem:[#allocation27_spill] sm:$0xff] }
 0x34d   : > { %3091 = vmatmul.mubr.bf16.vlgmr.msra.gmra.mxu0 %v7014_v60  ;;  %v1598_v25 = vadd.f32 -1.4531521, %v1534_v36  ;;  %v1596_v15 = vadd.f32 -1.4531521, %v1532_v14  ;;  %v1725_v39 = vadd.f32 1.4214138, %v1661_v30  ;;  %v7018_v12 = vpack.c.bf16 %v7016_v8, %v7017_v48  ;;  %v4220_v18 = vpop.eup %4219 }
 0x34e   : > { %v6474_v13 = vsub.f32 0.0, %v7015_v23  ;;  %v1409_v58 = vadd.f32 1.0, %v1345_v29  ;;  %v1977_v60 = vadd.f32 0.2548296, %v1913_v17  ;;  %v2775_v40 = vpack.c.bf16 %v7020_v50, %v7019_v34  ;;  %v7022_v36 = vld [vmem:[#allocation38_spill] sm:$0xff]  ;;  %v7024_v34 = vld [vmem:[#allocation28_spill] sm:$0xff] }
 0x34f   : > { %3188 = vmatmul.mubr.bf16.vlgmr.msra.gmra.mxu1 %v7018_v12  ;;  %v1662_v37 = vmul.f32 %v6451_v45, %v1598_v25  ;;  %v2777_v33 = vpack.c.bf16 %v7022_v36, %v7021_v21  ;;  %v1787_v4 = vmul.f32 %v6386_v6, %v1723_v51  ;;  %v2292_v23 = vmul.f32 1.442695, %v2171_v5  ;;  %v7023_v51 = vld [vmem:[#allocation18_spill] sm:$0xff] }
 0x350   : > { %v2111_v14 = vsub.f32 0.0, %v6421_v1  ;;  %4227 = vrcp.f32 %v1409_v58  ;;  %v6486_v30 = vpop.eup %4221  ;;  %v6488_v48 = vmul.f32 %v4218_v54, %v2039_v31  ;;  %v1786_v12 = vmul.f32 %v6394_v38, %v1722_v3  ;;  %3098 = vmatprep.mubr.bf16.mxu0 %v2775_v40  ;;  %v7025_v50 = vld [vmem:[#allocation42_spill] sm:$0xff] }
 0x351   : > { %v2296_v17 = vmul.f32 1.442695, %v2173_v2  ;;  %v2110_v8 = vsub.f32 0.0, %v6366_v53  ;;  %3195 = vmatprep.mubr.bf16.mxu1 %v2777_v33  ;;  %v1660_v25 = vmul.f32 %v6437_v26, %v1596_v15  ;;  %v1789_v5 = vmul.f32 %v6426_v16, %v1725_v39  ;;  %v7026_v21 = vld [vmem:[#allocation22_spill] sm:$0xff]  ;;  %v7027_v15 = vld [vmem:[#allocation24_spill] sm:$0xff] }
 0x352   : > { %v2774_v58 = vpack.c.bf16 %v7024_v34, %v7023_v51  ;;  %v2779_v54 = vpack.c.bf16 %v7026_v21, %v7025_v50  ;;  %v2041_v31 = vmul.f32 %v6338_v61, %v1977_v60  ;;  %v1726_v3 = vadd.f32 1.4214138, %v1662_v37 }
 0x353   : > { %v6492_v29 = vpop.eup %4223  ;;  %v2112_v40 = vsub.f32 0.0, %v6403_v9  ;;  %v1851_v36 = vadd.f32 -0.28449672, %v1787_v4  ;;  %v2175_v33 = vmul.f32 %v2111_v14, %v6421_v1  ;;  %v2776_v39 = vpack.c.bf16 %v7028_v55, %v7027_v15 }
 0x354   : > { %v1536_v2 = vmul.f32 1.0614054, %v6492_v29  ;;  %v2781_v51 = vpack.c.bf16 %v7030_v62, %v7029_v10  ;;  %v2423_v34 = vsub.f32 1.0, %v6488_v48  ;;  %v2174_v50 = vmul.f32 %v2110_v8, %v6366_v53 }
 0x355   : > { %3099 = vmatmul.mubr.bf16.gmra.mxu0 %v2774_v58  ;;  %v2113_v60 = vsub.f32 0.0, %v6456_v32  ;;  %v1850_v37 = vadd.f32 -0.28449672, %v1786_v12  ;;  %v1724_v21 = vadd.f32 1.4214138, %v1660_v25  ;;  %4229 = vpow2.f32 %v2292_v23  ;;  %v7031_v58 = vld [vmem:[#allocation45_spill] sm:$0xff] }
 0x356   : > { %v1600_v61 = vadd.f32 -1.4531521, %v1536_v2  ;;  %3106 = vmatprep.mubr.bf16.mxu0 %v2779_v54  ;;  %v1853_v4 = vadd.f32 -0.28449672, %v1789_v5  ;;  %v6513_v14 = vmul.f32 %v4220_v18, %v2041_v31  ;;  %v1790_v55 = vmul.f32 %v6451_v45, %v1726_v3  ;;  %v7032_v18 = vld [vmem:[#allocation23_spill] sm:$0xff] }
 0x357   : > { %3196 = vmatmul.mubr.bf16.gmra.mxu1 %v2776_v39  ;;  %v6511_v1 = vpop.eup %4225  ;;  %v2176_v62 = vmul.f32 %v2112_v40, %v6403_v9  ;;  %v1915_v53 = vmul.f32 %v6386_v6, %v1851_v36  ;;  %4231 = vpow2.f32 %v2296_v17  ;;  %v2300_v8 = vmul.f32 1.442695, %v2175_v33  ;;  %v7033_v9 = vld [vmem:[#allocation39_spill] sm:$0xff]  ;;  %v7034_v40 = vld [vmem:[#allocation14_spill] sm:$0xff] }
 0x358   : > { %v1664_v10 = vmul.f32 %v6492_v29, %v1600_v61  ;;  %3203 = vmatprep.mubr.bf16.mxu1 %v2781_v51  ;;  %v1535_v12 = vmul.f32 1.0614054, %v6511_v1  ;;  %v2298_v23 = vmul.f32 1.442695, %v2174_v50  ;;  %v2177_v5 = vmul.f32 %v2113_v60, %v6456_v32  ;;  %v7035_v33 = vld [vmem:[#allocation43_spill] sm:$0xff]  ;;  %v7036_v51 = vld [vmem:[#allocation54_spill] sm:$0xff] }
 0x359   : > { %v2783_v54 = vpack.c.bf16 %v7032_v18, %v7031_v58  ;;  %v1788_v31 = vmul.f32 %v6437_v26, %v1724_v21  ;;  %v1917_v3 = vmul.f32 %v6426_v16, %v1853_v4  ;;  %v2778_v15 = vpack.c.bf16 %v7034_v40, %v7033_v9  ;;  %v7037_v60 = vld [vmem:[#allocation40_spill] sm:$0xff]  ;;  %v7038_v21 = vld [vmem:[#allocation17_spill] sm:$0xff] }
 0x35a   : > { %v1728_v25 = vadd.f32 1.4214138, %v1664_v10  ;;  %v1599_v2 = vadd.f32 -1.4531521, %v1535_v12  ;;  %v1854_v36 = vadd.f32 -0.28449672, %v1790_v55  ;;  %v2785_v50 = vpack.c.bf16 %v7036_v51, %v7035_v33 }
 0x35b   : > { %v2302_v39 = vmul.f32 1.442695, %v2176_v62  ;;  %v1979_v61 = vadd.f32 0.2548296, %v1915_v53  ;;  %4233 = vpow2.f32 %v2300_v8  ;;  %v2780_v10 = vpack.c.bf16 %v7038_v21, %v7037_v60 }
 0x35c   : > { %v1792_v17 = vmul.f32 %v6492_v29, %v1728_v25  ;;  %v1663_v32 = vmul.f32 %v6511_v1, %v1599_v2  ;;  %vm2487_vm4 = vcmp.ge.f32.partialorder %v6189_v56, 0.0  ;;  %v1914_v55 = vmul.f32 %v6394_v38, %v1850_v37 }
 0x35d   : > { %3107 = vmatmul.mubr.bf16.gmra.mxu0 %v2778_v15  ;;  %v6533_v4 = vpop.eup %4227  ;;  %4235 = vpow2.f32 %v2298_v23  ;;  %v2304_v62 = vmul.f32 1.442695, %v2177_v5  ;;  %vm2486_vm5 = vcmp.ge.f32.partialorder %v6132_v43, 0.0  ;;  %v1981_v53 = vadd.f32 0.2548296, %v1917_v3 }
 0x35e   : > { %v1856_v12 = vadd.f32 -0.28449672, %v1792_v17  ;;  %3114 = vmatprep.mubr.bf16.mxu0 %v2783_v54  ;;  %4237 = vpow2.f32 %v6459_v57  ;;  %v1727_v8 = vadd.f32 1.4214138, %v1663_v32  ;;  %v1537_v25 = vmul.f32 1.0614054, %v6533_v4 }
 0x35f   : > { %3204 = vmatmul.mubr.bf16.gmra.mxu1 %v2780_v10  ;;  %v2425_v58 = vsub.f32 1.0, %v6513_v14  ;;  %vm2489_vm6 = vcmp.ge.f32.partialorder %v6212_v27, 0.0  ;;  %v1852_v18 = vadd.f32 -0.28449672, %v1788_v31  ;;  %v1918_v37 = vmul.f32 %v6451_v45, %v1854_v36  ;;  %v7039_v14 = vld [vmem:[#allocation57_spill] sm:$0xff]  ;;  %v7040_v36 = vld [vmem:[#allocation47_spill] sm:$0xff] }
 0x360   : > { %4239 = vpow2.f32 %v2302_v39  ;;  %3211 = vmatprep.mubr.bf16.mxu1 %v2785_v50  ;;  %v2551_v23 = vsub.f32 0.0, %v2423_v34  ;;  %v2043_v5 = vmul.f32 %v6386_v6, %v1979_v61  ;;  %v1791_v57 = vmul.f32 %v6511_v1, %v1727_v8  ;;  %v7041_v17 = vld [vmem:[#allocation50_spill] sm:$0xff]  ;;  %v7043_v32 = vld [vmem:[#allocation51_spill] sm:$0xff] }
 0x361   : > { %v1601_v54 = vadd.f32 -1.4531521, %v1537_v25  ;;  %v1978_v3 = vadd.f32 0.2548296, %v1914_v55  ;;  %v1920_v2 = vmul.f32 %v6492_v29, %v1856_v12  ;;  %4241 = vpow2.f32 %v2304_v62  ;;  %v7042_v61 = vld [vmem:[#allocation58_spill] sm:$0xff]  ;;  %v7045_v55 = vld [vmem:[#allocation44_spill] sm:$0xff] }
 0x362   : > { %v2787_v9 = vpack.c.bf16 %v6112_v19, %v7039_v14  ;;  %v2045_v31 = vmul.f32 %v6426_v16, %v1981_v53  ;;  %v1855_v40 = vadd.f32 -0.28449672, %v1791_v57  ;;  %v2782_v39 = vpack.c.bf16 %v7041_v17, %v7040_v36  ;;  %v4230_v33 = vpop.eup %4229  ;;  %v7044_v16 = vld [vmem:[#allocation48_spill] sm:$0xff]  ;;  %v7046_v8 = vld [vmem:[#allocation15_spill] sm:$0xff]  ;;  %v7050_v36 = vld [vmem:[#allocation41_spill] sm:$0xff] }
 0x363   : > { %v1665_v15 = vmul.f32 %v6533_v4, %v1601_v54  ;;  %v2553_v6 = vsub.f32 0.0, %v2425_v58  ;;  %v1916_v51 = vmul.f32 %v6437_v26, %v1852_v18  ;;  %v1982_v50 = vadd.f32 0.2548296, %v1918_v37 }
 0x364   : > { %v2789_v60 = vpack.c.bf16 %v7043_v32, %v7042_v61  ;;  %v6557_v21 = vmul.f32 %v4230_v33, %v2043_v5  ;;  %v1919_v19 = vmul.f32 %v6511_v1, %v1855_v40  ;;  %v2784_v12 = vpack.c.bf16 %v7045_v55, %v7044_v16  ;;  %v4232_v62 = vpop.eup %4231  ;;  %v7052_v61 = vld [vmem:[#allocation53_spill] sm:$0xff] }
 0x365   : > { %v1729_v10 = vadd.f32 1.4214138, %v1665_v15  ;;  %3115 = vmatmul.mubr.bf16.gmra.mxu0 %v2782_v39  ;;  %v6564_v53 = vmul.f32 %v6432_v44, %v6254_v41  ;;  %vm2488_vm7 = vcmp.ge.f32.partialorder %v7046_v8, 0.0  ;;  %v2042_v25 = vmul.f32 %v6394_v38, %v1978_v3 }
 0x366   : > { %v6569_v18 = vmul.f32 0.5, %v6267_v20  ;;  %v1984_v37 = vadd.f32 0.2548296, %v1920_v2  ;;  %3122 = vmatprep.mubr.bf16.mxu0 %v2787_v9  ;;  %v2615_v5 = vsel %vm2487_vm4, %v2423_v34, %v2551_v23  ;;  %v2365_v57 = vmul.f32 %v4232_v62, %v2045_v31 }
 0x367   : > { %v1983_v54 = vadd.f32 0.2548296, %v1919_v19  ;;  %v1793_v14 = vmul.f32 %v6533_v4, %v1729_v10  ;;  %3212 = vmatmul.mubr.bf16.gmra.mxu1 %v2784_v12  ;;  %v7047_v41 = vsub.f32 1.0, %v6416_v49  ;;  %v7048_v20 = vsub.f32 1.0, %v6440_v42 }
 0x368   : > { %v1980_v3 = vadd.f32 0.2548296, %v1916_v51  ;;  %vm2491_vm8 = vcmp.ge.f32.partialorder %v6286_v63, 0.0  ;;  %v2046_v56 = vmul.f32 %v6451_v45, %v1982_v50  ;;  %3219 = vmatprep.mubr.bf16.mxu1 %v2789_v60  ;;  %v2617_v48 = vsel %vm2489_vm6, %v2425_v58, %v2553_v6  ;;  %v4234_v2 = vpop.eup %4233  ;;  %v7049_v58 = vld [vmem:[#allocation55_spill] sm:$0xff] }
 0x369   : > { %v2614_v38 = vsel %vm2486_vm5, %v7047_v41, %v6474_v13  ;;  %v2552_v44 = vsub.f32 0.0, %v7048_v20  ;;  %v2427_v34 = vsub.f32 1.0, %v6557_v21  ;;  %v2047_v23 = vmul.f32 %v6511_v1, %v1983_v54  ;;  %v7054_v54 = vld [vmem:[#allocation70_spill] sm:$0xff] }
 0x36a   : > { %v1857_v49 = vadd.f32 -0.28449672, %v1793_v14  ;;  %v2679_v43 = vadd.f32 1.0, %v2615_v5  ;;  %v6590_v13 = vmul.f32 %v6486_v30, %v2042_v25  ;;  %v2048_v9 = vmul.f32 %v6492_v29, %v1984_v37  ;;  %v4236_v45 = vpop.eup %4235 }
 0x36b   : > { %v2791_v31 = vpack.c.bf16 %v6329_v11, %v6228_v0  ;;  %v2429_v40 = vsub.f32 1.0, %v2365_v57  ;;  %v2367_v15 = vmul.f32 %v4234_v2, %v2047_v23  ;;  %v2786_v17 = vpack.c.bf16 %v7050_v36, %v7049_v58  ;;  %v4238_v1 = vpop.eup %4237  ;;  %v7051_v11 = vld [vmem:[#allocation30_spill] sm:$0xff] }
 0x36c   : > { %v1921_v27 = vmul.f32 %v6533_v4, %v1857_v49  ;;  %v2681_v39 = vadd.f32 1.0, %v2617_v48  ;;  %v2044_v33 = vmul.f32 %v6437_v26, %v1980_v3  ;;  %v2366_v6 = vmul.f32 %v4236_v45, %v2046_v56  ;;  %v7058_v49 = vld [vmem:[#allocation49_spill] sm:$0xff] }
 0x36d   : > { %v2793_v30 = vpack.c.bf16 %v6351_v35, %v6233_v7  ;;  %v4240_v29 = vpop.eup %4239  ;;  %v2555_v51 = vsub.f32 0.0, %v2427_v34  ;;  %v2431_v50 = vsub.f32 1.0, %v2367_v15  ;;  %3123 = vmatmul.mubr.bf16.gmra.mxu0 %v2786_v17  ;;  %v2788_v32 = vpack.c.bf16 %v7052_v61, %v7051_v11  ;;  %v7062_v15 = vld [vmem:[#allocation72_spill] sm:$0xff] }
 0x36e   : > { %v1985_v0 = vadd.f32 0.2548296, %v1921_v27  ;;  %v2678_v60 = vadd.f32 1.0, %v2614_v38  ;;  %v2743_v21 = vmul.f32 %v2679_v43, %v6325_v24  ;;  %v1149_v19 = vmul.f32 0.5, %v6316_v28  ;;  %3130 = vmatprep.mubr.bf16.mxu0 %v2791_v31  ;;  %v4242_v26 = vpop.eup %4241  ;;  %v7055_v38 = vld [vmem:[#allocation21_spill] sm:$0xff]  ;;  %v7060_v31 = vld [vmem:[#allocation56_spill] sm:$0xff] }
 0x36f   : > { %v2368_v10 = vmul.f32 %v4240_v29, %v2048_v9  ;;  %v7053_v16 = vmov %v7048_v20  ;;  %v2557_v35 = vsub.f32 0.0, %v2429_v40  ;;  %v2559_v55 = vsub.f32 0.0, %v2431_v50  ;;  %3220 = vmatmul.mubr.bf16.gmra.mxu1 %v2788_v32  ;;  %v7059_v9 = vld [vmem:[#allocation73_spill] sm:$0xff] }
 0x370   : > { %v2616_v7 = vsel %vm2488_vm7, %v7053_v16, %v2552_v44  ;;  %v2049_v12 = vmul.f32 %v6533_v4, %v1985_v0  ;;  %v2745_v62 = vmul.f32 %v2681_v39, %v6383_v47  ;;  %vm2490_vm9 = vcmp.ge.f32.partialorder %v6264_v59, 0.0  ;;  %3227 = vmatprep.mubr.bf16.mxu1 %v2793_v30  ;;  %v7063_v39 = vld [vmem:[#allocation52_spill] sm:$0xff]  ;;  %v7065_v30 = vld [vmem:[#allocation67_spill] sm:$0xff] }
 0x371   : > { %v2364_v24 = vmul.f32 %v4238_v1, %v2044_v33  ;;  %v2430_v25 = vsub.f32 1.0, %v2366_v6  ;;  %vm2495_vm10 = vcmp.ge.f32.partialorder %v6414_v22, 0.0  ;;  %v2426_v28 = vsub.f32 1.0, %v6590_v13  ;;  %v7056_v22 = vld [vmem:[#allocation61_spill] sm:$0xff] }
 0x372   : > { %v2619_v42 = vsel %vm2491_vm8, %v2427_v34, %v2555_v51  ;;  %v2623_v8 = vsel %vm2495_vm10, %v2431_v50, %v2559_v55  ;;  %v2369_v37 = vmul.f32 %v4242_v26, %v2049_v12  ;;  %vm2493_vm11 = vcmp.ge.f32.partialorder %v6336_v46, 0.0  ;;  %v7057_v46 = vld [vmem:[#allocation64_spill] sm:$0xff]  ;;  %v7064_v33 = vld [vmem:[#allocation69_spill] sm:$0xff]  ;;  %v7070_v12 = vld [vmem:[#allocation59_spill] sm:$0xff] }
 0x373   : > { %v2432_v4 = vsub.f32 1.0, %v2368_v10  ;;  %v2687_v5 = vadd.f32 1.0, %v2623_v8  ;;  %v2795_v47 = vpack.c.bf16 %v2743_v21, %v6429_v52  ;;  %v2621_v57 = vsel %vm2493_vm11, %v2429_v40, %v2557_v35  ;;  %v7061_v40 = vld [vmem:[#allocation60_spill] sm:$0xff]  ;;  %v7066_v50 = vld [vmem:[#allocation25_spill] sm:$0xff]  ;;  %v7068_v21 = vld [vmem:[#allocation71_spill] sm:$0xff] }
 0x374   : > { %v1151_v14 = vmul.f32 0.5, %v7054_v54  ;;  %v2433_v41 = vsub.f32 1.0, %v2369_v37  ;;  %v2790_v20 = vpack.c.bf16 %v7056_v22, %v7055_v38  ;;  %v2428_v44 = vsub.f32 1.0, %v2364_v24  ;;  %v7069_v10 = vld [vmem:[#allocation68_spill] sm:$0xff]  ;;  %v7072_v8 = vld [vmem:[#allocation62_spill] sm:$0xff] }
 0x375   : > { %v2683_v3 = vadd.f32 1.0, %v2619_v42  ;;  %v2558_v56 = vsub.f32 0.0, %v2430_v25  ;;  %v2797_v63 = vpack.c.bf16 %v2745_v62, %v6564_v53  ;;  %v2680_v48 = vadd.f32 1.0, %v2616_v7 }
 0x376   : > { %v2554_v34 = vsub.f32 0.0, %v2426_v28  ;;  %v2561_v23 = vsub.f32 0.0, %v2433_v41  ;;  %3131 = vmatmul.mubr.bf16.gmra.mxu0 %v2790_v20  ;;  %v2792_v2 = vpack.c.bf16 %v7058_v49, %v7057_v46  ;;  %v2685_v52 = vadd.f32 1.0, %v2621_v57 }
 0x377   : > { %v2560_v43 = vsub.f32 0.0, %v2432_v4  ;;  %v2751_v13 = vmul.f32 %v2687_v5, %v1151_v14  ;;  %vm2497_vm12 = vcmp.ge.f32.partialorder %v7059_v9, 0.0  ;;  %3138 = vmatprep.mubr.bf16.mxu0 %v2795_v47  ;;  %v2742_v45 = vmul.f32 %v2678_v60, %v7060_v31  ;;  %v7067_v60 = vld [vmem:[#allocation63_spill] sm:$0xff]  ;;  %v7073_v5 = vld [vmem:[#allocation66_spill] sm:$0xff] }
 0x378   : > { %vm2494_vm13 = vcmp.ge.f32.partialorder %v7061_v40, 0.0  ;;  %v1153_v27 = vmul.f32 0.5, %v7062_v15  ;;  %v2625_v53 = vsel %vm2497_vm12, %v2433_v41, %v2561_v23  ;;  %3228 = vmatmul.mubr.bf16.gmra.mxu1 %v2792_v2  ;;  %v2556_v58 = vsub.f32 0.0, %v2428_v44 }
 0x379   : > { %v2747_v36 = vmul.f32 %v2683_v3, %v6569_v18  ;;  %v2622_v17 = vsel %vm2494_vm13, %v2430_v25, %v2558_v56  ;;  %v2689_v1 = vadd.f32 1.0, %v2625_v53  ;;  %3235 = vmatprep.mubr.bf16.mxu1 %v2797_v63  ;;  %v2738_v6 = vmul.f32 %v7064_v33, %v7063_v39 }
 0x37a   : > { %v2744_v29 = vmul.f32 %v2680_v48, %v7065_v30  ;;  %v2618_v51 = vsel %vm2490_vm9, %v2426_v28, %v2554_v34  ;;  %vm2496_vm14 = vcmp.ge.f32.partialorder %v7066_v50, 0.0  ;;  %v2749_v0 = vmul.f32 %v2685_v52, %v1149_v19  ;;  %v7071_v19 = vld [vmem:[#allocation65_spill] sm:$0xff]  ;;  %v6645_v48 = vld [vmem:[%s6743_s5] ss:$0 sm:$0xff] }
 0x37b   : > { %v2624_v11 = vsel %vm2496_vm14, %v2432_v4, %v2560_v43  ;;  %v2753_v61 = vmul.f32 %v2689_v1, %v1153_v27  ;;  %v2799_v32 = vpack.c.bf16 %v2751_v13, %v2747_v36  ;;  %v2740_v18 = vmul.f32 %v7068_v21, %v7067_v60 }
 0x37c   : > { %vm2492_vm15 = vcmp.ge.f32.partialorder %v7069_v10, 0.0  ;;  %v2686_v26 = vadd.f32 1.0, %v2622_v17  ;;  %v2794_v16 = vpack.c.bf16 %v2742_v45, %v2738_v6  ;;  %v2682_v55 = vadd.f32 1.0, %v2618_v51 }
 0x37d   : > { %v2620_v7 = vsel %vm2492_vm15, %v2428_v44, %v2556_v58  ;;  %v2801_v35 = vpack.c.bf16 %v2753_v61, %v2749_v0  ;;  %v1150_v62 = vmul.f32 0.5, %v7070_v12  ;;  %v2688_v59 = vadd.f32 1.0, %v2624_v11 }
 0x37e   : > { %3139 = vmatmul.mubr.bf16.gmra.mxu0 %v2794_v16  ;;  %v2796_v24 = vpack.c.bf16 %v2744_v29, %v2740_v18  ;;  %v1146_v25 = vmul.f32 0.5, %v7071_v19  ;;  %v2684_v28 = vadd.f32 1.0, %v2620_v7  ;;  %v1152_v37 = vmul.f32 0.5, %v7072_v8 }
 0x37f   : > { %3146 = vmatprep.mubr.bf16.mxu0 %v2799_v32  ;;  %v2750_v42 = vmul.f32 %v2686_v26, %v1150_v62  ;;  %v1148_v47 = vmul.f32 0.5, %v7073_v5 }
 0x380   : > { %3236 = vmatmul.mubr.bf16.gmra.mxu1 %v2796_v24  ;;  %v2746_v4 = vmul.f32 %v2682_v55, %v1146_v25  ;;  %v2752_v57 = vmul.f32 %v2688_v59, %v1152_v37 }
 0x381   : > { %3243 = vmatprep.mubr.bf16.mxu1 %v2801_v35  ;;  %v2748_v54 = vmul.f32 %v2684_v28, %v1148_v47 }
 0x382   : > { %v2798_v14 = vpack.c.bf16 %v2750_v42, %v2746_v4 }
 0x383   : > { %v2800_v41 = vpack.c.bf16 %v2752_v57, %v2748_v54 }
 0x386   : > { %3147 = vmatmul.mubr.bf16.gmra.mxu0 %v2798_v14 }
 0x388   : > { %3244 = vmatmul.mubr.bf16.gmra.mxu1 %v2800_v41 }
 0x40d   : > { %v3663_v38 = vpop.f32.mrf.mxu0 }
 0x40f   : > { %v3727_v22 = vpop.f32.mrf.mxu1  ;;  %v3664_v20 = vpop.f32.mrf.mxu0 }
 0x410   : > { %v3665_v44 = vadd.f32 %v3664_v20, %v3663_v38 }
 0x411   : > { %v3728_v3 = vpop.f32.mrf.mxu1  ;;  %v3666_v56 = vpop.f32.mrf.mxu0 }
 0x412   : > { %v3729_v63 = vadd.f32 %v3728_v3, %v3727_v22 }
 0x413   : > { %v3730_v34 = vpop.f32.mrf.mxu1  ;;  %v3667_v23 = vpop.f32.mrf.mxu0 }
 0x414   : > { %v3190_v46 = vadd.f32 %v3729_v63, %v3665_v44  ;;  %v3668_v49 = vadd.f32 %v3667_v23, %v3666_v56 }
 0x415   : > { %v3731_v2 = vpop.f32.mrf.mxu1  ;;  %v3669_v52 = vpop.f32.mrf.mxu0 }
 0x416   : > { %v3310_v43 = vadd.f32 %v6645_v48, %v3190_v46  ;;  %v3732_v13 = vadd.f32 %v3731_v2, %v3730_v34 }
 0x417   : > { %v3733_v9 = vpop.f32.mrf.mxu1  ;;  %v3670_v31 = vpop.f32.mrf.mxu0 }
 0x418   : > { %3326 = vst [vmem:[%s6650_s30] sm:$0xff] %v3310_v43  ;;  %v3193_v45 = vadd.f32 %v3732_v13, %v3668_v49  ;;  %v3671_v40 = vadd.f32 %v3670_v31, %v3669_v52 }
 0x419   : > { %v3734_v15 = vpop.f32.mrf.mxu1  ;;  %v3672_v27 = vpop.f32.mrf.mxu0 }
 0x41a   : > { %v3311_v53 = vadd.f32 %v6645_v48, %v3193_v45  ;;  %v3735_v58 = vadd.f32 %v3734_v15, %v3733_v9 }
 0x41b   : > { %v3736_v36 = vpop.f32.mrf.mxu1  ;;  %v3673_v17 = vpop.f32.mrf.mxu0 }
 0x41c   : > { %3327 = vst [vmem:[%s6650_s30 + $0x8] sm:$0xff] %v3311_v53  ;;  %v3198_v1 = vadd.f32 %v3735_v58, %v3671_v40  ;;  %v3674_v39 = vadd.f32 %v3673_v17, %v3672_v27 }
 0x41d   : > { %v3737_v33 = vpop.f32.mrf.mxu1  ;;  %v3675_v6 = vpop.f32.mrf.mxu0 }
 0x41e   : > { %v3312_v30 = vadd.f32 %v6645_v48, %v3198_v1  ;;  %v3738_v29 = vadd.f32 %v3737_v33, %v3736_v36 }
 0x41f   : > { %v3739_v51 = vpop.f32.mrf.mxu1  ;;  %v3676_v50 = vpop.f32.mrf.mxu0 }
 0x420   : > { %3328 = vst [vmem:[%s6650_s30 + $0x10] sm:$0xff] %v3312_v30  ;;  %v3201_v0 = vadd.f32 %v3738_v29, %v3674_v39  ;;  %v3677_v11 = vadd.f32 %v3676_v50, %v3675_v6 }
 0x421   : > { %v3740_v61 = vpop.f32.mrf.mxu1  ;;  %v3678_v32 = vpop.f32.mrf.mxu0 }
 0x422   : > { %v3313_v60 = vadd.f32 %v6645_v48, %v3201_v0  ;;  %v3741_v21 = vadd.f32 %v3740_v61, %v3739_v51 }
 0x423   : > { %v3742_v18 = vpop.f32.mrf.mxu1  ;;  %v3679_v10 = vpop.f32.mrf.mxu0 }
 0x424   : > { %3329 = vst [vmem:[%s6650_s30 + $0x18] sm:$0xff] %v3313_v60  ;;  %v3206_v26 = vadd.f32 %v3741_v21, %v3677_v11  ;;  %v3680_v16 = vadd.f32 %v3679_v10, %v3678_v32 }
 0x425   : > { %v3743_v7 = vpop.f32.mrf.mxu1  ;;  %v3681_v35 = vpop.f32.mrf.mxu0 }
 0x426   : > { %v3314_v55 = vadd.f32 %v6645_v48, %v3206_v26  ;;  %v3744_v12 = vadd.f32 %v3743_v7, %v3742_v18 }
 0x427   : > { %v3745_v62 = vpop.f32.mrf.mxu1  ;;  %v3682_v59 = vpop.f32.mrf.mxu0 }
 0x428   : > { %3330 = vst [vmem:[%s6650_s30 + $0x20] sm:$0xff] %v3314_v55  ;;  %v3209_v24 = vadd.f32 %v3744_v12, %v3680_v16  ;;  %v3683_v19 = vadd.f32 %v3682_v59, %v3681_v35 }
 0x429   : > { %v3746_v25 = vpop.f32.mrf.mxu1  ;;  %v3684_v28 = vpop.f32.mrf.mxu0 }
 0x42a   : > { %v3315_v42 = vadd.f32 %v6645_v48, %v3209_v24  ;;  %v3747_v8 = vadd.f32 %v3746_v25, %v3745_v62 }
 0x42b   : > { %v3748_v37 = vpop.f32.mrf.mxu1  ;;  %v3685_v4 = vpop.f32.mrf.mxu0 }
 0x42c   : > { %3331 = vst [vmem:[%s6650_s30 + $0x28] sm:$0xff] %v3315_v42  ;;  %v3214_v5 = vadd.f32 %v3747_v8, %v3683_v19  ;;  %v3686_v47 = vadd.f32 %v3685_v4, %v3684_v28 }
 0x42d   : > { %v3749_v57 = vpop.f32.mrf.mxu1  ;;  %v3687_v54 = vpop.f32.mrf.mxu0 }
 0x42e   : > { %v3316_v14 = vadd.f32 %v6645_v48, %v3214_v5  ;;  %v3750_v41 = vadd.f32 %v3749_v57, %v3748_v37 }
 0x42f   : > { %v3751_v38 = vpop.f32.mrf.mxu1  ;;  %v3688_v22 = vpop.f32.mrf.mxu0 }
 0x430   : > { %3332 = vst [vmem:[%s6650_s30 + $0x30] sm:$0xff] %v3316_v14  ;;  %v3217_v20 = vadd.f32 %v3750_v41, %v3686_v47  ;;  %v3689_v44 = vadd.f32 %v3688_v22, %v3687_v54 }
 0x431   : > { %v3752_v3 = vpop.f32.mrf.mxu1  ;;  %v3690_v56 = vpop.f32.mrf.mxu0 }
 0x432   : > { %v3317_v63 = vadd.f32 %v6645_v48, %v3217_v20  ;;  %v3753_v34 = vadd.f32 %v3752_v3, %v3751_v38 }
 0x433   : > { %v3754_v23 = vpop.f32.mrf.mxu1  ;;  %v3691_v46 = vpop.f32.mrf.mxu0 }
 0x434   : > { %3333 = vst [vmem:[%s6650_s30 + $0x38] sm:$0xff] %v3317_v63  ;;  %v3222_v49 = vadd.f32 %v3753_v34, %v3689_v44  ;;  %v3692_v2 = vadd.f32 %v3691_v46, %v3690_v56 }
 0x435   : > { %v3755_v52 = vpop.f32.mrf.mxu1 }
 0x436   : > { %v3693_v43 = vpop.f32.mrf.mxu0  ;;  %v3318_v13 = vadd.f32 %v6645_v48, %v3222_v49  ;;  %v3756_v9 = vadd.f32 %v3755_v52, %v3754_v23 }
 0x438   : > { %v3757_v31 = vpop.f32.mrf.mxu1  ;;  %v3694_v45 = vpop.f32.mrf.mxu0  ;;  %3334 = vst [vmem:[%s6650_s30 + $0x40] sm:$0xff] %v3318_v13  ;;  %v3225_v40 = vadd.f32 %v3756_v9, %v3692_v2 }
 0x439   : > { %v3695_v15 = vadd.f32 %v3694_v45, %v3693_v43 }
 0x43a   : > { %v3758_v27 = vpop.f32.mrf.mxu1  ;;  %v3696_v53 = vpop.f32.mrf.mxu0  ;;  %v3319_v58 = vadd.f32 %v6645_v48, %v3225_v40 }
 0x43b   : > { %v3759_v36 = vadd.f32 %v3758_v27, %v3757_v31 }
 0x43c   : > { %v3760_v17 = vpop.f32.mrf.mxu1  ;;  %v3697_v1 = vpop.f32.mrf.mxu0  ;;  %3335 = vst [vmem:[%s6650_s30 + $0x48] sm:$0xff] %v3319_v58 }
 0x43d   : > { %v3230_v39 = vadd.f32 %v3759_v36, %v3695_v15  ;;  %v3698_v33 = vadd.f32 %v3697_v1, %v3696_v53 }
 0x43e   : > { %v3761_v6 = vpop.f32.mrf.mxu1  ;;  %v3699_v30 = vpop.f32.mrf.mxu0 }
 0x43f   : > { %v3320_v29 = vadd.f32 %v6645_v48, %v3230_v39  ;;  %v3762_v51 = vadd.f32 %v3761_v6, %v3760_v17 }
 0x440   : > { %v3763_v50 = vpop.f32.mrf.mxu1  ;;  %v3700_v0 = vpop.f32.mrf.mxu0 }
 0x441   : > { %3336 = vst [vmem:[%s6650_s30 + $0x50] sm:$0xff] %v3320_v29  ;;  %v3233_v11 = vadd.f32 %v3762_v51, %v3698_v33  ;;  %v3701_v61 = vadd.f32 %v3700_v0, %v3699_v30 }
 0x442   : > { %v3764_v32 = vpop.f32.mrf.mxu1  ;;  %v3702_v60 = vpop.f32.mrf.mxu0 }
 0x443   : > { %v3321_v21 = vadd.f32 %v6645_v48, %v3233_v11  ;;  %v3765_v18 = vadd.f32 %v3764_v32, %v3763_v50 }
 0x444   : > { %v3766_v10 = vpop.f32.mrf.mxu1  ;;  %v3703_v26 = vpop.f32.mrf.mxu0 }
 0x445   : > { %3337 = vst [vmem:[%s6650_s30 + $0x58] sm:$0xff] %v3321_v21  ;;  %v3238_v16 = vadd.f32 %v3765_v18, %v3701_v61  ;;  %v3704_v7 = vadd.f32 %v3703_v26, %v3702_v60 }
 0x446   : > { %v3767_v35 = vpop.f32.mrf.mxu1  ;;  %v3705_v55 = vpop.f32.mrf.mxu0 }
 0x447   : > { %v3322_v12 = vadd.f32 %v6645_v48, %v3238_v16  ;;  %v3768_v62 = vadd.f32 %v3767_v35, %v3766_v10 }
 0x448   : > { %v3769_v59 = vpop.f32.mrf.mxu1  ;;  %v3706_v24 = vpop.f32.mrf.mxu0 }
 0x449   : > { %3338 = vst [vmem:[%s6650_s30 + $0x60] sm:$0xff] %v3322_v12  ;;  %v3241_v19 = vadd.f32 %v3768_v62, %v3704_v7  ;;  %v3707_v25 = vadd.f32 %v3706_v24, %v3705_v55 }
 0x44a   : > { %v3770_v28 = vpop.f32.mrf.mxu1  ;;  %v3708_v42 = vpop.f32.mrf.mxu0 }
 0x44b   : > { %v3323_v8 = vadd.f32 %v6645_v48, %v3241_v19  ;;  %v3771_v37 = vadd.f32 %v3770_v28, %v3769_v59 }
 0x44c   : > { %v3772_v4 = vpop.f32.mrf.mxu1  ;;  %v3709_v5 = vpop.f32.mrf.mxu0 }
 0x44d   : > { %3339 = vst [vmem:[%s6650_s30 + $0x68] sm:$0xff] %v3323_v8  ;;  %v3246_v47 = vadd.f32 %v3771_v37, %v3707_v25  ;;  %v3710_v57 = vadd.f32 %v3709_v5, %v3708_v42 }
 0x44e   : > { %v3773_v54 = vpop.f32.mrf.mxu1 }
 0x44f   : > { %v3324_v14 = vadd.f32 %v6645_v48, %v3246_v47  ;;  %v3774_v41 = vadd.f32 %v3773_v54, %v3772_v4 }
 0x451   : > { %3340 = vst [vmem:[%s6650_s30 + $0x70] sm:$0xff] %v3324_v14  ;;  %v3249_v38 = vadd.f32 %v3774_v41, %v3710_v57 }
 0x453   : > { %v3325_v22 = vadd.f32 %v6645_v48, %v3249_v38 }
 0x455   : > { %3341 = vst [vmem:[%s6650_s30 + $0x78] sm:$0xff] %v3325_v22 }
 0x456   : > { %4336 = shalt.err (!%p4333_p5)
}
 0x457   : > { %s4337_s29 = scalar_lea.hbm %s6686_s20, 2048  ;;  %s4341_s28 = scalar_lea.hbm %s6744_s6, 4096 }
 0x458   : > { %p4338_p10 = scmp.ne.s32.totalorder %s6686_s20, %s4337_s29  ;;  %p4342_p6 = scmp.lt.s32.totalorder %s6686_s20, %s6744_s6 }
 0x459   : > { %p4343_p12 = scmp.lt.s32.totalorder %s4341_s28, %s4337_s29 }
 0x45a   : > { %p4339_p1 = pnand %p4338_p10, %p4552_p7 }
 0x45b   : > { %p4344_p3 = por %p4343_p12, %p4342_p6 }
 0x45c   : > { %p4340_p4 = pneg %p4339_p1 }
 0x45e   : > { %p4345_p8 = pnand %p4344_p3, %p4340_p4 }
 0x460   : > { %4348 = shalt.err (!%p4345_p8)
}
 0x461   : > { %s4420_s12 = smov 128   ;;  %s4421_s18 = smov 8  }
 0x462   : > { %3785 = dma.vmem_to_hbm [thread:$0]  (%p4552_p7), %s6688_s15, 2048, %s6686_s20, %s3343_s4, %s4420_s12, %s4420_s12, %s4421_s18  }
 0x463 PF: > { %s3371_s14 = sand.u32 1, %s4387_s21   ;;  %p7074_p9 = scmp.ne.s32.totalorder %s6838_s8, 0 }
 0x464   : > { %p7075_p11 = scmp.ge.s32.totalorder %s4407_s26, 2  ;;  %s3372_s27 = scalar_lea.sflag [#allocation6], %s3371_s14 }
 0x466   : > { %p3799_p2 = pnand %p7075_p11, %p7074_p9 }
 0x468   : > { %p3800_p13 = pneg %p3799_p2 }
 0x46a   : > { %4382 = dma.done.wait (%p3800_p13), %s3372_s27, 2048  }
 0x46b   : > { %4384 = vsyncadd (%p3800_p13), %s3372_s27, 4294965248  ;;  %s23_s26 = sadd.s32 1, %s4407_s26   ;;  %s7076_s21 = smov %s4391_s22 }
 0x46c   : > { %p20_p0 = scmp.ge.s32.totalorder %s23_s26, 4   ;;  %s7077_s22 = smov %s4395_s23 }
 0x46d   : > { %s7078_s23 = smov %s4561_s19  ;;  %s7079_s24 = smov %s4403_s25 }
 0x46e   : > { %s7080_s25 = smov %s7082_s13  ;;  %22 = sbr.rel (!%p20_p0) target bundleno = 10 (0xa), region = 110 }
 0x473   :  { %3377 = vsyncpa [#allocation5], 1 }
 0x474   :  { %3379 = vsyncpa [#allocation5 + $0x1], 1 }
 0x475   :  { %3380 = vsyncpa [#allocation8], 1 }
 0x476   :  { %3381 = vsyncpa [#allocation6], 1 }
 0x477   :  { %3383 = vsyncpa [#allocation6 + $0x1], 1 }

</bundles_post_ra>
